<compile_context>
chip_gen: v7x
topology: tpu7x:2x2x1
jax: 0.10.0
libtpu: 0.0.40
codegen_flags: <defaults>
</compile_context>

<pallas_src>
import functools

import jax
import jax.numpy as jnp
from jax.experimental import pallas as pl
from jax.experimental.pallas import tpu as pltpu

EPS = 1e-5  # nn.InstanceNorm2d default


# ---------------------------------------------------------------------------
# In-kernel helpers (traced inside the Pallas body)
# ---------------------------------------------------------------------------
def _fill_reflect_pad(pad_ref, src):
    """Write src (H, W, C) into pad_ref (H+2, W+2, C) with ReflectionPad2d(1)."""
    H, W = src.shape[0], src.shape[1]
    # interior
    pad_ref[1:H + 1, 1:W + 1, :] = src
    # top / bottom rows (reflection: padded row 0 = src row 1, etc.)
    pad_ref[0:1, 1:W + 1, :] = src[1:2]
    pad_ref[H + 1:H + 2, 1:W + 1, :] = src[H - 2:H - 1]
    # left / right columns (incl. corners) reflect from the already-written buffer
    pad_ref[:, 0:1, :] = pad_ref[:, 2:3, :]
    pad_ref[:, W + 1:W + 2, :] = pad_ref[:, W - 1:W, :]


def _conv3x3_from_pad(pad_ref, w_ref, b_ref):
    """3x3 valid conv reading from the padded VMEM scratch.

    pad_ref: (H+2, W+2, C) fp32, w_ref: (3, 3*C, Cout), b_ref: (1, Cout) fp32.
    The 3 dx taps are folded into the contraction dim -> 3 matmuls with K=3*C.
    Returns (H*W, Cout) fp32.
    """
    H = pad_ref.shape[0] - 2
    W = pad_ref.shape[1] - 2
    cout = w_ref.shape[2]
    mxu_dtype = w_ref.dtype                         # bf16 (or f32) MXU feed
    acc = jnp.zeros((H * W, cout), jnp.float32)
    for dy in range(3):
        patch = jnp.concatenate(
            [pad_ref[dy:dy + H, dx:dx + W, :] for dx in range(3)], axis=-1
        ).reshape(H * W, -1)                        # (H*W, 3*C)
        acc = acc + jnp.dot(patch.astype(mxu_dtype), w_ref[dy],
                            preferred_element_type=jnp.float32)
    return acc + b_ref[...].astype(jnp.float32)


def _instance_norm(y, n_spatial):
    """InstanceNorm2d (affine=False, biased var), fused single-pass stats.

    y: (H*W, C) fp32, normalized over axis 0 (spatial).
    """
    inv_n = 1.0 / n_spatial
    s = jnp.sum(y, axis=0, keepdims=True)
    ss = jnp.sum(y * y, axis=0, keepdims=True)
    mean = s * inv_n
    var = ss * inv_n - mean * mean
    return (y - mean) * jax.lax.rsqrt(var + EPS)


# ---------------------------------------------------------------------------
# Pallas kernel: one batch element per grid step
# ---------------------------------------------------------------------------
def _residual_block_kernel(x_ref, w1_ref, b1_ref, w2_ref, b2_ref, o_ref,
                           pad_ref):
    H = x_ref.shape[1]
    W = x_ref.shape[2]
    n_spatial = H * W

    # ---- conv1 -> IN -> ReLU ----
    _fill_reflect_pad(pad_ref, x_ref[0].astype(jnp.float32))
    h = _conv3x3_from_pad(pad_ref, w1_ref, b1_ref)           # (H*W, C) fp32
    h = jnp.maximum(_instance_norm(h, n_spatial), 0.0)

    # ---- conv2 -> IN (reuse the same padded scratch) ----
    _fill_reflect_pad(pad_ref, h.reshape(H, W, -1))
    h = _conv3x3_from_pad(pad_ref, w2_ref, b2_ref)
    h = _instance_norm(h, n_spatial)

    # ---- residual add: re-read x from the resident input block ----
    o_ref[0] = (x_ref[0].astype(jnp.float32)
                + h.reshape(H, W, -1)).astype(o_ref.dtype)


# ---------------------------------------------------------------------------
# Wrappers
# ---------------------------------------------------------------------------
def _pack_weight(w):
    """PyTorch (Cout, Cin, 3, 3) -> (3, 3*Cin, Cout) matching the tap folding."""
    cout, cin, kh, kw = w.shape
    w_t = jnp.transpose(w, (2, 3, 1, 0))           # (kh, kw, Cin, Cout)
    return w_t.reshape(kh, kw * cin, cout)         # K index = dx*Cin + cin


@functools.partial(jax.jit, static_argnames=("mxu_dtype",))
def residual_block_nhwc(x_nhwc, w1p, b1, w2p, b2, mxu_dtype=jnp.bfloat16):
    """NHWC entry point (use this in a chain of blocks to avoid transposes).

    x_nhwc: (N, H, W, C); w*p: (3, 3*C, C) pre-packed; b*: (C,).
    """
    N, H, W, C = x_nhwc.shape
    w1p = w1p.astype(mxu_dtype)
    w2p = w2p.astype(mxu_dtype)
    b1p = b1.reshape(1, C).astype(jnp.float32)
    b2p = b2.reshape(1, C).astype(jnp.float32)

    # Rough per-step VMEM budget: double-buffered x/out blocks, both weight
    # blocks, padded fp32 scratch, and a few fp32 intermediates.  Clamp so we
    # are above v5e's 16 MiB default scoped limit but leave headroom on v7x
    # (64 MiB physical).
    isz_x = jnp.dtype(x_nhwc.dtype).itemsize
    isz_w = jnp.dtype(mxu_dtype).itemsize
    est = (4 * H * W * C * isz_x                      # in + out, double-buffered
           + 2 * 2 * 9 * C * C * isz_w                # two weights (x2 buffers)
           + (H + 2) * (W + 2) * C * 4                # padded scratch
           + 6 * H * W * C * 4)                       # fp32 intermediates
    vmem_limit = int(min(max(2 * est, 32 * 1024 * 1024), 56 * 1024 * 1024))

    return pl.pallas_call(
        _residual_block_kernel,
        out_shape=jax.ShapeDtypeStruct((N, H, W, C), x_nhwc.dtype),
        grid_spec=pltpu.PrefetchScalarGridSpec(
            num_scalar_prefetch=0,
            grid=(N,),
            in_specs=[
                pl.BlockSpec((1, H, W, C), lambda n: (n, 0, 0, 0)),
                # Weight/bias block indices are constant across the grid, so
                # they are not re-DMA'd per batch step.
                pl.BlockSpec((3, 3 * C, C), lambda n: (0, 0, 0)),
                pl.BlockSpec((1, C), lambda n: (0, 0)),
                pl.BlockSpec((3, 3 * C, C), lambda n: (0, 0, 0)),
                pl.BlockSpec((1, C), lambda n: (0, 0)),
            ],
            out_specs=pl.BlockSpec((1, H, W, C), lambda n: (n, 0, 0, 0)),
            scratch_shapes=[pltpu.VMEM((H + 2, W + 2, C), jnp.float32)],
        ),
        compiler_params=pltpu.CompilerParams(
            dimension_semantics=("parallel",),
            vmem_limit_bytes=vmem_limit,
        ),
    )(x_nhwc, w1p, b1p, w2p, b2p)


@functools.partial(jax.jit, static_argnames=("mxu_dtype",))
def residual_block(x_nchw, w1, b1, w2, b2, mxu_dtype=jnp.bfloat16):
    """PyTorch-compatible entry: x (N,C,H,W); w* (C,C,3,3); b* (C,)."""
    x_nhwc = jnp.transpose(x_nchw, (0, 2, 3, 1))
    out_nhwc = residual_block_nhwc(x_nhwc, _pack_weight(w1), b1,
                                   _pack_weight(w2), b2, mxu_dtype=mxu_dtype)
    return jnp.transpose(out_nhwc, (0, 3, 1, 2))


# ---------------------------------------------------------------------------
# Pure-JAX reference (for the sanity check)
# ---------------------------------------------------------------------------
def _reference(x, w1, b1, w2, b2):
    def pad(a):
        return jnp.pad(a, ((0, 0), (0, 0), (1, 1), (1, 1)), mode="reflect")

    def conv(a, w, b):
        y = jax.lax.conv_general_dilated(
            pad(a), w, (1, 1), "VALID",
            dimension_numbers=("NCHW", "OIHW", "NCHW"))
        return y + b.reshape(1, -1, 1, 1)

    def inorm(y):
        m = jnp.mean(y, axis=(2, 3), keepdims=True)
        v = jnp.mean((y - m) ** 2, axis=(2, 3), keepdims=True)
        return (y - m) * jax.lax.rsqrt(v + EPS)

    h = jnp.maximum(inorm(conv(x, w1, b1)), 0.0)
    h = inorm(conv(h, w2, b2))
    return x + h


# ---------------------------------------------------------------------------
if __name__ == "__main__":
    # C=128 keeps the channel (lane) axis dense; still a small demo problem.
    N, C, H, W = 2, 128, 16, 16

    key = jax.random.PRNGKey(0)
    kx, kw1, kb1, kw2, kb2 = jax.random.split(key, 5)

    x = jax.random.normal(kx, (N, C, H, W), dtype=jnp.float32)
    w1 = jax.random.normal(kw1, (C, C, 3, 3), dtype=jnp.float32) * 0.1
    b1 = jax.random.normal(kb1, (C,), dtype=jnp.float32) * 0.1
    w2 = jax.random.normal(kw2, (C, C, 3, 3), dtype=jnp.float32) * 0.1
    b2 = jax.random.normal(kb2, (C,), dtype=jnp.float32) * 0.1

    ref = jax.block_until_ready(_reference(x, w1, b1, w2, b2))

    # fp32 MXU path: matches the PyTorch module semantics tightly.
    out_f32 = jax.block_until_ready(
        residual_block(x, w1, b1, w2, b2, mxu_dtype=jnp.float32))
    assert out_f32.shape == (N, C, H, W)
    assert jnp.allclose(out_f32, ref, atol=1e-3, rtol=1e-3), "fp32 path mismatch"

    # bf16-fed MXU path (fp32 accumulation + fp32 IN/ReLU/residual).
    out_bf16 = jax.block_until_ready(
        residual_block(x, w1, b1, w2, b2, mxu_dtype=jnp.bfloat16))
    assert out_bf16.shape == (N, C, H, W)
    assert jnp.allclose(out_bf16, ref, atol=5e-2, rtol=5e-2), "bf16 path mismatch"

    print("KERNEL_OK")
</pallas_src>

<mosaic_0001>
module attributes {stable_mosaic.version = 11 : i64} {
  func.func @_residual_block_kernel(%arg0: i32, %arg1: memref<1x16x16x128xf32, #tpu.memory_space<vmem>>, %arg2: memref<3x384x128xf32, #tpu.memory_space<vmem>>, %arg3: memref<1x128xf32, #tpu.memory_space<vmem>>, %arg4: memref<3x384x128xf32, #tpu.memory_space<vmem>>, %arg5: memref<1x128xf32, #tpu.memory_space<vmem>>, %arg6: memref<1x16x16x128xf32, #tpu.memory_space<vmem>>, %arg7: memref<18x18x128xf32, #tpu.memory_space<vmem>>) attributes {dimension_semantics = [#tpu.dimension_semantics<parallel>], iteration_bounds = array<i64: 2>, scalar_prefetch = 0 : i64, scratch_operands = 1 : i64, tpu.core_type = #tpu.core_type<tc>, window_params = [{transform_indices = @transform_0, window_bounds = array<i64: 1, 16, 16, 128>}, {pipeline_mode = #tpu.pipeline_mode<synchronous>, transform_indices = @transform_1, window_bounds = array<i64: 3, 384, 128>}, {pipeline_mode = #tpu.pipeline_mode<synchronous>, transform_indices = @transform_2, window_bounds = array<i64: 1, 128>}, {pipeline_mode = #tpu.pipeline_mode<synchronous>, transform_indices = @transform_3, window_bounds = array<i64: 3, 384, 128>}, {pipeline_mode = #tpu.pipeline_mode<synchronous>, transform_indices = @transform_4, window_bounds = array<i64: 1, 128>}, {transform_indices = @transform_5, window_bounds = array<i64: 1, 16, 16, 128>}]} {
    %c0 = arith.constant 0 : index
    %c0_0 = arith.constant 0 : index
    %c0_1 = arith.constant 0 : index
    %c0_2 = arith.constant 0 : index
    %0 = vector.load %arg1[%c0, %c0_0, %c0_1, %c0_2] : memref<1x16x16x128xf32, #tpu.memory_space<vmem>>, vector<1x16x16x128xf32>
    %1 = vector.shape_cast %0 : vector<1x16x16x128xf32> to vector<16x16x128xf32>
    %c1 = arith.constant 1 : index
    %c1_3 = arith.constant 1 : index
    %c0_4 = arith.constant 0 : index
    %2 = vector.load %arg7[%c1, %c1_3, %c0_4] : memref<18x18x128xf32, #tpu.memory_space<vmem>>, vector<16x16x128xf32>
    tpu.vector_store %arg7[%c1, %c1_3, %c0_4], %1 {strides = array<i32>} : memref<18x18x128xf32, #tpu.memory_space<vmem>>, vector<16x16x128xf32>,
    %3 = vector.extract_strided_slice %1 {offsets = [1, 0, 0], sizes = [1, 16, 128], strides = [1, 1, 1]} : vector<16x16x128xf32> to vector<1x16x128xf32>
    %c0_5 = arith.constant 0 : index
    %c1_6 = arith.constant 1 : index
    %c0_7 = arith.constant 0 : index
    %4 = vector.load %arg7[%c0_5, %c1_6, %c0_7] : memref<18x18x128xf32, #tpu.memory_space<vmem>>, vector<1x16x128xf32>
    tpu.vector_store %arg7[%c0_5, %c1_6, %c0_7], %3 {strides = array<i32>} : memref<18x18x128xf32, #tpu.memory_space<vmem>>, vector<1x16x128xf32>,
    %5 = vector.extract_strided_slice %1 {offsets = [14, 0, 0], sizes = [1, 16, 128], strides = [1, 1, 1]} : vector<16x16x128xf32> to vector<1x16x128xf32>
    %c17 = arith.constant 17 : index
    %c1_8 = arith.constant 1 : index
    %c0_9 = arith.constant 0 : index
    %6 = vector.load %arg7[%c17, %c1_8, %c0_9] : memref<18x18x128xf32, #tpu.memory_space<vmem>>, vector<1x16x128xf32>
    tpu.vector_store %arg7[%c17, %c1_8, %c0_9], %5 {strides = array<i32>} : memref<18x18x128xf32, #tpu.memory_space<vmem>>, vector<1x16x128xf32>,
    %c0_10 = arith.constant 0 : index
    %c2 = arith.constant 2 : index
    %c0_11 = arith.constant 0 : index
    %7 = vector.load %arg7[%c0_10, %c2, %c0_11] : memref<18x18x128xf32, #tpu.memory_space<vmem>>, vector<18x1x128xf32>
    %c0_12 = arith.constant 0 : index
    %c0_13 = arith.constant 0 : index
    %c0_14 = arith.constant 0 : index
    %8 = vector.load %arg7[%c0_12, %c0_13, %c0_14] : memref<18x18x128xf32, #tpu.memory_space<vmem>>, vector<18x1x128xf32>
    tpu.vector_store %arg7[%c0_12, %c0_13, %c0_14], %7 {strides = array<i32>} : memref<18x18x128xf32, #tpu.memory_space<vmem>>, vector<18x1x128xf32>,
    %c0_15 = arith.constant 0 : index
    %c15 = arith.constant 15 : index
    %c0_16 = arith.constant 0 : index
    %9 = vector.load %arg7[%c0_15, %c15, %c0_16] : memref<18x18x128xf32, #tpu.memory_space<vmem>>, vector<18x1x128xf32>
    %c0_17 = arith.constant 0 : index
    %c17_18 = arith.constant 17 : index
    %c0_19 = arith.constant 0 : index
    %10 = vector.load %arg7[%c0_17, %c17_18, %c0_19] : memref<18x18x128xf32, #tpu.memory_space<vmem>>, vector<18x1x128xf32>
    tpu.vector_store %arg7[%c0_17, %c17_18, %c0_19], %9 {strides = array<i32>} : memref<18x18x128xf32, #tpu.memory_space<vmem>>, vector<18x1x128xf32>,
    %cst = arith.constant 0.000000e+00 : f32
    %11 = vector.broadcast %cst : f32 to vector<256x128xf32>
    %c0_20 = arith.constant 0 : index
    %c0_21 = arith.constant 0 : index
    %c0_22 = arith.constant 0 : index
    %12 = vector.load %arg7[%c0_20, %c0_21, %c0_22] : memref<18x18x128xf32, #tpu.memory_space<vmem>>, vector<16x16x128xf32>
    %c0_23 = arith.constant 0 : index
    %c1_24 = arith.constant 1 : index
    %c0_25 = arith.constant 0 : index
    %13 = vector.load %arg7[%c0_23, %c1_24, %c0_25] : memref<18x18x128xf32, #tpu.memory_space<vmem>>, vector<16x16x128xf32>
    %c0_26 = arith.constant 0 : index
    %c2_27 = arith.constant 2 : index
    %c0_28 = arith.constant 0 : index
    %14 = vector.load %arg7[%c0_26, %c2_27, %c0_28] : memref<18x18x128xf32, #tpu.memory_space<vmem>>, vector<16x16x128xf32>
    %15 = tpu.concatenate %12, %13, %14 in 2 : vector<16x16x128xf32>, vector<16x16x128xf32>, vector<16x16x128xf32> -> vector<16x16x384xf32>
    %16 = vector.shape_cast %15 : vector<16x16x384xf32> to vector<256x384xf32>
    %c0_29 = arith.constant 0 : index
    %c0_30 = arith.constant 0 : index
    %c0_31 = arith.constant 0 : index
    %17 = vector.load %arg2[%c0_29, %c0_30, %c0_31] : memref<3x384x128xf32, #tpu.memory_space<vmem>>, vector<1x384x128xf32>
    %18 = vector.shape_cast %17 : vector<1x384x128xf32> to vector<384x128xf32>
    %cst_32 = arith.constant dense<0.000000e+00> : vector<256x128xf32>
    %19 = tpu.matmul %16, %18, %cst_32 {dimension_numbers = #tpu.dot_dimension_numbers<[1], [0], [0], [1], [0, 0, 1, 1], [], []>} : vector<256x384xf32>, vector<384x128xf32>, vector<256x128xf32> -> vector<256x128xf32>
    %20 = arith.addf %11, %19 : vector<256x128xf32>
    %c1_33 = arith.constant 1 : index
    %c0_34 = arith.constant 0 : index
    %c0_35 = arith.constant 0 : index
    %21 = vector.load %arg7[%c1_33, %c0_34, %c0_35] : memref<18x18x128xf32, #tpu.memory_space<vmem>>, vector<16x16x128xf32>
    %c1_36 = arith.constant 1 : index
    %c1_37 = arith.constant 1 : index
    %c0_38 = arith.constant 0 : index
    %22 = vector.load %arg7[%c1_36, %c1_37, %c0_38] : memref<18x18x128xf32, #tpu.memory_space<vmem>>, vector<16x16x128xf32>
    %c1_39 = arith.constant 1 : index
    %c2_40 = arith.constant 2 : index
    %c0_41 = arith.constant 0 : index
    %23 = vector.load %arg7[%c1_39, %c2_40, %c0_41] : memref<18x18x128xf32, #tpu.memory_space<vmem>>, vector<16x16x128xf32>
    %24 = tpu.concatenate %21, %22, %23 in 2 : vector<16x16x128xf32>, vector<16x16x128xf32>, vector<16x16x128xf32> -> vector<16x16x384xf32>
    %25 = vector.shape_cast %24 : vector<16x16x384xf32> to vector<256x384xf32>
    %c1_42 = arith.constant 1 : index
    %c0_43 = arith.constant 0 : index
    %c0_44 = arith.constant 0 : index
    %26 = vector.load %arg2[%c1_42, %c0_43, %c0_44] : memref<3x384x128xf32, #tpu.memory_space<vmem>>, vector<1x384x128xf32>
    %27 = vector.shape_cast %26 : vector<1x384x128xf32> to vector<384x128xf32>
    %cst_45 = arith.constant dense<0.000000e+00> : vector<256x128xf32>
    %28 = tpu.matmul %25, %27, %cst_45 {dimension_numbers = #tpu.dot_dimension_numbers<[1], [0], [0], [1], [0, 0, 1, 1], [], []>} : vector<256x384xf32>, vector<384x128xf32>, vector<256x128xf32> -> vector<256x128xf32>
    %29 = arith.addf %20, %28 : vector<256x128xf32>
    %c2_46 = arith.constant 2 : index
    %c0_47 = arith.constant 0 : index
    %c0_48 = arith.constant 0 : index
    %30 = vector.load %arg7[%c2_46, %c0_47, %c0_48] : memref<18x18x128xf32, #tpu.memory_space<vmem>>, vector<16x16x128xf32>
    %c2_49 = arith.constant 2 : index
    %c1_50 = arith.constant 1 : index
    %c0_51 = arith.constant 0 : index
    %31 = vector.load %arg7[%c2_49, %c1_50, %c0_51] : memref<18x18x128xf32, #tpu.memory_space<vmem>>, vector<16x16x128xf32>
    %c2_52 = arith.constant 2 : index
    %c2_53 = arith.constant 2 : index
    %c0_54 = arith.constant 0 : index
    %32 = vector.load %arg7[%c2_52, %c2_53, %c0_54] : memref<18x18x128xf32, #tpu.memory_space<vmem>>, vector<16x16x128xf32>
    %33 = tpu.concatenate %30, %31, %32 in 2 : vector<16x16x128xf32>, vector<16x16x128xf32>, vector<16x16x128xf32> -> vector<16x16x384xf32>
    %34 = vector.shape_cast %33 : vector<16x16x384xf32> to vector<256x384xf32>
    %c2_55 = arith.constant 2 : index
    %c0_56 = arith.constant 0 : index
    %c0_57 = arith.constant 0 : index
    %35 = vector.load %arg2[%c2_55, %c0_56, %c0_57] : memref<3x384x128xf32, #tpu.memory_space<vmem>>, vector<1x384x128xf32>
    %36 = vector.shape_cast %35 : vector<1x384x128xf32> to vector<384x128xf32>
    %cst_58 = arith.constant dense<0.000000e+00> : vector<256x128xf32>
    %37 = tpu.matmul %34, %36, %cst_58 {dimension_numbers = #tpu.dot_dimension_numbers<[1], [0], [0], [1], [0, 0, 1, 1], [], []>} : vector<256x384xf32>, vector<384x128xf32>, vector<256x128xf32> -> vector<256x128xf32>
    %38 = arith.addf %29, %37 : vector<256x128xf32>
    %c0_59 = arith.constant 0 : index
    %c0_60 = arith.constant 0 : index
    %39 = vector.load %arg3[%c0_59, %c0_60] : memref<1x128xf32, #tpu.memory_space<vmem>>, vector<1x128xf32>
    %40 = vector.broadcast %39 : vector<1x128xf32> to vector<256x128xf32>
    %41 = arith.addf %38, %40 : vector<256x128xf32>
    %cst_61 = arith.constant dense<0.000000e+00> : vector<128xf32>
    %42 = vector.multi_reduction <add>, %41, %cst_61 [0] : vector<256x128xf32> to vector<128xf32>
    %43 = vector.shape_cast %42 : vector<128xf32> to vector<1x128xf32>
    %44 = arith.mulf %41, %41 : vector<256x128xf32>
    %cst_62 = arith.constant dense<0.000000e+00> : vector<128xf32>
    %45 = vector.multi_reduction <add>, %44, %cst_62 [0] : vector<256x128xf32> to vector<128xf32>
    %46 = vector.shape_cast %45 : vector<128xf32> to vector<1x128xf32>
    %cst_63 = arith.constant 3.906250e-03 : f32
    %47 = vector.broadcast %cst_63 : f32 to vector<1x128xf32>
    %48 = arith.mulf %43, %47 : vector<1x128xf32>
    %cst_64 = arith.constant 3.906250e-03 : f32
    %49 = vector.broadcast %cst_64 : f32 to vector<1x128xf32>
    %50 = arith.mulf %46, %49 : vector<1x128xf32>
    %51 = arith.mulf %48, %48 : vector<1x128xf32>
    %52 = arith.subf %50, %51 : vector<1x128xf32>
    %53 = vector.broadcast %48 : vector<1x128xf32> to vector<256x128xf32>
    %54 = arith.subf %41, %53 : vector<256x128xf32>
    %cst_65 = arith.constant 9.99999974E-6 : f32
    %55 = vector.broadcast %cst_65 : f32 to vector<1x128xf32>
    %56 = arith.addf %52, %55 : vector<1x128xf32>
    %57 = math.rsqrt %56 : vector<1x128xf32>
    %58 = vector.broadcast %57 : vector<1x128xf32> to vector<256x128xf32>
    %59 = arith.mulf %54, %58 : vector<256x128xf32>
    %cst_66 = arith.constant 0.000000e+00 : f32
    %60 = vector.broadcast %cst_66 : f32 to vector<256x128xf32>
    %61 = arith.maximumf %59, %60 : vector<256x128xf32>
    %62 = vector.shape_cast %61 : vector<256x128xf32> to vector<16x16x128xf32>
    %c1_67 = arith.constant 1 : index
    %c1_68 = arith.constant 1 : index
    %c0_69 = arith.constant 0 : index
    %63 = vector.load %arg7[%c1_67, %c1_68, %c0_69] : memref<18x18x128xf32, #tpu.memory_space<vmem>>, vector<16x16x128xf32>
    tpu.vector_store %arg7[%c1_67, %c1_68, %c0_69], %62 {strides = array<i32>} : memref<18x18x128xf32, #tpu.memory_space<vmem>>, vector<16x16x128xf32>,
    %64 = vector.extract_strided_slice %62 {offsets = [1, 0, 0], sizes = [1, 16, 128], strides = [1, 1, 1]} : vector<16x16x128xf32> to vector<1x16x128xf32>
    %c0_70 = arith.constant 0 : index
    %c1_71 = arith.constant 1 : index
    %c0_72 = arith.constant 0 : index
    %65 = vector.load %arg7[%c0_70, %c1_71, %c0_72] : memref<18x18x128xf32, #tpu.memory_space<vmem>>, vector<1x16x128xf32>
    tpu.vector_store %arg7[%c0_70, %c1_71, %c0_72], %64 {strides = array<i32>} : memref<18x18x128xf32, #tpu.memory_space<vmem>>, vector<1x16x128xf32>,
    %66 = vector.extract_strided_slice %62 {offsets = [14, 0, 0], sizes = [1, 16, 128], strides = [1, 1, 1]} : vector<16x16x128xf32> to vector<1x16x128xf32>
    %c17_73 = arith.constant 17 : index
    %c1_74 = arith.constant 1 : index
    %c0_75 = arith.constant 0 : index
    %67 = vector.load %arg7[%c17_73, %c1_74, %c0_75] : memref<18x18x128xf32, #tpu.memory_space<vmem>>, vector<1x16x128xf32>
    tpu.vector_store %arg7[%c17_73, %c1_74, %c0_75], %66 {strides = array<i32>} : memref<18x18x128xf32, #tpu.memory_space<vmem>>, vector<1x16x128xf32>,
    %c0_76 = arith.constant 0 : index
    %c2_77 = arith.constant 2 : index
    %c0_78 = arith.constant 0 : index
    %68 = vector.load %arg7[%c0_76, %c2_77, %c0_78] : memref<18x18x128xf32, #tpu.memory_space<vmem>>, vector<18x1x128xf32>
    %c0_79 = arith.constant 0 : index
    %c0_80 = arith.constant 0 : index
    %c0_81 = arith.constant 0 : index
    %69 = vector.load %arg7[%c0_79, %c0_80, %c0_81] : memref<18x18x128xf32, #tpu.memory_space<vmem>>, vector<18x1x128xf32>
    tpu.vector_store %arg7[%c0_79, %c0_80, %c0_81], %68 {strides = array<i32>} : memref<18x18x128xf32, #tpu.memory_space<vmem>>, vector<18x1x128xf32>,
    %c0_82 = arith.constant 0 : index
    %c15_83 = arith.constant 15 : index
    %c0_84 = arith.constant 0 : index
    %70 = vector.load %arg7[%c0_82, %c15_83, %c0_84] : memref<18x18x128xf32, #tpu.memory_space<vmem>>, vector<18x1x128xf32>
    %c0_85 = arith.constant 0 : index
    %c17_86 = arith.constant 17 : index
    %c0_87 = arith.constant 0 : index
    %71 = vector.load %arg7[%c0_85, %c17_86, %c0_87] : memref<18x18x128xf32, #tpu.memory_space<vmem>>, vector<18x1x128xf32>
    tpu.vector_store %arg7[%c0_85, %c17_86, %c0_87], %70 {strides = array<i32>} : memref<18x18x128xf32, #tpu.memory_space<vmem>>, vector<18x1x128xf32>,
    %cst_88 = arith.constant 0.000000e+00 : f32
    %72 = vector.broadcast %cst_88 : f32 to vector<256x128xf32>
    %c0_89 = arith.constant 0 : index
    %c0_90 = arith.constant 0 : index
    %c0_91 = arith.constant 0 : index
    %73 = vector.load %arg7[%c0_89, %c0_90, %c0_91] : memref<18x18x128xf32, #tpu.memory_space<vmem>>, vector<16x16x128xf32>
    %c0_92 = arith.constant 0 : index
    %c1_93 = arith.constant 1 : index
    %c0_94 = arith.constant 0 : index
    %74 = vector.load %arg7[%c0_92, %c1_93, %c0_94] : memref<18x18x128xf32, #tpu.memory_space<vmem>>, vector<16x16x128xf32>
    %c0_95 = arith.constant 0 : index
    %c2_96 = arith.constant 2 : index
    %c0_97 = arith.constant 0 : index
    %75 = vector.load %arg7[%c0_95, %c2_96, %c0_97] : memref<18x18x128xf32, #tpu.memory_space<vmem>>, vector<16x16x128xf32>
    %76 = tpu.concatenate %73, %74, %75 in 2 : vector<16x16x128xf32>, vector<16x16x128xf32>, vector<16x16x128xf32> -> vector<16x16x384xf32>
    %77 = vector.shape_cast %76 : vector<16x16x384xf32> to vector<256x384xf32>
    %c0_98 = arith.constant 0 : index
    %c0_99 = arith.constant 0 : index
    %c0_100 = arith.constant 0 : index
    %78 = vector.load %arg4[%c0_98, %c0_99, %c0_100] : memref<3x384x128xf32, #tpu.memory_space<vmem>>, vector<1x384x128xf32>
    %79 = vector.shape_cast %78 : vector<1x384x128xf32> to vector<384x128xf32>
    %cst_101 = arith.constant dense<0.000000e+00> : vector<256x128xf32>
    %80 = tpu.matmul %77, %79, %cst_101 {dimension_numbers = #tpu.dot_dimension_numbers<[1], [0], [0], [1], [0, 0, 1, 1], [], []>} : vector<256x384xf32>, vector<384x128xf32>, vector<256x128xf32> -> vector<256x128xf32>
    %81 = arith.addf %72, %80 : vector<256x128xf32>
    %c1_102 = arith.constant 1 : index
    %c0_103 = arith.constant 0 : index
    %c0_104 = arith.constant 0 : index
    %82 = vector.load %arg7[%c1_102, %c0_103, %c0_104] : memref<18x18x128xf32, #tpu.memory_space<vmem>>, vector<16x16x128xf32>
    %c1_105 = arith.constant 1 : index
    %c1_106 = arith.constant 1 : index
    %c0_107 = arith.constant 0 : index
    %83 = vector.load %arg7[%c1_105, %c1_106, %c0_107] : memref<18x18x128xf32, #tpu.memory_space<vmem>>, vector<16x16x128xf32>
    %c1_108 = arith.constant 1 : index
    %c2_109 = arith.constant 2 : index
    %c0_110 = arith.constant 0 : index
    %84 = vector.load %arg7[%c1_108, %c2_109, %c0_110] : memref<18x18x128xf32, #tpu.memory_space<vmem>>, vector<16x16x128xf32>
    %85 = tpu.concatenate %82, %83, %84 in 2 : vector<16x16x128xf32>, vector<16x16x128xf32>, vector<16x16x128xf32> -> vector<16x16x384xf32>
    %86 = vector.shape_cast %85 : vector<16x16x384xf32> to vector<256x384xf32>
    %c1_111 = arith.constant 1 : index
    %c0_112 = arith.constant 0 : index
    %c0_113 = arith.constant 0 : index
    %87 = vector.load %arg4[%c1_111, %c0_112, %c0_113] : memref<3x384x128xf32, #tpu.memory_space<vmem>>, vector<1x384x128xf32>
    %88 = vector.shape_cast %87 : vector<1x384x128xf32> to vector<384x128xf32>
    %cst_114 = arith.constant dense<0.000000e+00> : vector<256x128xf32>
    %89 = tpu.matmul %86, %88, %cst_114 {dimension_numbers = #tpu.dot_dimension_numbers<[1], [0], [0], [1], [0, 0, 1, 1], [], []>} : vector<256x384xf32>, vector<384x128xf32>, vector<256x128xf32> -> vector<256x128xf32>
    %90 = arith.addf %81, %89 : vector<256x128xf32>
    %c2_115 = arith.constant 2 : index
    %c0_116 = arith.constant 0 : index
    %c0_117 = arith.constant 0 : index
    %91 = vector.load %arg7[%c2_115, %c0_116, %c0_117] : memref<18x18x128xf32, #tpu.memory_space<vmem>>, vector<16x16x128xf32>
    %c2_118 = arith.constant 2 : index
    %c1_119 = arith.constant 1 : index
    %c0_120 = arith.constant 0 : index
    %92 = vector.load %arg7[%c2_118, %c1_119, %c0_120] : memref<18x18x128xf32, #tpu.memory_space<vmem>>, vector<16x16x128xf32>
    %c2_121 = arith.constant 2 : index
    %c2_122 = arith.constant 2 : index
    %c0_123 = arith.constant 0 : index
    %93 = vector.load %arg7[%c2_121, %c2_122, %c0_123] : memref<18x18x128xf32, #tpu.memory_space<vmem>>, vector<16x16x128xf32>
    %94 = tpu.concatenate %91, %92, %93 in 2 : vector<16x16x128xf32>, vector<16x16x128xf32>, vector<16x16x128xf32> -> vector<16x16x384xf32>
    %95 = vector.shape_cast %94 : vector<16x16x384xf32> to vector<256x384xf32>
    %c2_124 = arith.constant 2 : index
    %c0_125 = arith.constant 0 : index
    %c0_126 = arith.constant 0 : index
    %96 = vector.load %arg4[%c2_124, %c0_125, %c0_126] : memref<3x384x128xf32, #tpu.memory_space<vmem>>, vector<1x384x128xf32>
    %97 = vector.shape_cast %96 : vector<1x384x128xf32> to vector<384x128xf32>
    %cst_127 = arith.constant dense<0.000000e+00> : vector<256x128xf32>
    %98 = tpu.matmul %95, %97, %cst_127 {dimension_numbers = #tpu.dot_dimension_numbers<[1], [0], [0], [1], [0, 0, 1, 1], [], []>} : vector<256x384xf32>, vector<384x128xf32>, vector<256x128xf32> -> vector<256x128xf32>
    %99 = arith.addf %90, %98 : vector<256x128xf32>
    %c0_128 = arith.constant 0 : index
    %c0_129 = arith.constant 0 : index
    %100 = vector.load %arg5[%c0_128, %c0_129] : memref<1x128xf32, #tpu.memory_space<vmem>>, vector<1x128xf32>
    %101 = vector.broadcast %100 : vector<1x128xf32> to vector<256x128xf32>
    %102 = arith.addf %99, %101 : vector<256x128xf32>
    %cst_130 = arith.constant dense<0.000000e+00> : vector<128xf32>
    %103 = vector.multi_reduction <add>, %102, %cst_130 [0] : vector<256x128xf32> to vector<128xf32>
    %104 = vector.shape_cast %103 : vector<128xf32> to vector<1x128xf32>
    %105 = arith.mulf %102, %102 : vector<256x128xf32>
    %cst_131 = arith.constant dense<0.000000e+00> : vector<128xf32>
    %106 = vector.multi_reduction <add>, %105, %cst_131 [0] : vector<256x128xf32> to vector<128xf32>
    %107 = vector.shape_cast %106 : vector<128xf32> to vector<1x128xf32>
    %cst_132 = arith.constant 3.906250e-03 : f32
    %108 = vector.broadcast %cst_132 : f32 to vector<1x128xf32>
    %109 = arith.mulf %104, %108 : vector<1x128xf32>
    %cst_133 = arith.constant 3.906250e-03 : f32
    %110 = vector.broadcast %cst_133 : f32 to vector<1x128xf32>
    %111 = arith.mulf %107, %110 : vector<1x128xf32>
    %112 = arith.mulf %109, %109 : vector<1x128xf32>
    %113 = arith.subf %111, %112 : vector<1x128xf32>
    %114 = vector.broadcast %109 : vector<1x128xf32> to vector<256x128xf32>
    %115 = arith.subf %102, %114 : vector<256x128xf32>
    %cst_134 = arith.constant 9.99999974E-6 : f32
    %116 = vector.broadcast %cst_134 : f32 to vector<1x128xf32>
    %117 = arith.addf %113, %116 : vector<1x128xf32>
    %118 = math.rsqrt %117 : vector<1x128xf32>
    %119 = vector.broadcast %118 : vector<1x128xf32> to vector<256x128xf32>
    %120 = arith.mulf %115, %119 : vector<256x128xf32>
    %c0_135 = arith.constant 0 : index
    %c0_136 = arith.constant 0 : index
    %c0_137 = arith.constant 0 : index
    %c0_138 = arith.constant 0 : index
    %121 = vector.load %arg1[%c0_135, %c0_136, %c0_137, %c0_138] : memref<1x16x16x128xf32, #tpu.memory_space<vmem>>, vector<1x16x16x128xf32>
    %122 = vector.shape_cast %121 : vector<1x16x16x128xf32> to vector<16x16x128xf32>
    %123 = vector.shape_cast %120 : vector<256x128xf32> to vector<16x16x128xf32>
    %124 = arith.addf %122, %123 : vector<16x16x128xf32>
    %c0_139 = arith.constant 0 : index
    %c0_140 = arith.constant 0 : index
    %c0_141 = arith.constant 0 : index
    %c0_142 = arith.constant 0 : index
    %125 = vector.load %arg6[%c0_139, %c0_140, %c0_141, %c0_142] : memref<1x16x16x128xf32, #tpu.memory_space<vmem>>, vector<1x16x16x128xf32>
    %126 = vector.shape_cast %125 : vector<1x16x16x128xf32> to vector<16x16x128xf32>
    %127 = vector.shape_cast %124 : vector<16x16x128xf32> to vector<1x16x16x128xf32>
    tpu.vector_store %arg6[%c0_139, %c0_140, %c0_141, %c0_142], %127 {strides = array<i32>} : memref<1x16x16x128xf32, #tpu.memory_space<vmem>>, vector<1x16x16x128xf32>,
    return
  }
  func.func @transform_0(%arg0: i32) -> (i32, i32, i32, i32) {
    %c0_i32 = arith.constant 0 : i32
    %c0_i32_0 = arith.constant 0 : i32
    %c0_i32_1 = arith.constant 0 : i32
    %c0_i32_2 = arith.constant 0 : i32
    return %arg0, %c0_i32, %c0_i32_0, %c0_i32_1 : i32, i32, i32, i32
  }
  func.func @transform_1(%arg0: i32) -> (i32, i32, i32) {
    %c0_i32 = arith.constant 0 : i32
    %c0_i32_0 = arith.constant 0 : i32
    %c0_i32_1 = arith.constant 0 : i32
    %c0_i32_2 = arith.constant 0 : i32
    return %c0_i32, %c0_i32_0, %c0_i32_1 : i32, i32, i32
  }
  func.func @transform_2(%arg0: i32) -> (i32, i32) {
    %c0_i32 = arith.constant 0 : i32
    %c0_i32_0 = arith.constant 0 : i32
    %c0_i32_1 = arith.constant 0 : i32
    return %c0_i32, %c0_i32_0 : i32, i32
  }
  func.func @transform_3(%arg0: i32) -> (i32, i32, i32) {
    %c0_i32 = arith.constant 0 : i32
    %c0_i32_0 = arith.constant 0 : i32
    %c0_i32_1 = arith.constant 0 : i32
    %c0_i32_2 = arith.constant 0 : i32
    return %c0_i32, %c0_i32_0, %c0_i32_1 : i32, i32, i32
  }
  func.func @transform_4(%arg0: i32) -> (i32, i32) {
    %c0_i32 = arith.constant 0 : i32
    %c0_i32_0 = arith.constant 0 : i32
    %c0_i32_1 = arith.constant 0 : i32
    return %c0_i32, %c0_i32_0 : i32, i32
  }
  func.func @transform_5(%arg0: i32) -> (i32, i32, i32, i32) {
    %c0_i32 = arith.constant 0 : i32
    %c0_i32_0 = arith.constant 0 : i32
    %c0_i32_1 = arith.constant 0 : i32
    %c0_i32_2 = arith.constant 0 : i32
    return %arg0, %c0_i32, %c0_i32_0, %c0_i32_1 : i32, i32, i32, i32
  }
}

</mosaic_0001>

<bundles_post_ra>
// kernel: residual_block_nhwc.1
= control target key start
LH: loop header
LB: loop body
LE: loop exit
PB: predicated region body
PF: predicated region fallthrough
CT: control target
= control target key end

     0   :  { %10 = vsyncpa [#allocation4], 0  ;;  %s9090_s0 = inlined_call_operand.hbm [shape: f32[2,16,16,128], index: 0, kind: input, shape index: {}]   ;;  %s9091_s1 = inlined_call_operand.hbm [shape: f32[3,384,128], index: 1, kind: input, shape index: {}]   ;;  %s9092_s2 = inlined_call_operand.vmem [shape: f32[1,128], index: 2, kind: input, shape index: {}]   ;;  %s9093_s3 = inlined_call_operand.hbm [shape: f32[3,384,128], index: 3, kind: input, shape index: {}]   ;;  %s9094_s4 = inlined_call_operand.vmem [shape: f32[1,128], index: 4, kind: input, shape index: {}]   ;;  %s9095_s5 = inlined_call_operand.hbm [shape: f32[2,16,16,128], index: 5, kind: output, shape index: {}]  }
   0x1   :  { %12 = vsyncpa [#allocation4 + $0x1], 0 }
   0x2   :  { %13 = vsyncpa [#allocation7], 0 }
   0x3   :  { %14 = vsyncpa [#allocation5], 0 }
   0x4   :  { %16 = vsyncpa [#allocation5 + $0x1], 0  ;;  %s6364_s18 = smov 0   ;;  %s6366_s19 = smov 0  }
   0x5   :  { %s6368_s20 = smov 0   ;;  %s6370_s21 = smov 0  }
   0x6 LB: > { %s6385_s22 = sadd.s32 4294967295, %s6323_s21   ;;  %s4819_s23 = sadd.s32 4294967294, %s6323_s21   ;;  %s6323_s21 = sphi %s6370_s21, %s9208_s21   ;;  %s6319_s20 = sphi %s6368_s20, %s9207_s20   ;;  %s6315_s19 = sphi %s6366_s19, %s9206_s19   ;;  %s6311_s18 = sphi %s6364_s18, %s9205_s18  }
   0x7   : > { %p42_p0 = scmp.ne.s32.totalorder %s6315_s19, %s6311_s18  ;;  %p9096_p1 = scmp.eq.s32.totalorder %s6385_s22, 0 }
   0x8   : > { %p156_p3 = scmp.eq.s32.totalorder %s4819_s23, 1  ;;  %p4820_p5 = scmp.ge.s32.totalorder %s6323_s21, 1 }
   0x9   : > { %p6394_p4 = por %p9096_p1, %p42_p0  ;;  %p163_p7 = scmp.lt.s32.totalorder %s6323_s21, 3 }
   0xa   : > { %p6399_p6 = por %p156_p3, %p42_p0  ;;  %s6325_s27 = smov [#allocation6]  }
   0xb   : > { %s9136_s24 = scalar_select %p6394_p4, 1, 0 }
   0xc   : > { %s9137_s25 = scalar_select %p6399_p6, 1, 0 }
   0xd   : > { %p6404_p8 = pnand %p4820_p5, %p163_p7  ;;  %s175_s28 = sshll.u32 %s6325_s27, 4  ;;  %s6408_s28 = int_to_ptr.vmem [resolvable:$true] %s175_s28 }
   0xe   : > { %s6326_s30 = smov [#allocation8]   ;;  %s6167_s9 = scalar_lea.hbm %s9091_s1, 18432 }
   0xf   : > { %p6101_p9 = pneg %p6404_p8  ;;  %s191_s6 = sshll.u32 %s6326_s30, 4  ;;  %s6419_s6 = int_to_ptr.vmem [resolvable:$true] %s191_s6 }
  0x10   : > { %p6168_p12 = scmp.ne.s32.totalorder %s9091_s1, %s6167_s9  ;;  %p6174_p5 = scmp.lt.u32.totalorder %s6167_s9, %s9091_s1 }
  0x11   : > { %p6415_p11 = pnand %p6101_p9, %p9096_p1 }
  0x13   : > { %p6169_p13 = pneg %p6415_p11 }
  0x15   : > { %p6170_p0 = pnand %p6169_p13, %p6168_p12 }
  0x17   : > { %p6171_p3 = pneg %p6170_p0 }
  0x19   : > { %p6176_p7 = pnand %p6174_p5, %p6171_p3 }
  0x1b   : > { %6179 = shalt.err (!%p6176_p7)
}
  0x1c   : > { %s6180_s14 = scalar_lea.vmem %s6408_s28, 18432  ;;  %p6188_p2 = scmp.lt.s32.totalorder %s6408_s28, %s6408_s28 }
  0x1d   : > { %p6181_p9 = scmp.ne.s32.totalorder %s6408_s28, %s6180_s14  ;;  %p6189_p12 = scmp.lt.s32.totalorder %s6180_s14, %s6180_s14 }
  0x1f   : > { %p6183_p10 = pnand %p6181_p9, %p6169_p13  ;;  %p6190_p0 = por %p6189_p12, %p6188_p2 }
  0x21   : > { %p6184_p1 = pneg %p6183_p10 }
  0x23   : > { %p6191_p6 = pnand %p6190_p0, %p6184_p1 }
  0x25   : > { %6194 = shalt.err (!%p6191_p6)
}
  0x26   : > { %s6327_s15 = smov 128   ;;  %s6328_s16 = smov 8  }
  0x27   : > { %6104 = dma.hbm_to_vmem [thread:$0]  (!%p6415_p11), %s9091_s1, 18432, %s6408_s28, [#allocation7], %s6327_s15, %s6327_s15, %s6328_s16  }
  0x28   : > { %s6195_s7 = scalar_lea.hbm %s9093_s3, 18432 }
  0x29   : > { %p6196_p1 = scmp.ne.s32.totalorder %s9093_s3, %s6195_s7  ;;  %p6202_p10 = scmp.lt.u32.totalorder %s6195_s7, %s9093_s3 }
  0x2b   : > { %p6198_p2 = pnand %p6196_p1, %p6169_p13 }
  0x2d   : > { %p6199_p6 = pneg %p6198_p2 }
  0x2f   : > { %p6204_p3 = pnand %p6202_p10, %p6199_p6 }
  0x31   : > { %6207 = shalt.err (!%p6204_p3)
}
  0x32   : > { %s6208_s28 = scalar_lea.vmem %s6419_s6, 18432  ;;  %p6216_p12 = scmp.lt.s32.totalorder %s6419_s6, %s6419_s6 }
  0x33   : > { %p6209_p5 = scmp.ne.s32.totalorder %s6419_s6, %s6208_s28  ;;  %p6217_p0 = scmp.lt.s32.totalorder %s6208_s28, %s6208_s28 }
  0x35   : > { %p6211_p7 = pnand %p6209_p5, %p6169_p13  ;;  %p6218_p1 = por %p6217_p0, %p6216_p12 }
  0x37   : > { %p6212_p9 = pneg %p6211_p7 }
  0x39   : > { %p6219_p2 = pnand %p6218_p1, %p6212_p9 }
  0x3b   : > { %6222 = shalt.err (!%p6219_p2)
}
  0x3c   : > { %6107 = dma.hbm_to_vmem [thread:$0]  (!%p6415_p11), %s9093_s3, 18432, %s6419_s6, [#allocation7], %s6327_s15, %s6327_s15, %s6328_s16  }
  0x3d   : > { %s6480_s29 = sadd.s32 1, %s6323_s21   ;;  %s29_s14 = sadd.s32 1, %s6319_s20 }
  0x3e   : > { %s26_s17 = ssub.s32 %s6323_s21, %s6480_s29  ;;  %p36_p13 = scmp.ne.s32.totalorder %s6319_s20, %s6315_s19 }
  0x3f   : > { %p27_p6 = scmp.eq.s32.totalorder %s26_s17, 0  ;;  %p37_p10 = scmp.eq.s32.totalorder %s6323_s21, 0 }
  0x40   : > { %p9140_p3 = scmp.eq.s32.totalorder %s6385_s22, 1  ;;  %p6118_p7 = scmp.lt.s32.totalorder %s6323_s21, 2 }
  0x41   : > { %s6496_s27 = scalar_select %p27_p6, %s6319_s20, %s29_s14  }
  0x42   : > { %p6490_p5 = por %p9140_p3, %p36_p13  ;;  %p38_p9 = por %p37_p10, %p36_p13 }
  0x43   : > { %s208_s30 = sand.u32 1, %s6319_s20   ;;  %s4839_s6 = sshll.u32 %s6323_s21, 12 }
  0x44   : > { %s9141_s23 = scalar_select %p6490_p5, 1, 0 }
  0x45   : > { %s4824_s7 = sshll.u32 %s208_s30, 8  ;;  %s6503_s10 = scalar_lea.hbm %s9090_s0, %s4839_s6 }
  0x46   : > { %s212_s11 = scalar_lea.vmem [#allocation3], %s4824_s7  ;;  %p6507_p11 = pnand %p6118_p7, %p38_p9 }
  0x47   : > { %s219_s28 = sshll.u32 %s212_s11, 4  ;;  %s6511_s13 = scalar_lea.sflag [#allocation4], %s208_s30  ;;  %s6505_s28 = int_to_ptr.vmem [resolvable:$true] %s219_s28 }
  0x48   : > { %s6223_s14 = scalar_lea.hbm %s6503_s10, 4096  ;;  %p6225_p0 = pneg %p6507_p11 }
  0x49   : > { %p6224_p12 = scmp.ne.s32.totalorder %s6503_s10, %s6223_s14  ;;  %s6228_s6 = scalar_lea.hbm %s9090_s0, 8192 }
  0x4a   : > { %p6229_p13 = scmp.lt.u32.totalorder %s6503_s10, %s9090_s0  ;;  %p6230_p6 = scmp.lt.u32.totalorder %s6228_s6, %s6223_s14 }
  0x4b   : > { %p6226_p1 = pnand %p6225_p0, %p6224_p12  ;;  %p6232_p3 = scmp.lt.u32.totalorder %s6223_s14, %s6503_s10 }
  0x4c   : > { %p6231_p10 = por %p6230_p6, %p6229_p13 }
  0x4d   : > { %p6227_p2 = pneg %p6226_p1 }
  0x4e   : > { %p6233_p7 = por %p6232_p3, %p6231_p10 }
  0x50   : > { %p6234_p9 = pnand %p6233_p7, %p6227_p2 }
  0x52   : > { %6237 = shalt.err (!%p6234_p9)
}
  0x53   : > { %s6238_s30 = scalar_lea.vmem %s6505_s28, 4096  ;;  %s6329_s11 = smov [#allocation3]  }
  0x54   : > { %p6239_p12 = scmp.ne.s32.totalorder %s6505_s28, %s6238_s30  ;;  %s6243_s17 = sshll.u32 %s6329_s11, 4  ;;  %s6244_s17 = int_to_ptr.vmem [resolvable:$false] %s6243_s17 }
  0x55   : > { %s6245_s7 = scalar_lea.vmem %s6244_s17, 8192  ;;  %p6246_p4 = scmp.lt.s32.totalorder %s6505_s28, %s6244_s17 }
  0x56   : > { %p6241_p1 = pnand %p6239_p12, %p6225_p0  ;;  %p6247_p13 = scmp.lt.s32.totalorder %s6245_s7, %s6238_s30 }
  0x58   : > { %p6242_p5 = pneg %p6241_p1  ;;  %p6248_p6 = por %p6247_p13, %p6246_p4 }
  0x5a   : > { %p6249_p10 = pnand %p6248_p6, %p6242_p5 }
  0x5c   : > { %6252 = shalt.err (!%p6249_p10)
}
  0x5d   : > { %6111 = dma.hbm_to_vmem [thread:$0]  (!%p6507_p11), %s6503_s10, 4096, %s6505_s28, %s6511_s13, %s6327_s15, %s6327_s15, %s6328_s16  }
  0x5e   : > { %231 = sbr.rel (%p6404_p8) target bundleno = 1355 (0x54b), region = 40 }
  0x65   : > { %s6545_s14 = sand.u32 1, %s6315_s19   ;;  %p9143_p4 = scmp.ne.s32.totalorder %s9136_s24, 0 }
  0x66   : > { %s4828_s6 = sshll.u32 %s6545_s14, 8  ;;  %s234_s8 = scalar_lea.sflag [#allocation4], %s6545_s14 }
  0x67   : > { %s6551_s12 = scalar_lea.vmem [#allocation3], %s4828_s6 }
  0x68   : > { %6298 = dma.done.wait (%p9143_p4), %s234_s8, 4096  }
  0x69   : > { %6300 = vsyncadd (%p9143_p4), %s234_s8, 4294963200  ;;  %p9144_p5 = scmp.eq.s32.totalorder %s6385_s22, 0 }
  0x6b   : > { %6302 = dma.done.wait (%p9144_p5), [#allocation7], 36864   ;;  %p9145_p8 = pmov %p9144_p5 }
  0x6c   : > { %v6330_v0 = vmov 0.0|0.0   ;;  %v655_v1 = vld [vmem:[#allocation6 + $0x180] sm:$0xff]  ;;  %v656_v2 = vld [vmem:[#allocation6 + $0x188] sm:$0xff]  ;;  %v657_v6 = vld [vmem:[#allocation6 + $0x190] sm:$0xff]  ;;  %s8902_s10 = scalar_lea.vmem [#allocation9], %s4828_s6  ;;  %s4840_s28 = sshll.u32 %s6385_s22, 12 }
  0x6d   : > { %6304 = vsyncadd (%p9145_p8), [#allocation7], 4294930432  ;;  %5609 = vmatprep.subr.bf16.mxu0 %v6330_v0  ;;  %v687_v3 = vld [vmem:[#allocation6 + $0x280] sm:$0xff]  ;;  %v5610_v4 = vpack.c.bf16 %v656_v2, %v655_v1  ;;  %v688_v5 = vld [vmem:[#allocation6 + $0x288] sm:$0xff]  ;;  %s4727_s13 = sshll.u32 %s8902_s10, 4  ;;  %s9026_s11 = scalar_lea.hbm %s9095_s5, %s4840_s28  ;;  %s9030_s13 = int_to_ptr.vmem [resolvable:$true] %s4727_s13 }
  0x6e   : > { %v658_v7 = vld [vmem:[#allocation6 + $0x198] sm:$0xff]  ;;  %v5657_v8 = vpack.c.bf16 %v688_v5, %v687_v3  ;;  %v689_v9 = vld [vmem:[#allocation6 + $0x290] sm:$0xff]  ;;  %v691_v13 = vld [vmem:[#allocation6 + $0x2a0] sm:$0xff]  ;;  %s4714_s22 = scalar_lea.sflag [#allocation5], %s6545_s14  ;;  %s6253_s17 = scalar_lea.vmem %s9030_s13, 4096 }
  0x6f   : > { %v690_v10 = vld [vmem:[#allocation6 + $0x298] sm:$0xff]  ;;  %5611 = vmatpush1.bf16.msra.mxu0 %v5610_v4  ;;  %v5613_v11 = vpack.c.bf16 %v658_v7, %v657_v6  ;;  %v692_v14 = vld [vmem:[#allocation6 + $0x2a8] sm:$0xff]  ;;  %v659_v15 = vld [vmem:[#allocation6 + $0x1a0] sm:$0xff]  ;;  %p6254_p11 = scmp.ne.s32.totalorder %s9030_s13, %s6253_s17  ;;  %p9202_p0 = scmp.ne.s32.totalorder %s9141_s23, 0 }
  0x70   : > { %v5661_v12 = vpack.c.bf16 %v690_v10, %v689_v9  ;;  %5658 = vmatprep.subr.bf16.mxu1 %v5657_v8  ;;  %5612 = vmatprep.subr.bf16.mxu0 %v6330_v0  ;;  %v660_v16 = vld [vmem:[#allocation6 + $0x1a8] sm:$0xff]  ;;  %v5665_v17 = vpack.c.bf16 %v692_v14, %v691_v13  ;;  %v693_v19 = vld [vmem:[#allocation6 + $0x2b0] sm:$0xff]  ;;  %v694_v20 = vld [vmem:[#allocation6 + $0x2b8] sm:$0xff]  ;;  %s6331_s7 = smov [#allocation9]  }
  0x71   : > { %5660 = vmatpush3.bf16.msra.mxu1 %v5657_v8  ;;  %v5616_v18 = vpack.c.bf16 %v660_v16, %v659_v15  ;;  %v661_v21 = vld [vmem:[#allocation6 + $0x1b0] sm:$0xff]  ;;  %v662_v22 = vld [vmem:[#allocation6 + $0x1b8] sm:$0xff]  ;;  %v5669_v23 = vpack.c.bf16 %v694_v20, %v693_v19  ;;  %v6565_v24 = vld [vmem:[%s6551_s12] sm:$0xff]  ;;  %p6255_p2 = pnand %p6254_p11, %p9202_p0  ;;  %s6257_s6 = sshll.u32 %s6331_s7, 4  ;;  %s6258_s6 = int_to_ptr.vmem [resolvable:$false] %s6257_s6 }
  0x72   : > { %5662 = vmatprep.subr.bf16.mxu1 %v5661_v12  ;;  %v5619_v25 = vpack.c.bf16 %v662_v22, %v661_v21  ;;  %v695_v26 = vld [vmem:[#allocation6 + $0x2c0] sm:$0xff]  ;;  %v696_v27 = vld [vmem:[#allocation6 + $0x2c8] sm:$0xff]  ;;  %305 = vst [vmem:[#allocation2 + $0x19] sm:$0xff] %v6565_v24  ;;  %767 = vmatprep.mubr.f32.mxu0 %v6565_v24  ;;  %v6575_v31 = vld [vmem:[%s6551_s12 + $0x10] sm:$0xff]  ;;  %s6259_s8 = scalar_lea.vmem %s6258_s6, 8192  ;;  %p6260_p7 = scmp.lt.s32.totalorder %s9030_s13, %s6258_s6 }
  0x73   : > { %5614 = vmatpush1.bf16.msra.mxu0 %v5613_v11  ;;  %v6568_v28 = vld [vmem:[%s6551_s12 + $0x8] sm:$0xff]  ;;  %v663_v29 = vld [vmem:[#allocation6 + $0x1c0] sm:$0xff]  ;;  %v6578_v32 = vld [vmem:[%s6551_s12 + $0x18] sm:$0xff]  ;;  %307 = vst [vmem:[#allocation2 + $0x31] sm:$0xff] %v6575_v31  ;;  %v5673_v33 = vpack.c.bf16 %v696_v27, %v695_v26  ;;  %p6256_p3 = pneg %p6255_p2  ;;  %p6261_p9 = scmp.lt.s32.totalorder %s6259_s8, %s6253_s17 }
  0x74   : > { %5615 = vmatprep.subr.bf16.mxu0 %v6330_v0  ;;  %v664_v30 = vld [vmem:[#allocation6 + $0x1c8] sm:$0xff]  ;;  %306 = vst [vmem:[#allocation2 + $0x21] sm:$0xff] %v6568_v28  ;;  %337 = vst [vmem:[#allocation2 + $0x1] sm:$0xff] %v6575_v31  ;;  %v6585_v34 = vld [vmem:[%s6551_s12 + $0x20] sm:$0xff] }
  0x75   : > { %5664 = vmatpush3.bf16.msra.mxu1 %v5661_v12  ;;  %308 = vst [vmem:[#allocation2 + $0x39] sm:$0xff] %v6578_v32  ;;  %338 = vst [vmem:[#allocation2 + $0x9] sm:$0xff] %v6578_v32  ;;  %v5622_v35 = vpack.c.bf16 %v664_v30, %v663_v29  ;;  %v697_v36 = vld [vmem:[#allocation6 + $0x2d0] sm:$0xff]  ;;  %v698_v37 = vld [vmem:[#allocation6 + $0x2d8] sm:$0xff]  ;;  %p6262_p12 = por %p6261_p9, %p6260_p7 }
  0x76   : > { %5666 = vmatprep.subr.bf16.mxu1 %v5665_v17  ;;  %v6588_v38 = vld [vmem:[%s6551_s12 + $0x28] sm:$0xff]  ;;  %309 = vst [vmem:[#allocation2 + $0x49] sm:$0xff] %v6585_v34  ;;  %v665_v39 = vld [vmem:[#allocation6 + $0x1d0] sm:$0xff]  ;;  %v666_v40 = vld [vmem:[#allocation6 + $0x1d8] sm:$0xff]  ;;  %v5677_v43 = vpack.c.bf16 %v698_v37, %v697_v36 }
  0x77   : > { %5617 = vmatpush1.bf16.msra.mxu0 %v5616_v18  ;;  %310 = vst [vmem:[#allocation2 + $0x51] sm:$0xff] %v6588_v38  ;;  %v6594_v41 = vld [vmem:[%s6551_s12 + $0x30] sm:$0xff]  ;;  %v6597_v42 = vld [vmem:[%s6551_s12 + $0x38] sm:$0xff]  ;;  %v699_v44 = vld [vmem:[#allocation6 + $0x2e0] sm:$0xff]  ;;  %v5625_v47 = vpack.c.bf16 %v666_v40, %v665_v39  ;;  %p6263_p1 = pnand %p6262_p12, %p6256_p3 }
  0x78   : > { %5618 = vmatprep.subr.bf16.mxu0 %v6330_v0  ;;  %311 = vst [vmem:[#allocation2 + $0x61] sm:$0xff] %v6594_v41  ;;  %v700_v45 = vld [vmem:[#allocation6 + $0x2e8] sm:$0xff]  ;;  %312 = vst [vmem:[#allocation2 + $0x69] sm:$0xff] %v6597_v42  ;;  %v6602_v46 = vld [vmem:[%s6551_s12 + $0x40] sm:$0xff] }
  0x79   : > { %5668 = vmatpush3.bf16.msra.mxu1 %v5665_v17  ;;  %v6605_v50 = vld [vmem:[%s6551_s12 + $0x48] sm:$0xff]  ;;  %313 = vst [vmem:[#allocation2 + $0x79] sm:$0xff] %v6602_v46  ;;  %v667_v51 = vld [vmem:[#allocation6 + $0x1e0] sm:$0xff]  ;;  %v5681_v54 = vpack.c.bf16 %v700_v45, %v699_v44  ;;  %v6611_v55 = vld [vmem:[%s6551_s12 + $0x50] sm:$0xff] }
  0x7a   : > { %5670 = vmatprep.subr.bf16.mxu1 %v5669_v23  ;;  %v668_v52 = vld [vmem:[#allocation6 + $0x1e8] sm:$0xff]  ;;  %314 = vst [vmem:[#allocation2 + $0x81] sm:$0xff] %v6605_v50  ;;  %v6614_v56 = vld [vmem:[%s6551_s12 + $0x58] sm:$0xff]  ;;  %v701_v58 = vld [vmem:[#allocation6 + $0x2f0] sm:$0xff] }
  0x7b   : > { %5620 = vmatpush1.bf16.msra.mxu0 %v5619_v25  ;;  %v622_v48 = vld [vmem:[#allocation2 + $0x1a] sm:$0xff]  ;;  %v379_v49 = vld [vmem:[#allocation2 + $0x27] sm:$0x1]  ;;  %v5628_v57 = vpack.c.bf16 %v668_v52, %v667_v51  ;;  %v702_v59 = vld [vmem:[#allocation6 + $0x2f8] sm:$0xff]  ;;  %315 = vst [vmem:[#allocation2 + $0x91] sm:$0xff] %v6611_v55 }
  0x7c   : > { %5621 = vmatprep.subr.bf16.mxu0 %v6330_v0  ;;  %5161 = vmatprep.mubr.f32.mxu1 %v622_v48  ;;  %397 = vst [vmem:[#allocation2 + $0x29] sm:$0x1] %v379_v49  ;;  %v380_v53 = vld [vmem:[#allocation2 + $0x3f] sm:$0x1]  ;;  %316 = vst [vmem:[#allocation2 + $0x99] sm:$0xff] %v6614_v56  ;;  %v669_v61 = vld [vmem:[#allocation6 + $0x1f0] sm:$0xff]  ;;  %v5685_v3 = vpack.c.bf16 %v702_v59, %v701_v58 }
  0x7d   : > { %5672 = vmatpush3.bf16.msra.mxu1 %v5669_v23  ;;  %398 = vst [vmem:[#allocation2 + $0x41] sm:$0x1] %v380_v53  ;;  %v670_v62 = vld [vmem:[#allocation6 + $0x1f8] sm:$0xff]  ;;  %v6620_v63 = vld [vmem:[%s6551_s12 + $0x60] sm:$0xff]  ;;  %v6623_v2 = vld [vmem:[%s6551_s12 + $0x68] sm:$0xff] }
  0x7e   : > { %5674 = vmatprep.subr.bf16.mxu1 %v5673_v33  ;;  %v381_v60 = vld [vmem:[#allocation2 + $0x57] sm:$0x1]  ;;  %317 = vst [vmem:[#allocation2 + $0xa9] sm:$0xff] %v6620_v63  ;;  %318 = vst [vmem:[#allocation2 + $0xb1] sm:$0xff] %v6623_v2  ;;  %v5631_v4 = vpack.c.bf16 %v670_v62, %v669_v61  ;;  %v672_v7 = vld [vmem:[#allocation6 + $0x208] sm:$0xff] }
  0x7f   : > { %5623 = vmatpush1.bf16.msra.mxu0 %v5622_v35  ;;  %399 = vst [vmem:[#allocation2 + $0x59] sm:$0x1] %v381_v60  ;;  %v382_v1 = vld [vmem:[#allocation2 + $0x6f] sm:$0x1]  ;;  %v671_v5 = vld [vmem:[#allocation6 + $0x200] sm:$0xff]  ;;  %v6629_v8 = vld [vmem:[%s6551_s12 + $0x70] sm:$0xff] }
  0x80   : > { %5624 = vmatprep.subr.bf16.mxu0 %v6330_v0  ;;  %400 = vst [vmem:[#allocation2 + $0x71] sm:$0x1] %v382_v1  ;;  %v6632_v9 = vld [vmem:[%s6551_s12 + $0x78] sm:$0xff]  ;;  %319 = vst [vmem:[#allocation2 + $0xc1] sm:$0xff] %v6629_v8  ;;  %v510_v10 = vld [vmem:[#allocation6] sm:$0xff]  ;;  %v5634_v13 = vpack.c.bf16 %v672_v7, %v671_v5 }
  0x81   : > { %5676 = vmatpush3.bf16.msra.mxu1 %v5673_v33  ;;  %v383_v6 = vld [vmem:[#allocation2 + $0x87] sm:$0x1]  ;;  %320 = vst [vmem:[#allocation2 + $0xc9] sm:$0xff] %v6632_v9  ;;  %v511_v11 = vld [vmem:[#allocation6 + $0x8] sm:$0xff]  ;;  %v674_v16 = vld [vmem:[#allocation6 + $0x218] sm:$0xff] }
  0x82   : > { %5678 = vmatprep.subr.bf16.mxu1 %v5677_v43  ;;  %401 = vst [vmem:[#allocation2 + $0x89] sm:$0x1] %v383_v6  ;;  %v673_v14 = vld [vmem:[#allocation6 + $0x210] sm:$0xff]  ;;  %v343_v15 = vld [vmem:[#allocation2 + $0x1a] sm:$0x1]  ;;  %v6638_v17 = vld [vmem:[%s6551_s12 + $0x80] sm:$0xff]  ;;  %v5690_v20 = vpack.c.bf16 %v511_v11, %v510_v10 }
  0x83   : > { %5626 = vmatpush1.bf16.msra.mxu0 %v5625_v47  ;;  %v384_v12 = vld [vmem:[#allocation2 + $0x9f] sm:$0x1]  ;;  %361 = vst [vmem:[#allocation2 + $0x18] sm:$0x1] %v343_v15  ;;  %v623_v19 = vld [vmem:[#allocation2 + $0x22] sm:$0xff]  ;;  %321 = vst [vmem:[#allocation2 + $0xd9] sm:$0xff] %v6638_v17  ;;  %v5637_v27 = vpack.c.bf16 %v674_v16, %v673_v14 }
  0x84   : > { %5627 = vmatprep.subr.bf16.mxu0 %v6330_v0  ;;  %402 = vst [vmem:[#allocation2 + $0xa1] sm:$0x1] %v384_v12  ;;  %v6641_v18 = vld [vmem:[%s6551_s12 + $0x88] sm:$0xff]  ;;  %v512_v21 = vld [vmem:[#allocation6 + $0x10] sm:$0xff]  ;;  %v513_v25 = vld [vmem:[#allocation6 + $0x18] sm:$0xff] }
  0x85   : > { %5680 = vmatpush3.bf16.msra.mxu1 %v5677_v43  ;;  %v385_v22 = vld [vmem:[#allocation2 + $0xb7] sm:$0x1]  ;;  %322 = vst [vmem:[#allocation2 + $0xe1] sm:$0xff] %v6641_v18  ;;  %v6647_v26 = vld [vmem:[%s6551_s12 + $0x90] sm:$0xff]  ;;  %v6650_v30 = vld [vmem:[%s6551_s12 + $0x98] sm:$0xff]  ;;  %v5693_v37 = vpack.c.bf16 %v513_v25, %v512_v21 }
  0x86   : > { %5682 = vmatprep.subr.bf16.mxu1 %v5681_v54  ;;  %v624_v23 = vld [vmem:[#allocation2 + $0x32] sm:$0xff]  ;;  %403 = vst [vmem:[#allocation2 + $0xb9] sm:$0x1] %v385_v22  ;;  %323 = vst [vmem:[#allocation2 + $0xf1] sm:$0xff] %v6647_v26  ;;  %v625_v33 = vld [vmem:[#allocation2 + $0x3a] sm:$0xff] }
  0x87   : > { %5629 = vmatpush1.bf16.msra.mxu0 %v5628_v57  ;;  %v675_v29 = vld [vmem:[#allocation6 + $0x220] sm:$0xff]  ;;  %v676_v35 = vld [vmem:[#allocation6 + $0x228] sm:$0xff]  ;;  %324 = vst [vmem:[#allocation2 + $0xf9] sm:$0xff] %v6650_v30  ;;  %v677_v49 = vld [vmem:[#allocation6 + $0x230] sm:$0xff] }
  0x88   : > { %5630 = vmatprep.subr.bf16.mxu0 %v6330_v0  ;;  %v386_v36 = vld [vmem:[#allocation2 + $0xcf] sm:$0x1]  ;;  %v344_v39 = vld [vmem:[#allocation2 + $0x32] sm:$0x1]  ;;  %v6659_v43 = vld [vmem:[%s6551_s12 + $0xa8] sm:$0xff]  ;;  %v5640_v48 = vpack.c.bf16 %v676_v35, %v675_v29 }
  0x89   : > { %5684 = vmatpush3.bf16.msra.mxu1 %v5681_v54  ;;  %404 = vst [vmem:[#allocation2 + $0xd1] sm:$0x1] %v386_v36  ;;  %v6656_v40 = vld [vmem:[%s6551_s12 + $0xa0] sm:$0xff]  ;;  %v515_v47 = vld [vmem:[#allocation6 + $0x28] sm:$0xff]  ;;  %362 = vst [vmem:[#allocation2 + $0x30] sm:$0x1] %v344_v39 }
  0x8a   : > { %5686 = vmatprep.subr.bf16.mxu1 %v5685_v3  ;;  %v626_v44 = vld [vmem:[#allocation2 + $0x4a] sm:$0xff]  ;;  %325 = vst [vmem:[#allocation2 + $0x109] sm:$0xff] %v6656_v40  ;;  %326 = vst [vmem:[#allocation2 + $0x111] sm:$0xff] %v6659_v43  ;;  %v6665_v52 = vld [vmem:[%s6551_s12 + $0xb0] sm:$0xff] }
  0x8b   : > { %5632 = vmatpush1.bf16.msra.mxu0 %v5631_v4  ;;  %v514_v45 = vld [vmem:[#allocation6 + $0x20] sm:$0xff]  ;;  %v678_v51 = vld [vmem:[#allocation6 + $0x238] sm:$0xff]  ;;  %v516_v53 = vld [vmem:[#allocation6 + $0x30] sm:$0xff]  ;;  %327 = vst [vmem:[#allocation2 + $0x121] sm:$0xff] %v6665_v52 }
  0x8c   : > { %5633 = vmatprep.subr.bf16.mxu0 %v6330_v0  ;;  %v387_v54 = vld [vmem:[#allocation2 + $0xe7] sm:$0x1]  ;;  %v6669_v57 = vld [vmem:[%s6551_s12 + $0xb8] sm:$0xff]  ;;  %v627_v58 = vld [vmem:[#allocation2 + $0x52] sm:$0xff]  ;;  %v5696_v59 = vpack.c.bf16 %v515_v47, %v514_v45  ;;  %v5643_v4 = vpack.c.bf16 %v678_v51, %v677_v49 }
  0x8d   : > { %5688 = vmatpush3.bf16.msra.mxu1 %v5685_v3  ;;  %v628_v60 = vld [vmem:[#allocation2 + $0x62] sm:$0xff]  ;;  %405 = vst [vmem:[#allocation2 + $0xe9] sm:$0x1] %v387_v54  ;;  %328 = vst [vmem:[#allocation2 + $0x129] sm:$0xff] %v6669_v57  ;;  %v345_v62 = vld [vmem:[#allocation2 + $0x4a] sm:$0x1] }
  0x8e   : > { %5689 = vmatprep.subr.bf16.mxu1 %v6330_v0  ;;  %v517_v61 = vld [vmem:[#allocation6 + $0x38] sm:$0xff]  ;;  %v6675_v1 = vld [vmem:[%s6551_s12 + $0xc0] sm:$0xff]  ;;  %v6678_v3 = vld [vmem:[%s6551_s12 + $0xc8] sm:$0xff]  ;;  %363 = vst [vmem:[#allocation2 + $0x48] sm:$0x1] %v345_v62 }
  0x8f   : > { %5635 = vmatpush1.bf16.msra.mxu0 %v5634_v13  ;;  %v388_v5 = vld [vmem:[#allocation2 + $0xff] sm:$0x1]  ;;  %329 = vst [vmem:[#allocation2 + $0x139] sm:$0xff] %v6675_v1  ;;  %330 = vst [vmem:[#allocation2 + $0x141] sm:$0xff] %v6678_v3  ;;  %v679_v6 = vld [vmem:[#allocation6 + $0x240] sm:$0xff]  ;;  %v5699_v12 = vpack.c.bf16 %v517_v61, %v516_v53 }
  0x90   : > { %5162 = vmatmul.mubr.f32.vlgmr.msra.gmra.mrb[0].mxu1 %v623_v19  ;;  %5636 = vmatprep.subr.bf16.mxu0 %v6330_v0  ;;  %v680_v7 = vld [vmem:[#allocation6 + $0x248] sm:$0xff]  ;;  %v518_v10 = vld [vmem:[#allocation6 + $0x40] sm:$0xff]  ;;  %406 = vst [vmem:[#allocation2 + $0x101] sm:$0x1] %v388_v5  ;;  %v6685_v16 = vld [vmem:[%s6551_s12 + $0xd0] sm:$0xff] }
  0x91   : > { %5691 = vmatpush1.bf16.msra.mxu1 %v5690_v20  ;;  %5164 = vmatprep.mubr.f32.mxu1 %v624_v23  ;;  %v629_v11 = vld [vmem:[#allocation2 + $0x6a] sm:$0xff]  ;;  %v519_v13 = vld [vmem:[#allocation6 + $0x48] sm:$0xff]  ;;  %v389_v14 = vld [vmem:[#allocation2 + $0x117] sm:$0x1]  ;;  %v5646_v20 = vpack.c.bf16 %v680_v7, %v679_v6  ;;  %331 = vst [vmem:[#allocation2 + $0x151] sm:$0xff] %v6685_v16 }
  0x92   : > { %5692 = vmatprep.subr.bf16.mxu1 %v6330_v0  ;;  %v630_v15 = vld [vmem:[#allocation2 + $0x7a] sm:$0xff]  ;;  %407 = vst [vmem:[#allocation2 + $0x119] sm:$0x1] %v389_v14  ;;  %v6688_v19 = vld [vmem:[%s6551_s12 + $0xd8] sm:$0xff]  ;;  %v346_v21 = vld [vmem:[#allocation2 + $0x62] sm:$0x1] }
  0x93   : > { %5638 = vmatpush1.bf16.msra.mxu0 %v5637_v27  ;;  %332 = vst [vmem:[#allocation2 + $0x159] sm:$0xff] %v6688_v19  ;;  %v6693_v22 = vld [vmem:[%s6551_s12 + $0xe0] sm:$0xff]  ;;  %v681_v23 = vld [vmem:[#allocation6 + $0x250] sm:$0xff]  ;;  %v682_v25 = vld [vmem:[#allocation6 + $0x258] sm:$0xff] }
  0x94   : > { %5165 = vmatmul.mubr.f32.gmra.mrb[2].mxu1 %v625_v33  ;;  %5639 = vmatprep.subr.bf16.mxu0 %v6330_v0  ;;  %v390_v27 = vld [vmem:[#allocation2 + $0x12f] sm:$0x1]  ;;  %364 = vst [vmem:[#allocation2 + $0x60] sm:$0x1] %v346_v21  ;;  %333 = vst [vmem:[#allocation2 + $0x169] sm:$0xff] %v6693_v22  ;;  %v631_v29 = vld [vmem:[#allocation2 + $0x82] sm:$0xff]  ;;  %v5702_v33 = vpack.c.bf16 %v519_v13, %v518_v10  ;;  %v5649_v45 = vpack.c.bf16 %v682_v25, %v681_v23 }
  0x95   : > { %5694 = vmatpush1.bf16.msra.mxu1 %v5693_v37  ;;  %5167 = vmatprep.mubr.f32.mxu1 %v626_v44  ;;  %340 = vst [vmem:[#allocation2 + $0x199] sm:$0xff] %v6693_v22  ;;  %v520_v35 = vld [vmem:[#allocation6 + $0x50] sm:$0xff]  ;;  %408 = vst [vmem:[#allocation2 + $0x131] sm:$0x1] %v390_v27  ;;  %v6699_v36 = vld [vmem:[%s6551_s12 + $0xe8] sm:$0xff] }
  0x96   : > { %5695 = vmatprep.subr.bf16.mxu1 %v6330_v0  ;;  %v632_v37 = vld [vmem:[#allocation2 + $0x92] sm:$0xff]  ;;  %v521_v39 = vld [vmem:[#allocation6 + $0x58] sm:$0xff]  ;;  %v391_v44 = vld [vmem:[#allocation2 + $0x147] sm:$0x1]  ;;  %334 = vst [vmem:[#allocation2 + $0x171] sm:$0xff] %v6699_v36 }
  0x97   : > { %5641 = vmatpush1.bf16.msra.mxu0 %v5640_v48  ;;  %341 = vst [vmem:[#allocation2 + $0x1a1] sm:$0xff] %v6699_v36  ;;  %409 = vst [vmem:[#allocation2 + $0x149] sm:$0x1] %v391_v44  ;;  %v6705_v47 = vld [vmem:[%s6551_s12 + $0xf0] sm:$0xff]  ;;  %v683_v48 = vld [vmem:[#allocation6 + $0x260] sm:$0xff]  ;;  %v5705_v54 = vpack.c.bf16 %v521_v39, %v520_v35 }
  0x98   : > { %5168 = vmatmul.mubr.f32.gmra.mrb[4].mxu1 %v627_v58  ;;  %5642 = vmatprep.subr.bf16.mxu0 %v6330_v0  ;;  %v684_v49 = vld [vmem:[#allocation6 + $0x268] sm:$0xff]  ;;  %v6709_v51 = vld [vmem:[%s6551_s12 + $0xf8] sm:$0xff]  ;;  %335 = vst [vmem:[#allocation2 + $0x181] sm:$0xff] %v6705_v47  ;;  %v522_v58 = vld [vmem:[#allocation6 + $0x60] sm:$0xff] }
  0x99   : > { %5697 = vmatpush1.bf16.msra.mxu1 %v5696_v59  ;;  %5170 = vmatprep.mubr.f32.mxu1 %v628_v60  ;;  %v633_v53 = vld [vmem:[#allocation2 + $0x9a] sm:$0xff]  ;;  %336 = vst [vmem:[#allocation2 + $0x189] sm:$0xff] %v6709_v51  ;;  %v634_v60 = vld [vmem:[#allocation2 + $0xaa] sm:$0xff]  ;;  %v342_v6 = vld [vmem:[#allocation2 + $0x2] sm:$0x1] }
  0x9a   : > { %5698 = vmatprep.subr.bf16.mxu1 %v6330_v0  ;;  %v523_v59 = vld [vmem:[#allocation6 + $0x68] sm:$0xff]  ;;  %v685_v5 = vld [vmem:[#allocation6 + $0x270] sm:$0xff]  ;;  %v686_v10 = vld [vmem:[#allocation6 + $0x278] sm:$0xff]  ;;  %360 = vst [vmem:[#allocation2] sm:$0x1] %v342_v6 }
  0x9b   : > { %5644 = vmatpush1.bf16.msra.mxu0 %v5643_v4  ;;  %v392_v61 = vld [vmem:[#allocation2 + $0x15f] sm:$0x1]  ;;  %v347_v62 = vld [vmem:[#allocation2 + $0x7a] sm:$0x1]  ;;  %v5652_v4 = vpack.c.bf16 %v684_v49, %v683_v48  ;;  %v635_v7 = vld [vmem:[#allocation2 + $0xb2] sm:$0xff]  ;;  %v5655_v25 = vpack.c.bf16 %v686_v10, %v685_v5 }
  0x9c   : > { %5171 = vmatmul.mubr.f32.gmra.mrb[6].mxu1 %v629_v11  ;;  %5645 = vmatprep.subr.bf16.mxu0 %v6330_v0  ;;  %410 = vst [vmem:[#allocation2 + $0x161] sm:$0x1] %v392_v61  ;;  %365 = vst [vmem:[#allocation2 + $0x78] sm:$0x1] %v347_v62  ;;  %v524_v11 = vld [vmem:[#allocation6 + $0x70] sm:$0xff]  ;;  %v542_v14 = vld [vmem:[#allocation6 + $0x100] sm:$0xff] }
  0x9d   : > { %5700 = vmatpush1.bf16.msra.mxu1 %v5699_v12  ;;  %5173 = vmatprep.mubr.f32.mxu1 %v630_v15  ;;  %v5708_v12 = vpack.c.bf16 %v523_v59, %v522_v58  ;;  %v393_v13 = vld [vmem:[#allocation2 + $0x177] sm:$0x1]  ;;  %v543_v15 = vld [vmem:[#allocation6 + $0x108] sm:$0xff]  ;;  %v525_v21 = vld [vmem:[#allocation6 + $0x78] sm:$0xff] }
  0x9e   : > { %5701 = vmatprep.subr.bf16.mxu1 %v6330_v0  ;;  %411 = vst [vmem:[#allocation2 + $0x179] sm:$0x1] %v393_v13  ;;  %v348_v23 = vld [vmem:[#allocation2 + $0x92] sm:$0x1]  ;;  %v637_v27 = vld [vmem:[#allocation2 + $0xca] sm:$0xff]  ;;  %v5711_v35 = vpack.c.bf16 %v525_v21, %v524_v11  ;;  %v527_v49 = vld [vmem:[#allocation6 + $0x88] sm:$0xff] }
  0x9f   : > { %5647 = vmatpush1.bf16.msra.mxu0 %v5646_v20  ;;  %v636_v20 = vld [vmem:[#allocation2 + $0xc2] sm:$0xff]  ;;  %366 = vst [vmem:[#allocation2 + $0x90] sm:$0x1] %v348_v23  ;;  %v349_v44 = vld [vmem:[#allocation2 + $0xaa] sm:$0x1]  ;;  %v526_v48 = vld [vmem:[#allocation6 + $0x80] sm:$0xff] }
  0xa0   : > { %5174 = vmatmul.mubr.f32.gmra.mrb[8].mxu1 %v631_v29  ;;  %5648 = vmatprep.subr.bf16.mxu0 %v6330_v0  ;;  %v394_v29 = vld [vmem:[#allocation2 + $0x18f] sm:$0x1]  ;;  %367 = vst [vmem:[#allocation2 + $0xa8] sm:$0x1] %v349_v44  ;;  %v639_v58 = vld [vmem:[#allocation2 + $0xe2] sm:$0xff]  ;;  %v546_v61 = vld [vmem:[#allocation6 + $0x120] sm:$0xff] }
  0xa1   : > { %5703 = vmatpush1.bf16.msra.mxu1 %v5702_v33  ;;  %5176 = vmatprep.mubr.f32.mxu1 %v632_v37  ;;  %v5737_v33 = vpack.c.bf16 %v543_v15, %v542_v14  ;;  %412 = vst [vmem:[#allocation2 + $0x191] sm:$0x1] %v394_v29  ;;  %v544_v37 = vld [vmem:[#allocation6 + $0x110] sm:$0xff]  ;;  %v545_v39 = vld [vmem:[#allocation6 + $0x118] sm:$0xff]  ;;  %v547_v62 = vld [vmem:[#allocation6 + $0x128] sm:$0xff] }
  0xa2   : > { %5704 = vmatprep.subr.bf16.mxu1 %v6330_v0  ;;  %v5741_v59 = vpack.c.bf16 %v545_v39, %v544_v37  ;;  %v640_v5 = vld [vmem:[#allocation2 + $0xf2] sm:$0xff]  ;;  %v528_v6 = vld [vmem:[#allocation6 + $0x90] sm:$0xff]  ;;  %v5745_v13 = vpack.c.bf16 %v547_v62, %v546_v61  ;;  %v549_v21 = vld [vmem:[#allocation6 + $0x138] sm:$0xff] }
  0xa3   : > { %5650 = vmatpush1.bf16.msra.mxu0 %v5649_v45  ;;  %v638_v45 = vld [vmem:[#allocation2 + $0xda] sm:$0xff]  ;;  %v352_v11 = vld [vmem:[#allocation2 + $0xf2] sm:$0x1]  ;;  %v642_v23 = vld [vmem:[#allocation2 + $0x10a] sm:$0xff] }
  0xa4   : > { %5177 = vmatmul.mubr.f32.gmra.mrb[10].mxu1 %v633_v53  ;;  %5651 = vmatprep.subr.bf16.mxu0 %v6330_v0  ;;  %v6718_v53 = vld [vmem:[#allocation2 + $0x18] sm:$0xff]  ;;  %v6723_v10 = vld [vmem:[#allocation2 + $0x20] sm:$0xff]  ;;  %370 = vst [vmem:[#allocation2 + $0xf0] sm:$0x1] %v352_v11  ;;  %v6728_v29 = vld [vmem:[#allocation2 + $0x30] sm:$0xff] }
  0xa5   : > { %5706 = vmatpush1.bf16.msra.mxu1 %v5705_v54  ;;  %5179 = vmatprep.mubr.f32.mxu1 %v634_v60  ;;  %v350_v54 = vld [vmem:[#allocation2 + $0xc2] sm:$0x1]  ;;  %v5714_v60 = vpack.c.bf16 %v527_v49, %v526_v48  ;;  %v641_v14 = vld [vmem:[#allocation2 + $0xfa] sm:$0xff]  ;;  %v643_v39 = vld [vmem:[#allocation2 + $0x112] sm:$0xff] }
  0xa6   : > { %5707 = vmatprep.subr.bf16.mxu1 %v6330_v0  ;;  %368 = vst [vmem:[#allocation2 + $0xc0] sm:$0x1] %v350_v54  ;;  %v551_v48 = vld [vmem:[#allocation6 + $0x148] sm:$0xff]  ;;  %v644_v49 = vld [vmem:[#allocation2 + $0x122] sm:$0xff]  ;;  %v645_v61 = vld [vmem:[#allocation2 + $0x12a] sm:$0xff] }
  0xa7   : > { %5653 = vmatpush1.bf16.msra.mxu0 %v5652_v4  ;;  %v351_v4 = vld [vmem:[#allocation2 + $0xda] sm:$0x1]  ;;  %v533_v54 = vld [vmem:[#allocation6 + $0xb8] sm:$0xff] }
  0xa8   : > { %5180 = vmatmul.mubr.f32.gmra.mrb[12].mxu1 %v635_v7  ;;  %5654 = vmatprep.subr.bf16.mxu0 %v6330_v0  ;;  %v529_v7 = vld [vmem:[#allocation6 + $0x98] sm:$0xff]  ;;  %369 = vst [vmem:[#allocation2 + $0xd8] sm:$0x1] %v351_v4  ;;  %v646_v11 = vld [vmem:[#allocation2 + $0x13a] sm:$0xff] }
  0xa9   : > { %5709 = vmatpush1.bf16.msra.mxu1 %v5708_v12  ;;  %5182 = vmatprep.mubr.f32.mxu1 %v636_v20  ;;  %v530_v12 = vld [vmem:[#allocation6 + $0xa0] sm:$0xff]  ;;  %v5717_v15 = vpack.c.bf16 %v529_v7, %v528_v6  ;;  %v548_v20 = vld [vmem:[#allocation6 + $0x130] sm:$0xff]  ;;  %v553_v6 = vld [vmem:[#allocation6 + $0x158] sm:$0xff] }
  0xaa   : > { %5710 = vmatprep.subr.bf16.mxu1 %v6330_v0  ;;  %v5749_v37 = vpack.c.bf16 %v549_v21, %v548_v20  ;;  %v357_v7 = vld [vmem:[#allocation2 + $0x16a] sm:$0x1]  ;;  %v647_v21 = vld [vmem:[#allocation2 + $0x142] sm:$0xff] }
  0xab   : > { %5656 = vmatpush1.bf16.msra.mxu0 %v5655_v25  ;;  %v531_v25 = vld [vmem:[#allocation6 + $0xa8] sm:$0xff]  ;;  %375 = vst [vmem:[#allocation2 + $0x168] sm:$0x1] %v357_v7 }
  0xac   : > { %5183 = vmatmul.mubr.f32.gmra.mrb[14].mxu1 %v637_v27  ;;  %5738 = vmatprep.subr.bf16.mxu0 %v5737_v33  ;;  %v353_v27 = vld [vmem:[#allocation2 + $0x10a] sm:$0x1]  ;;  %v5720_v44 = vpack.c.bf16 %v531_v25, %v530_v12  ;;  %v534_v12 = vld [vmem:[#allocation6 + $0xc0] sm:$0xff] }
  0xad   : > { %5712 = vmatpush1.bf16.msra.mxu1 %v5711_v35  ;;  %5185 = vmatprep.mubr.f32.mxu1 %v638_v45  ;;  %371 = vst [vmem:[#allocation2 + $0x108] sm:$0x1] %v353_v27  ;;  %v532_v35 = vld [vmem:[#allocation6 + $0xb0] sm:$0xff]  ;;  %v550_v45 = vld [vmem:[#allocation6 + $0x140] sm:$0xff]  ;;  %v555_v27 = vld [vmem:[#allocation6 + $0x168] sm:$0xff] }
  0xae   : > { %768 = vmatmul.mubr.f32.vlgmr.msra.gmra.mrb[0].mxu0 %v6718_v53  ;;  %5713 = vmatprep.subr.bf16.mxu1 %v6330_v0  ;;  %v5753_v62 = vpack.c.bf16 %v551_v48, %v550_v45  ;;  %v5723_v4 = vpack.c.bf16 %v533_v54, %v532_v35  ;;  %v554_v25 = vld [vmem:[#allocation6 + $0x160] sm:$0xff]  ;;  %v536_v35 = vld [vmem:[#allocation6 + $0xd0] sm:$0xff] }
  0xaf   : > { %772 = vmatprep.mubr.f32.mxu0 %v6568_v28  ;;  %5740 = vmatpush3.bf16.msra.mxu0 %v5737_v33  ;;  %v354_v33 = vld [vmem:[#allocation2 + $0x122] sm:$0x1]  ;;  %v5761_v45 = vpack.c.bf16 %v555_v27, %v554_v25  ;;  %v649_v48 = vld [vmem:[#allocation2 + $0x15a] sm:$0xff] }
  0xb0   : > { %5186 = vmatmul.mubr.f32.gmra.mrb[16].mxu1 %v639_v58  ;;  %5742 = vmatprep.subr.bf16.mxu0 %v5741_v59  ;;  %372 = vst [vmem:[#allocation2 + $0x120] sm:$0x1] %v354_v33  ;;  %v355_v58 = vld [vmem:[#allocation2 + $0x13a] sm:$0x1]  ;;  %v648_v33 = vld [vmem:[#allocation2 + $0x152] sm:$0xff]  ;;  %v556_v54 = vld [vmem:[#allocation6 + $0x170] sm:$0xff] }
  0xb1   : > { %5715 = vmatpush1.bf16.msra.mxu1 %v5714_v60  ;;  %5188 = vmatprep.mubr.f32.mxu1 %v640_v5  ;;  %373 = vst [vmem:[#allocation2 + $0x138] sm:$0x1] %v355_v58  ;;  %v356_v60 = vld [vmem:[#allocation2 + $0x152] sm:$0x1]  ;;  %v552_v5 = vld [vmem:[#allocation6 + $0x150] sm:$0xff]  ;;  %v557_v58 = vld [vmem:[#allocation6 + $0x178] sm:$0xff] }
  0xb2   : > { %773 = vmatmul.mubr.f32.gmra.mrb[2].mxu0 %v6723_v10  ;;  %5716 = vmatprep.subr.bf16.mxu1 %v6330_v0  ;;  %374 = vst [vmem:[#allocation2 + $0x150] sm:$0x1] %v356_v60  ;;  %v5757_v20 = vpack.c.bf16 %v553_v6, %v552_v5  ;;  %v650_v60 = vld [vmem:[#allocation2 + $0x16a] sm:$0xff]  ;;  %v5765_v5 = vpack.c.bf16 %v557_v58, %v556_v54  ;;  %v651_v6 = vld [vmem:[#allocation2 + $0x172] sm:$0xff]  ;;  %v6766_v54 = vld [vmem:[#allocation2 + $0x80] sm:$0xff] }
  0xb3   : > { %777 = vmatprep.mubr.f32.mxu0 %v6575_v31  ;;  %5744 = vmatpush3.bf16.msra.mxu0 %v5741_v59  ;;  %v6733_v59 = vld [vmem:[#allocation2 + $0x38] sm:$0xff]  ;;  %v415_v58 = vld [vmem:[#allocation2 + $0x8] sm:$0xff] }
  0xb4   : > { %5189 = vmatmul.mubr.f32.gmra.mrb[18].mxu1 %v641_v14  ;;  %5746 = vmatprep.subr.bf16.mxu0 %v5745_v13  ;;  %v6738_v14 = vld [vmem:[#allocation2 + $0x48] sm:$0xff]  ;;  %v1702_v25 = vld [vmem:[#allocation6 + $0x308] sm:$0xff] }
  0xb5   : > { %5718 = vmatpush1.bf16.msra.mxu1 %v5717_v15  ;;  %5191 = vmatprep.mubr.f32.mxu1 %v642_v23  ;;  %v358_v15 = vld [vmem:[#allocation2 + $0x182] sm:$0x1]  ;;  %v6758_v27 = vld [vmem:[#allocation2 + $0x78] sm:$0xff] }
  0xb6   : > { %778 = vmatmul.mubr.f32.gmra.mrb[4].mxu0 %v6728_v29  ;;  %5719 = vmatprep.subr.bf16.mxu1 %v6330_v0  ;;  %376 = vst [vmem:[#allocation2 + $0x180] sm:$0x1] %v358_v15  ;;  %v6753_v15 = vld [vmem:[#allocation2 + $0x68] sm:$0xff] }
  0xb7   : > { %782 = vmatprep.mubr.f32.mxu0 %v6578_v32  ;;  %5748 = vmatpush3.bf16.msra.mxu0 %v5745_v13  ;;  %v535_v13 = vld [vmem:[#allocation6 + $0xc8] sm:$0xff] }
  0xb8   : > { %5192 = vmatmul.mubr.f32.gmra.mrb[20].mxu1 %v643_v39  ;;  %5750 = vmatprep.subr.bf16.mxu0 %v5749_v37  ;;  %v5726_v23 = vpack.c.bf16 %v535_v13, %v534_v12  ;;  %v537_v39 = vld [vmem:[#allocation6 + $0xd8] sm:$0xff]  ;;  %v540_v12 = vld [vmem:[#allocation6 + $0xf0] sm:$0xff] }
  0xb9   : > { %5721 = vmatpush1.bf16.msra.mxu1 %v5720_v44  ;;  %5194 = vmatprep.mubr.f32.mxu1 %v644_v49  ;;  %v378_v44 = vld [vmem:[#allocation2 + $0xf] sm:$0x1]  ;;  %v5729_v49 = vpack.c.bf16 %v537_v39, %v536_v35  ;;  %v1734_v35 = vld [vmem:[#allocation6 + $0x408] sm:$0xff]  ;;  %v414_v39 = vld [vmem:[#allocation2] sm:$0xff] }
  0xba   : > { %783 = vmatmul.mubr.f32.gmra.mrb[6].mxu0 %v6733_v59  ;;  %5722 = vmatprep.subr.bf16.mxu1 %v6330_v0  ;;  %396 = vst [vmem:[#allocation2 + $0x11] sm:$0x1] %v378_v44  ;;  %v541_v13 = vld [vmem:[#allocation6 + $0xf8] sm:$0xff] }
  0xbb   : > { %787 = vmatprep.mubr.f32.mxu0 %v6585_v34  ;;  %5752 = vmatpush3.bf16.msra.mxu0 %v5749_v37  ;;  %v6743_v37 = vld [vmem:[#allocation2 + $0x50] sm:$0xff] }
  0xbc   : > { %5195 = vmatmul.mubr.f32.gmra.mrb[22].mxu1 %v645_v61  ;;  %5754 = vmatprep.subr.bf16.mxu0 %v5753_v62  ;;  %v538_v61 = vld [vmem:[#allocation6 + $0xe0] sm:$0xff] }
  0xbd   : > { %5724 = vmatpush1.bf16.msra.mxu1 %v5723_v4  ;;  %5197 = vmatprep.mubr.f32.mxu1 %v646_v11  ;;  %v539_v4 = vld [vmem:[#allocation6 + $0xe8] sm:$0xff]  ;;  %v652_v11 = vld [vmem:[#allocation2 + $0x182] sm:$0xff] }
  0xbe   : > { %788 = vmatmul.mubr.f32.gmra.mrb[8].mxu0 %v6738_v14  ;;  %5725 = vmatprep.subr.bf16.mxu1 %v6330_v0  ;;  %v5732_v7 = vpack.c.bf16 %v539_v4, %v538_v61  ;;  %v1705_v61 = vld [vmem:[#allocation6 + $0x320] sm:$0xff]  ;;  %v1706_v4 = vld [vmem:[#allocation6 + $0x328] sm:$0xff] }
  0xbf   : > { %792 = vmatprep.mubr.f32.mxu0 %v6588_v38  ;;  %5756 = vmatpush3.bf16.msra.mxu0 %v5753_v62  ;;  %v6748_v62 = vld [vmem:[#allocation2 + $0x60] sm:$0xff] }
  0xc0   : > { %5198 = vmatmul.mubr.f32.gmra.mrb[24].mxu1 %v647_v21  ;;  %5758 = vmatprep.subr.bf16.mxu0 %v5757_v20  ;;  %v5735_v21 = vpack.c.bf16 %v541_v13, %v540_v12  ;;  %v6779_v12 = vld [vmem:[#allocation2 + $0x98] sm:$0xff] }
  0xc1   : > { %5727 = vmatpush1.bf16.msra.mxu1 %v5726_v23  ;;  %5200 = vmatprep.mubr.f32.mxu1 %v648_v33  ;;  %v1701_v23 = vld [vmem:[#allocation6 + $0x300] sm:$0xff] }
  0xc2   : > { %793 = vmatmul.mubr.f32.gmra.mrb[10].mxu0 %v6743_v37  ;;  %5728 = vmatprep.subr.bf16.mxu1 %v6330_v0  ;;  %v1733_v33 = vld [vmem:[#allocation6 + $0x400] sm:$0xff]  ;;  %v5770_v44 = vpack.c.bf16 %v1702_v25, %v1701_v23  ;;  %v1712_v23 = vld [vmem:[#allocation6 + $0x358] sm:$0xff] }
  0xc3   : > { %797 = vmatprep.mubr.f32.mxu0 %v6594_v41  ;;  %5760 = vmatpush3.bf16.msra.mxu0 %v5757_v20  ;;  %v653_v20 = vld [vmem:[#allocation2 + $0x18a] sm:$0xff] }
  0xc4   : > { %5201 = vmatmul.mubr.f32.gmra.mrb[26].mxu1 %v649_v48  ;;  %5762 = vmatprep.subr.bf16.mxu0 %v5761_v45  ;;  %v1703_v48 = vld [vmem:[#allocation6 + $0x310] sm:$0xff]  ;;  %v6793_v25 = vld [vmem:[#allocation2 + $0xb0] sm:$0xff] }
  0xc5   : > { %5730 = vmatpush1.bf16.msra.mxu1 %v5729_v49  ;;  %5203 = vmatprep.mubr.f32.mxu1 %v650_v60  ;;  %v1704_v49 = vld [vmem:[#allocation6 + $0x318] sm:$0xff] }
  0xc6   : > { %798 = vmatmul.mubr.f32.gmra.mrb[12].mxu0 %v6748_v62  ;;  %5731 = vmatprep.subr.bf16.mxu1 %v6330_v0  ;;  %v5773_v60 = vpack.c.bf16 %v1704_v49, %v1703_v48  ;;  %v1718_v48 = vld [vmem:[#allocation6 + $0x388] sm:$0xff] }
  0xc7   : > { %802 = vmatprep.mubr.f32.mxu0 %v6597_v42  ;;  %5764 = vmatpush3.bf16.msra.mxu0 %v5761_v45  ;;  %v6761_v45 = vpack.c.bf16 %v1734_v35, %v1733_v33  ;;  %v1714_v33 = vld [vmem:[#allocation6 + $0x368] sm:$0xff]  ;;  %v6800_v35 = vld [vmem:[#allocation2 + $0xc0] sm:$0xff] }
  0xc8   : > { %5204 = vmatmul.mubr.f32.gmra.mrb[28].mxu1 %v651_v6  ;;  %5766 = vmatprep.subr.bf16.mxu0 %v5765_v5  ;;  %v5776_v6 = vpack.c.bf16 %v1706_v4, %v1705_v61  ;;  %v6814_v49 = vld [vmem:[#allocation2 + $0xd8] sm:$0xff]  ;;  %v6828_v4 = vld [vmem:[#allocation2 + $0xf0] sm:$0xff] }
  0xc9   : > { %5733 = vmatpush1.bf16.msra.mxu1 %v5732_v7  ;;  %5206 = vmatprep.mubr.f32.mxu1 %v652_v11  ;;  %v1707_v7 = vld [vmem:[#allocation6 + $0x330] sm:$0xff]  ;;  %v1708_v11 = vld [vmem:[#allocation6 + $0x338] sm:$0xff]  ;;  %v1722_v61 = vld [vmem:[#allocation6 + $0x3a8] sm:$0xff] }
  0xca   : > { %803 = vmatmul.mubr.f32.gmra.mrb[14].mxu0 %v6753_v15  ;;  %5734 = vmatprep.subr.bf16.mxu1 %v6330_v0  ;;  %v5779_v13 = vpack.c.bf16 %v1708_v11, %v1707_v7  ;;  %v1724_v7 = vld [vmem:[#allocation6 + $0x3b8] sm:$0xff]  ;;  %v6835_v11 = vld [vmem:[#allocation2 + $0xf8] sm:$0xff] }
  0xcb   : > { %807 = vmatprep.mubr.f32.mxu0 %v6602_v46  ;;  %5768 = vmatpush3.bf16.msra.mxu0 %v5765_v5  ;;  %v6773_v5 = vld [vmem:[#allocation2 + $0x90] sm:$0xff] }
  0xcc   : > { %5207 = vmatmul.mubr.f32.gmra.mrb[30].mxu1 %v653_v20  ;;  %5818 = vmatprep.subr.bf16.mxu0 %v6761_v45  ;;  %v1710_v20 = vld [vmem:[#allocation6 + $0x348] sm:$0xff] }
  0xcd   : > { %5736 = vmatpush1.bf16.msra.mxu1 %v5735_v21  ;;  %1217 = vmatprep.mubr.f32.mxu1 %v6575_v31  ;;  %v6786_v21 = vld [vmem:[#allocation2 + $0xa8] sm:$0xff] }
  0xce   : > { %808 = vmatmul.mubr.f32.gmra.mrb[16].mxu0 %v6758_v27  ;;  %5769 = vmatprep.subr.bf16.mxu1 %v6330_v0 }
  0xcf   : > { %812 = vmatprep.mubr.f32.mxu0 %v6605_v50 }
  0xd0   : > { %1218 = vmatmul.mubr.f32.vlgmr.msra.gmra.mrb[32].mxu1 %v414_v39  ;;  %v1716_v39 = vld [vmem:[#allocation6 + $0x378] sm:$0xff] }
  0xd1   : > { %5771 = vmatpush1.bf16.msra.mxu1 %v5770_v44  ;;  %1222 = vmatprep.mubr.f32.mxu1 %v6578_v32  ;;  %v6807_v44 = vld [vmem:[#allocation2 + $0xc8] sm:$0xff] }
  0xd2   : > { %813 = vmatmul.mubr.f32.gmra.mrb[18].mxu0 %v6766_v54  ;;  %5772 = vmatprep.subr.bf16.mxu1 %v6330_v0 }
  0xd3   : > { %817 = vmatprep.mubr.f32.mxu0 %v6611_v55 }
  0xd4   : > { %1223 = vmatmul.mubr.f32.gmra.mrb[34].mxu1 %v415_v58  ;;  %v6821_v58 = vld [vmem:[#allocation2 + $0xe0] sm:$0xff] }
  0xd5   : > { %1227 = vmatprep.mubr.f32.mxu1 %v6565_v24  ;;  %5774 = vmatpush1.bf16.msra.mxu1 %v5773_v60  ;;  %v1709_v24 = vld [vmem:[#allocation6 + $0x340] sm:$0xff] }
  0xd6   : > { %818 = vmatmul.mubr.f32.gmra.mrb[20].mxu0 %v6773_v5  ;;  %5775 = vmatprep.subr.bf16.mxu1 %v6330_v0 }
  0xd7   : > { %822 = vmatprep.mubr.f32.mxu0 %v6614_v56 }
  0xd8   : > { %1228 = vmatmul.mubr.f32.gmra.mrb[36].mxu1 %v6718_v53  ;;  %v5782_v53 = vpack.c.bf16 %v1710_v20, %v1709_v24  ;;  %v1726_v24 = vld [vmem:[#allocation6 + $0x3c8] sm:$0xff]  ;;  %v6842_v20 = vld [vmem:[#allocation2 + $0x108] sm:$0xff] }
  0xd9   : > { %1232 = vmatprep.mubr.f32.mxu1 %v6568_v28  ;;  %5777 = vmatpush1.bf16.msra.mxu1 %v5776_v6  ;;  %v1711_v28 = vld [vmem:[#allocation6 + $0x350] sm:$0xff] }
  0xda   : > { %823 = vmatmul.mubr.f32.gmra.mrb[22].mxu0 %v6779_v12  ;;  %5778 = vmatprep.subr.bf16.mxu1 %v6330_v0 }
  0xdb   : > { %827 = vmatprep.mubr.f32.mxu0 %v6620_v63 }
  0xdc   : > { %1233 = vmatmul.mubr.f32.gmra.mrb[38].mxu1 %v6723_v10  ;;  %v5785_v10 = vpack.c.bf16 %v1712_v23, %v1711_v28  ;;  %v1728_v28 = vld [vmem:[#allocation6 + $0x3d8] sm:$0xff]  ;;  %v6849_v23 = vld [vmem:[#allocation2 + $0x110] sm:$0xff] }
  0xdd   : > { %1237 = vmatprep.mubr.f32.mxu1 %v6575_v31  ;;  %5780 = vmatpush1.bf16.msra.mxu1 %v5779_v13  ;;  %v1713_v31 = vld [vmem:[#allocation6 + $0x360] sm:$0xff] }
  0xde   : > { %828 = vmatmul.mubr.f32.gmra.mrb[24].mxu0 %v6786_v21  ;;  %5781 = vmatprep.subr.bf16.mxu1 %v6330_v0 }
  0xdf   : > { %832 = vmatprep.mubr.f32.mxu0 %v6623_v2 }
  0xe0   : > { %1238 = vmatmul.mubr.f32.gmra.mrb[40].mxu1 %v6728_v29  ;;  %v5788_v29 = vpack.c.bf16 %v1714_v33, %v1713_v31  ;;  %v1730_v31 = vld [vmem:[#allocation6 + $0x3e8] sm:$0xff]  ;;  %v6856_v33 = vld [vmem:[#allocation2 + $0x120] sm:$0xff] }
  0xe1   : > { %1242 = vmatprep.mubr.f32.mxu1 %v6578_v32  ;;  %5783 = vmatpush1.bf16.msra.mxu1 %v5782_v53  ;;  %v1715_v32 = vld [vmem:[#allocation6 + $0x370] sm:$0xff] }
  0xe2   : > { %833 = vmatmul.mubr.f32.gmra.mrb[26].mxu0 %v6793_v25  ;;  %5784 = vmatprep.subr.bf16.mxu1 %v6330_v0 }
  0xe3   : > { %837 = vmatprep.mubr.f32.mxu0 %v6629_v8 }
  0xe4   : > { %1243 = vmatmul.mubr.f32.gmra.mrb[42].mxu1 %v6733_v59  ;;  %v5791_v59 = vpack.c.bf16 %v1716_v39, %v1715_v32  ;;  %v1732_v32 = vld [vmem:[#allocation6 + $0x3f8] sm:$0xff] }
  0xe5   : > { %1247 = vmatprep.mubr.f32.mxu1 %v6585_v34  ;;  %5786 = vmatpush1.bf16.msra.mxu1 %v5785_v10  ;;  %v1717_v34 = vld [vmem:[#allocation6 + $0x380] sm:$0xff]  ;;  %v6863_v39 = vld [vmem:[#allocation2 + $0x128] sm:$0xff] }
  0xe6   : > { %838 = vmatmul.mubr.f32.gmra.mrb[28].mxu0 %v6800_v35  ;;  %5787 = vmatprep.subr.bf16.mxu1 %v6330_v0 }
  0xe7   : > { %842 = vmatprep.mubr.f32.mxu0 %v6632_v9  ;;  %v5794_v9 = vpack.c.bf16 %v1718_v48, %v1717_v34  ;;  %v6165_v34 = vld [vmem:[#allocation2 + $0xc9] sm:$0xff] }
  0xe8   : > { %1248 = vmatmul.mubr.f32.gmra.mrb[44].mxu1 %v6738_v14  ;;  %v1720_v14 = vld [vmem:[#allocation6 + $0x398] sm:$0xff]  ;;  %v6881_v48 = vld [vmem:[#allocation2 + $0x150] sm:$0xff] }
  0xe9   : > { %1252 = vmatprep.mubr.f32.mxu1 %v6588_v38  ;;  %5789 = vmatpush1.bf16.msra.mxu1 %v5788_v29  ;;  %v1719_v38 = vld [vmem:[#allocation6 + $0x390] sm:$0xff] }
  0xea   : > { %843 = vmatmul.mubr.f32.gmra.mrb[30].mxu0 %v6807_v44  ;;  %5790 = vmatprep.subr.bf16.mxu1 %v6330_v0  ;;  %v5797_v60 = vpack.c.bf16 %v1720_v14, %v1719_v38  ;;  %v1736_v38 = vld [vmem:[#allocation6 + $0x418] sm:$0xff] }
  0xeb   : > { %847 = vmatprep.mubr.f32.mxu0 %v6638_v17 }
  0xec   : > { %1253 = vmatmul.mubr.f32.gmra.mrb[46].mxu1 %v6743_v37 }
  0xed   : > { %1257 = vmatprep.mubr.f32.mxu1 %v6594_v41  ;;  %5792 = vmatpush1.bf16.msra.mxu1 %v5791_v59  ;;  %v1721_v41 = vld [vmem:[#allocation6 + $0x3a0] sm:$0xff] }
  0xee   : > { %848 = vmatmul.mubr.f32.gmra.mrb[32].mxu0 %v6814_v49  ;;  %5793 = vmatprep.subr.bf16.mxu1 %v6330_v0  ;;  %v5800_v6 = vpack.c.bf16 %v1722_v61, %v1721_v41  ;;  %v481_v41 = vld [vmem:[#allocation2 + $0x22] sm:$0xff] }
  0xef   : > { %852 = vmatprep.mubr.f32.mxu0 %v6641_v18 }
  0xf0   : > { %1258 = vmatmul.mubr.f32.gmra.mrb[48].mxu1 %v6748_v62 }
  0xf1   : > { %1262 = vmatprep.mubr.f32.mxu1 %v6597_v42  ;;  %5795 = vmatpush1.bf16.msra.mxu1 %v5794_v9  ;;  %v1723_v42 = vld [vmem:[#allocation6 + $0x3b0] sm:$0xff]  ;;  %v6893_v9 = vld [vmem:[#allocation2 + $0x168] sm:$0xff] }
  0xf2   : > { %853 = vmatmul.mubr.f32.gmra.mrb[34].mxu0 %v6821_v58  ;;  %5796 = vmatprep.subr.bf16.mxu1 %v6330_v0  ;;  %v5803_v13 = vpack.c.bf16 %v1724_v7, %v1723_v42  ;;  %v1740_v42 = vld [vmem:[#allocation6 + $0x438] sm:$0xff] }
  0xf3   : > { %857 = vmatprep.mubr.f32.mxu0 %v6647_v26  ;;  %v6927_v7 = vld [vmem:[#allocation2 + $0x4a] sm:$0xff] }
  0xf4   : > { %1263 = vmatmul.mubr.f32.gmra.mrb[50].mxu1 %v6753_v15 }
  0xf5   : > { %1267 = vmatprep.mubr.f32.mxu1 %v6602_v46  ;;  %5798 = vmatpush1.bf16.msra.mxu1 %v5797_v60  ;;  %v1725_v46 = vld [vmem:[#allocation6 + $0x3c0] sm:$0xff]  ;;  %v1738_v60 = vld [vmem:[#allocation6 + $0x428] sm:$0xff] }
  0xf6   : > { %858 = vmatmul.mubr.f32.gmra.mrb[36].mxu0 %v6828_v4  ;;  %5799 = vmatprep.subr.bf16.mxu1 %v6330_v0  ;;  %v5806_v53 = vpack.c.bf16 %v1726_v24, %v1725_v46  ;;  %v1742_v46 = vld [vmem:[#allocation6 + $0x448] sm:$0xff]  ;;  %v6935_v24 = vld [vmem:[#allocation2 + $0x62] sm:$0xff] }
  0xf7   : > { %862 = vmatprep.mubr.f32.mxu0 %v6650_v30 }
  0xf8   : > { %1268 = vmatmul.mubr.f32.gmra.mrb[52].mxu1 %v6758_v27 }
  0xf9   : > { %1272 = vmatprep.mubr.f32.mxu1 %v6605_v50  ;;  %5801 = vmatpush1.bf16.msra.mxu1 %v5800_v6  ;;  %v1727_v50 = vld [vmem:[#allocation6 + $0x3d0] sm:$0xff] }
  0xfa   : > { %863 = vmatmul.mubr.f32.gmra.mrb[38].mxu0 %v6835_v11  ;;  %5802 = vmatprep.subr.bf16.mxu1 %v6330_v0  ;;  %v5809_v10 = vpack.c.bf16 %v1728_v28, %v1727_v50  ;;  %v1739_v6 = vld [vmem:[#allocation6 + $0x430] sm:$0xff]  ;;  %v1744_v28 = vld [vmem:[#allocation6 + $0x458] sm:$0xff] }
  0xfb   : > { %867 = vmatprep.mubr.f32.mxu0 %v6656_v40  ;;  %v1743_v50 = vld [vmem:[#allocation6 + $0x450] sm:$0xff] }
  0xfc   : > { %1273 = vmatmul.mubr.f32.gmra.mrb[54].mxu1 %v6766_v54 }
  0xfd   : > { %1277 = vmatprep.mubr.f32.mxu1 %v6611_v55  ;;  %5804 = vmatpush1.bf16.msra.mxu1 %v5803_v13  ;;  %v1729_v55 = vld [vmem:[#allocation6 + $0x3e0] sm:$0xff] }
  0xfe   : > { %868 = vmatmul.mubr.f32.gmra.mrb[40].mxu0 %v6842_v20  ;;  %5805 = vmatprep.subr.bf16.mxu1 %v6330_v0  ;;  %v5812_v29 = vpack.c.bf16 %v1730_v31, %v1729_v55  ;;  %v1741_v13 = vld [vmem:[#allocation6 + $0x440] sm:$0xff]  ;;  %v5837_v55 = vpack.c.bf16 %v1744_v28, %v1743_v50  ;;  %v1606_v50 = vld [vmem:[#allocation2 + $0x48] sm:$0xff] }
  0xff   : > { %872 = vmatprep.mubr.f32.mxu0 %v6659_v43  ;;  %v1745_v31 = vld [vmem:[#allocation6 + $0x460] sm:$0xff] }
 0x100   : > { %1278 = vmatmul.mubr.f32.gmra.mrb[56].mxu1 %v6773_v5  ;;  %v1639_v28 = vld [vmem:[#allocation2 + $0x51] sm:$0xff] }
 0x101   : > { %1282 = vmatprep.mubr.f32.mxu1 %v6614_v56  ;;  %5807 = vmatpush1.bf16.msra.mxu1 %v5806_v53  ;;  %v1731_v56 = vld [vmem:[#allocation6 + $0x3f0] sm:$0xff]  ;;  %v5833_v53 = vpack.c.bf16 %v1742_v46, %v1741_v13  ;;  %v1638_v13 = vld [vmem:[#allocation2 + $0x49] sm:$0xff] }
 0x102   : > { %873 = vmatmul.mubr.f32.gmra.mrb[42].mxu0 %v6849_v23  ;;  %5808 = vmatprep.subr.bf16.mxu1 %v6330_v0  ;;  %v5815_v59 = vpack.c.bf16 %v1732_v32, %v1731_v56  ;;  %v6948_v56 = vld [vmem:[#allocation2 + $0x82] sm:$0xff]  ;;  %v359_v32 = vld [vmem:[#allocation2 + $0x19a] sm:$0x1] }
 0x103   : > { %877 = vmatprep.mubr.f32.mxu0 %v6665_v52  ;;  %377 = vst [vmem:[#allocation2 + $0x198] sm:$0x1] %v359_v32  ;;  %v6985_v46 = vld [vmem:[#allocation2 + $0xfa] sm:$0xff] }
 0x104   : > { %1283 = vmatmul.mubr.f32.gmra.mrb[58].mxu1 %v6779_v12  ;;  %v7000_v32 = vld [vmem:[#allocation2 + $0x13a] sm:$0xff] }
 0x105   : > { %1287 = vmatprep.mubr.f32.mxu1 %v6620_v63  ;;  %5810 = vmatpush1.bf16.msra.mxu1 %v5809_v10  ;;  %v6870_v63 = vld [vmem:[#allocation2 + $0x138] sm:$0xff] }
 0x106   : > { %878 = vmatmul.mubr.f32.gmra.mrb[44].mxu0 %v6856_v33  ;;  %5811 = vmatprep.subr.bf16.mxu1 %v6330_v0  ;;  %v6943_v10 = vld [vmem:[#allocation2 + $0x7a] sm:$0xff] }
 0x107   : > { %882 = vmatprep.mubr.f32.mxu0 %v6669_v57 }
 0x108   : > { %1288 = vmatmul.mubr.f32.gmra.mrb[60].mxu1 %v6786_v21 }
 0x109   : > { %1292 = vmatprep.mubr.f32.mxu1 %v6623_v2  ;;  %5813 = vmatpush1.bf16.msra.mxu1 %v5812_v29  ;;  %v6876_v2 = vld [vmem:[#allocation2 + $0x140] sm:$0xff]  ;;  %v1746_v29 = vld [vmem:[#allocation6 + $0x468] sm:$0xff] }
 0x10a   : > { %883 = vmatmul.mubr.f32.gmra.mrb[46].mxu0 %v6863_v39  ;;  %5814 = vmatprep.subr.bf16.mxu1 %v6330_v0 }
 0x10b   : > { %887 = vmatprep.mubr.f32.mxu0 %v6675_v1 }
 0x10c   : > { %1293 = vmatmul.mubr.f32.gmra.mrb[62].mxu1 %v6793_v25 }
 0x10d   : > { %1297 = vmatprep.mubr.f32.mxu1 %v6629_v8  ;;  %5816 = vmatpush1.bf16.msra.mxu1 %v5815_v59  ;;  %v6887_v8 = vld [vmem:[#allocation2 + $0x158] sm:$0xff] }
 0x10e   : > { %888 = vmatmul.mubr.f32.gmra.mrb[48].mxu0 %v6870_v63  ;;  %v6951_v59 = vld [vmem:[#allocation2 + $0x92] sm:$0xff] }
 0x10f   : > { %892 = vmatprep.mubr.f32.mxu0 %v6678_v3 }
 0x110   : > { %1298 = vmatmul.mubr.f32.gmra.mrb[64].mxu1 %v6800_v35 }
 0x111   : > { %1302 = vmatprep.mubr.f32.mxu1 %v6165_v34  ;;  %v5841_v34 = vpack.c.bf16 %v1746_v29, %v1745_v31  ;;  %v6993_v31 = vld [vmem:[#allocation2 + $0x122] sm:$0xff] }
 0x112   : > { %893 = vmatmul.mubr.f32.gmra.mrb[50].mxu0 %v6876_v2  ;;  %v1640_v29 = vld [vmem:[#allocation2 + $0x61] sm:$0xff] }
 0x113   : > { %897 = vmatprep.mubr.f32.mxu0 %v6685_v16 }
 0x114   : > { %1303 = vmatmul.mubr.f32.gmra.mrb[66].mxu1 %v6807_v44 }
 0x115   : > { %1307 = vmatprep.mubr.f32.mxu1 %v6638_v17  ;;  %v6899_v17 = vld [vmem:[#allocation2 + $0x170] sm:$0xff] }
 0x116   : > { %898 = vmatmul.mubr.f32.gmra.mrb[52].mxu0 %v6881_v48 }
 0x117   : > { %902 = vmatprep.mubr.f32.mxu0 %v6688_v19 }
 0x118   : > { %1308 = vmatmul.mubr.f32.gmra.mrb[68].mxu1 %v6814_v49 }
 0x119   : > { %1312 = vmatprep.mubr.f32.mxu1 %v6641_v18  ;;  %v6905_v18 = vld [vmem:[#allocation2 + $0x180] sm:$0xff] }
 0x11a   : > { %903 = vmatmul.mubr.f32.gmra.mrb[54].mxu0 %v6887_v8 }
 0x11b   : > { %907 = vmatprep.mubr.f32.mxu0 %v6693_v22  ;;  %v478_v22 = vld [vmem:[#allocation2 + $0x2] sm:$0xff] }
 0x11c   : > { %1313 = vmatmul.mubr.f32.gmra.mrb[70].mxu1 %v6821_v58 }
 0x11d   : > { %1317 = vmatprep.mubr.f32.mxu1 %v6647_v26  ;;  %v6911_v26 = vld [vmem:[#allocation2 + $0x188] sm:$0xff] }
 0x11e   : > { %908 = vmatmul.mubr.f32.gmra.mrb[56].mxu0 %v6893_v9 }
 0x11f   : > { %912 = vmatprep.mubr.f32.mxu0 %v6699_v36 }
 0x120   : > { %1318 = vmatmul.mubr.f32.gmra.mrb[72].mxu1 %v6828_v4 }
 0x121   : > { %1322 = vmatprep.mubr.f32.mxu1 %v6650_v30  ;;  %v1735_v30 = vld [vmem:[#allocation6 + $0x410] sm:$0xff] }
 0x122   : > { %913 = vmatmul.mubr.f32.gmra.mrb[58].mxu0 %v6899_v17  ;;  %v5821_v14 = vpack.c.bf16 %v1736_v38, %v1735_v30  ;;  %v6956_v30 = vld [vmem:[#allocation2 + $0x9a] sm:$0xff]  ;;  %v6959_v38 = vld [vmem:[#allocation2 + $0xaa] sm:$0xff] }
 0x123   : > { %917 = vmatprep.mubr.f32.mxu0 %v6705_v47  ;;  %v479_v47 = vld [vmem:[#allocation2 + $0xa] sm:$0xff] }
 0x124   : > { %1323 = vmatmul.mubr.f32.gmra.mrb[74].mxu1 %v6835_v11 }
 0x125   : > { %1327 = vmatprep.mubr.f32.mxu1 %v6656_v40  ;;  %v480_v40 = vld [vmem:[#allocation2 + $0x1a] sm:$0xff] }
 0x126   : > { %918 = vmatmul.mubr.f32.gmra.mrb[60].mxu0 %v6905_v18 }
 0x127   : > { %922 = vmatprep.mubr.f32.mxu0 %v6709_v51  ;;  %v1737_v51 = vld [vmem:[#allocation6 + $0x420] sm:$0xff] }
 0x128   : > { %1328 = vmatmul.mubr.f32.gmra.mrb[76].mxu1 %v6842_v20  ;;  %v5825_v61 = vpack.c.bf16 %v1738_v60, %v1737_v51  ;;  %v1636_v51 = vld [vmem:[#allocation2 + $0x31] sm:$0xff] }
 0x129   : > { %1332 = vmatprep.mubr.f32.mxu1 %v6659_v43  ;;  %v6920_v43 = vld [vmem:[#allocation2 + $0x32] sm:$0xff]  ;;  %v6971_v60 = vld [vmem:[#allocation2 + $0xca] sm:$0xff] }
 0x12a   : > { %923 = vmatmul.mubr.f32.gmra.mrb[62].mxu0 %v6911_v26 }
 0x12b   : > { %5241 = vmatprep.mubr.f32.mxu0 %v478_v22  ;;  %v1748_v22 = vld [vmem:[#allocation6 + $0x478] sm:$0xff] }
 0x12c   : > { %1333 = vmatmul.mubr.f32.gmra.mrb[78].mxu1 %v6849_v23 }
 0x12d   : > { %1337 = vmatprep.mubr.f32.mxu1 %v6665_v52  ;;  %v6924_v52 = vld [vmem:[#allocation2 + $0x3a] sm:$0xff] }
 0x12e   : > { %5242 = vmatmul.mubr.f32.vlgmr.msra.gmra.mrb[64].mxu0 %v479_v47 }
 0x12f   : > { %5244 = vmatprep.mubr.f32.mxu0 %v480_v40  ;;  %5820 = vmatpush3.bf16.msra.mxu0 %v6761_v45  ;;  %v5829_v45 = vpack.c.bf16 %v1740_v42, %v1739_v6  ;;  %v6166_v40 = vld [vmem:[#allocation2 + $0x169] sm:$0xff]  ;;  %v1637_v6 = vld [vmem:[#allocation2 + $0x39] sm:$0xff] }
 0x130   : > { %1338 = vmatmul.mubr.f32.gmra.mrb[80].mxu1 %v6856_v33  ;;  %5822 = vmatprep.subr.bf16.mxu0 %v5821_v14  ;;  %v6981_v42 = vld [vmem:[#allocation2 + $0xf2] sm:$0xff] }
 0x131   : > { %1342 = vmatprep.mubr.f32.mxu1 %v6669_v57  ;;  %v6932_v57 = vld [vmem:[#allocation2 + $0x52] sm:$0xff] }
 0x132   : > { %5245 = vmatmul.mubr.f32.gmra.mrb[66].mxu0 %v481_v41  ;;  %v6974_v41 = vld [vmem:[#allocation2 + $0xda] sm:$0xff] }
 0x133   : > { %5247 = vmatprep.mubr.f32.mxu0 %v6920_v43  ;;  %5824 = vmatpush3.bf16.msra.mxu0 %v5821_v14  ;;  %v6966_v14 = vld [vmem:[#allocation2 + $0xc2] sm:$0xff] }
 0x134   : > { %1343 = vmatmul.mubr.f32.gmra.mrb[82].mxu1 %v6863_v39  ;;  %5826 = vmatprep.subr.bf16.mxu0 %v5825_v61 }
 0x135   : > { %1347 = vmatprep.mubr.f32.mxu1 %v6675_v1  ;;  %v6940_v1 = vld [vmem:[#allocation2 + $0x6a] sm:$0xff] }
 0x136   : > { %5248 = vmatmul.mubr.f32.gmra.mrb[68].mxu0 %v6924_v52 }
 0x137   : > { %5250 = vmatprep.mubr.f32.mxu0 %v6927_v7  ;;  %5828 = vmatpush3.bf16.msra.mxu0 %v5825_v61  ;;  %v1604_v61 = vld [vmem:[#allocation2 + $0x30] sm:$0xff] }
 0x138   : > { %1348 = vmatmul.mubr.f32.gmra.mrb[84].mxu1 %v6870_v63  ;;  %5830 = vmatprep.subr.bf16.mxu0 %v5829_v45 }
 0x139   : > { %1352 = vmatprep.mubr.f32.mxu1 %v6678_v3  ;;  %v395_v3 = vld [vmem:[#allocation2 + $0x1a7] sm:$0x1] }
 0x13a   : > { %5251 = vmatmul.mubr.f32.gmra.mrb[70].mxu0 %v6932_v57  ;;  %413 = vst [vmem:[#allocation2 + $0x1a9] sm:$0x1] %v395_v3  ;;  %v6997_v3 = vld [vmem:[#allocation2 + $0x12a] sm:$0xff] }
 0x13b   : > { %5253 = vmatprep.mubr.f32.mxu0 %v6935_v24  ;;  %5832 = vmatpush3.bf16.msra.mxu0 %v5829_v45  ;;  %v1605_v45 = vld [vmem:[#allocation2 + $0x38] sm:$0xff] }
 0x13c   : > { %1353 = vmatmul.mubr.f32.gmra.mrb[86].mxu1 %v6876_v2  ;;  %5834 = vmatprep.subr.bf16.mxu0 %v5833_v53 }
 0x13d   : > { %1357 = vmatprep.mubr.f32.mxu1 %v6685_v16  ;;  %v1747_v16 = vld [vmem:[#allocation6 + $0x470] sm:$0xff] }
 0x13e   : > { %5254 = vmatmul.mubr.f32.gmra.mrb[72].mxu0 %v6940_v1  ;;  %v5845_v47 = vpack.c.bf16 %v1748_v22, %v1747_v16  ;;  %v7004_v16 = vld [vmem:[#allocation2 + $0x142] sm:$0xff]  ;;  %v7007_v22 = vld [vmem:[#allocation2 + $0x152] sm:$0xff] }
 0x13f   : > { %5256 = vmatprep.mubr.f32.mxu0 %v6943_v10  ;;  %5836 = vmatpush3.bf16.msra.mxu0 %v5833_v53  ;;  %v6987_v53 = vld [vmem:[#allocation2 + $0x10a] sm:$0xff] }
 0x140   : > { %1358 = vmatmul.mubr.f32.gmra.mrb[88].mxu1 %v6881_v48  ;;  %5838 = vmatprep.subr.bf16.mxu0 %v5837_v55 }
 0x141   : > { %1362 = vmatprep.mubr.f32.mxu1 %v6688_v19  ;;  %v6963_v19 = vld [vmem:[#allocation2 + $0xb2] sm:$0xff] }
 0x142   : > { %5257 = vmatmul.mubr.f32.gmra.mrb[74].mxu0 %v6948_v56 }
 0x143   : > { %5259 = vmatprep.mubr.f32.mxu0 %v6951_v59  ;;  %5840 = vmatpush3.bf16.msra.mxu0 %v5837_v55  ;;  %v6991_v55 = vld [vmem:[#allocation2 + $0x112] sm:$0xff] }
 0x144   : > { %1363 = vmatmul.mubr.f32.gmra.mrb[90].mxu1 %v6887_v8  ;;  %5842 = vmatprep.subr.bf16.mxu0 %v5841_v34 }
 0x145   : > { %1367 = vmatprep.mubr.f32.mxu1 %v6166_v40 }
 0x146   : > { %5260 = vmatmul.mubr.f32.gmra.mrb[76].mxu0 %v6956_v30 }
 0x147   : > { %5262 = vmatprep.mubr.f32.mxu0 %v6959_v38  ;;  %5844 = vmatpush3.bf16.msra.mxu0 %v5841_v34  ;;  %v1641_v34 = vld [vmem:[#allocation2 + $0x69] sm:$0xff] }
 0x148   : > { %1368 = vmatmul.mubr.f32.gmra.mrb[92].mxu1 %v6893_v9  ;;  %5846 = vmatprep.subr.bf16.mxu0 %v5845_v47 }
 0x149   : > { %1372 = vmatprep.mubr.f32.mxu1 %v6699_v36  ;;  %v6979_v36 = vld [vmem:[#allocation2 + $0xe2] sm:$0xff] }
 0x14a   : > { %5263 = vmatmul.mubr.f32.gmra.mrb[78].mxu0 %v6963_v19 }
 0x14b   : > { %5265 = vmatprep.mubr.f32.mxu0 %v6966_v14  ;;  %5848 = vmatpush3.bf16.msra.mxu0 %v5845_v47  ;;  %v1642_v47 = vld [vmem:[#allocation2 + $0x79] sm:$0xff] }
 0x14c   : > { %1373 = vmatmul.mubr.f32.gmra.mrb[94].mxu1 %v6899_v17  ;;  %5849 = vmatprep.subr.bf16.mxu0 %v6330_v0 }
 0x14d   : > { %1813 = vmatprep.mubr.f32.mxu1 %v1636_v51 }
 0x14e   : > { %5266 = vmatmul.mubr.f32.gmra.mrb[80].mxu0 %v6971_v60 }
 0x14f   : > { %5268 = vmatprep.mubr.f32.mxu0 %v6974_v41 }
 0x150   : > { %1814 = vmatmul.mubr.f32.vlgmr.msra.gmra.mrb[96].mxu1 %v1604_v61  ;;  %v7016_v61 = vld [vmem:[#allocation2 + $0x16a] sm:$0xff] }
 0x151   : > { %1818 = vmatprep.mubr.f32.mxu1 %v1637_v6 }
 0x152   : > { %5269 = vmatmul.mubr.f32.gmra.mrb[82].mxu0 %v6979_v36 }
 0x153   : > { %5271 = vmatprep.mubr.f32.mxu0 %v6981_v42 }
 0x154   : > { %1819 = vmatmul.mubr.f32.gmra.mrb[98].mxu1 %v1605_v45  ;;  %v7022_v45 = vld [vmem:[#allocation2 + $0x172] sm:$0xff] }
 0x155   : > { %1823 = vmatprep.mubr.f32.mxu1 %v1638_v13 }
 0x156   : > { %5272 = vmatmul.mubr.f32.gmra.mrb[84].mxu0 %v6985_v46 }
 0x157   : > { %5274 = vmatprep.mubr.f32.mxu0 %v6987_v53 }
 0x158   : > { %1824 = vmatmul.mubr.f32.gmra.mrb[100].mxu1 %v1606_v50 }
 0x159   : > { %1828 = vmatprep.mubr.f32.mxu1 %v1639_v28 }
 0x15a   : > { %5275 = vmatmul.mubr.f32.gmra.mrb[86].mxu0 %v6991_v55 }
 0x15b   : > { %5277 = vmatprep.mubr.f32.mxu0 %v6993_v31 }
 0x15c   : > { %1829 = vmatmul.mubr.f32.gmra.mrb[102].mxu1 %v6743_v37  ;;  %v7013_v37 = vld [vmem:[#allocation2 + $0x15a] sm:$0xff] }
 0x15d   : > { %1833 = vmatprep.mubr.f32.mxu1 %v1640_v29  ;;  %v1645_v29 = vld [vmem:[#allocation2 + $0x99] sm:$0xff] }
 0x15e   : > { %5278 = vmatmul.mubr.f32.gmra.mrb[88].mxu0 %v6997_v3 }
 0x15f   : > { %5280 = vmatprep.mubr.f32.mxu0 %v7000_v32 }
 0x160   : > { %1834 = vmatmul.mubr.f32.gmra.mrb[104].mxu1 %v6748_v62  ;;  %v1643_v62 = vld [vmem:[#allocation2 + $0x81] sm:$0xff] }
 0x161   : > { %1838 = vmatprep.mubr.f32.mxu1 %v1641_v34 }
 0x162   : > { %5281 = vmatmul.mubr.f32.gmra.mrb[90].mxu0 %v7004_v16 }
 0x163   : > { %v7010_v40 = vpop.f32.mrb[0].mxu1  ;;  %5283 = vmatprep.mubr.f32.mxu0 %v7007_v22 }
 0x164   : > { %v994_v51 = vpop.f32.mrb[1].mxu1  ;;  %1839 = vmatmul.mubr.f32.gmra.mrb[106].mxu1 %v6753_v15  ;;  %v1644_v15 = vld [vmem:[#allocation2 + $0x91] sm:$0xff] }
 0x165   : > { %1843 = vmatprep.mubr.f32.mxu1 %v1642_v47 }
 0x166   : > { %5284 = vmatmul.mubr.f32.gmra.mrb[92].mxu0 %v7013_v37 }
 0x167   : > { %v7019_v6 = vpop.f32.mrb[2].mxu1  ;;  %5286 = vmatprep.mubr.f32.mxu0 %v7016_v61 }
 0x168   : > { %v7024_v13 = vpop.f32.mrb[3].mxu1  ;;  %1844 = vmatmul.mubr.f32.gmra.mrb[108].mxu1 %v6758_v27 }
 0x169   : > { %1848 = vmatprep.mubr.f32.mxu1 %v1643_v62  ;;  %v1650_v62 = vld [vmem:[#allocation2 + $0xd9] sm:$0xff] }
 0x16a   : > { %5287 = vmatmul.mubr.f32.gmra.mrb[94].mxu0 %v7022_v45 }
 0x16b   : > { %v7028_v50 = vpop.f32.mrb[4].mxu1  ;;  %5321 = vmatprep.mubr.f32.mxu0 %v6920_v43  ;;  %v1646_v43 = vld [vmem:[#allocation2 + $0xa9] sm:$0xff] }
 0x16c   : > { %v7031_v28 = vpop.f32.mrb[5].mxu1  ;;  %1849 = vmatmul.mubr.f32.gmra.mrb[110].mxu1 %v6766_v54 }
 0x16d   : > { %1853 = vmatprep.mubr.f32.mxu1 %v1644_v15 }
 0x16e   : > { %5322 = vmatmul.mubr.f32.vlgmr.msra.gmra.mrb[96].mxu0 %v6924_v52  ;;  %v1647_v52 = vld [vmem:[#allocation2 + $0xb1] sm:$0xff] }
 0x16f   : > { %v7035_v34 = vpop.f32.mrb[6].mxu1  ;;  %5324 = vmatprep.mubr.f32.mxu0 %v6927_v7 }
 0x170   : > { %v7038_v27 = vpop.f32.mrb[7].mxu1  ;;  %1854 = vmatmul.mubr.f32.gmra.mrb[112].mxu1 %v6773_v5 }
 0x171   : > { %1858 = vmatprep.mubr.f32.mxu1 %v1645_v29  ;;  %v1651_v29 = vld [vmem:[#allocation2 + $0xe1] sm:$0xff] }
 0x172   : > { %5325 = vmatmul.mubr.f32.gmra.mrb[98].mxu0 %v6932_v57  ;;  %v1648_v57 = vld [vmem:[#allocation2 + $0xc1] sm:$0xff] }
 0x173   : > { %v7042_v47 = vpop.f32.mrb[8].mxu1  ;;  %5327 = vmatprep.mubr.f32.mxu0 %v6935_v24 }
 0x174   : > { %v7045_v54 = vpop.f32.mrb[9].mxu1  ;;  %1859 = vmatmul.mubr.f32.gmra.mrb[114].mxu1 %v6779_v12 }
 0x175   : > { %1863 = vmatprep.mubr.f32.mxu1 %v1646_v43 }
 0x176   : > { %5328 = vmatmul.mubr.f32.gmra.mrb[100].mxu0 %v6940_v1  ;;  %v1649_v1 = vld [vmem:[#allocation2 + $0xc9] sm:$0xff] }
 0x177   : > { %v7049_v7 = vpop.f32.mrb[10].mxu1  ;;  %5330 = vmatprep.mubr.f32.mxu0 %v6943_v10 }
 0x178   : > { %v7052_v5 = vpop.f32.mrb[11].mxu1  ;;  %1864 = vmatmul.mubr.f32.gmra.mrb[116].mxu1 %v6786_v21 }
 0x179   : > { %1868 = vmatprep.mubr.f32.mxu1 %v1647_v52  ;;  %v1652_v52 = vld [vmem:[#allocation2 + $0xf1] sm:$0xff] }
 0x17a   : > { %5331 = vmatmul.mubr.f32.gmra.mrb[102].mxu0 %v6948_v56 }
 0x17b   : > { %v7056_v24 = vpop.f32.mrb[12].mxu1  ;;  %5333 = vmatprep.mubr.f32.mxu0 %v6951_v59 }
 0x17c   : > { %v7059_v12 = vpop.f32.mrb[13].mxu1  ;;  %1869 = vmatmul.mubr.f32.gmra.mrb[118].mxu1 %v6793_v25 }
 0x17d   : > { %1873 = vmatprep.mubr.f32.mxu1 %v1648_v57 }
 0x17e   : > { %5334 = vmatmul.mubr.f32.gmra.mrb[104].mxu0 %v6956_v30 }
 0x17f   : > { %v7063_v10 = vpop.f32.mrb[14].mxu1  ;;  %5336 = vmatprep.mubr.f32.mxu0 %v6959_v38 }
 0x180   : > { %v7066_v21 = vpop.f32.mrb[15].mxu1  ;;  %1874 = vmatmul.mubr.f32.gmra.mrb[120].mxu1 %v6800_v35 }
 0x181   : > { %v769_v56 = vpop.f32.mrb[0].mxu0  ;;  %1878 = vmatprep.mubr.f32.mxu1 %v1649_v1  ;;  %v1653_v1 = vld [vmem:[#allocation2 + $0xf9] sm:$0xff] }
 0x182   : > { %5337 = vmatmul.mubr.f32.gmra.mrb[106].mxu0 %v6963_v19  ;;  %v771_v59 = vpop.f32.mrb[1].mxu0  ;;  %v7070_v15 = vadd.f32 %v994_v51, %v769_v56 }
 0x183   : > { %v7072_v25 = vpop.f32.mrb[16].mxu1  ;;  %5339 = vmatprep.mubr.f32.mxu0 %v6966_v14  ;;  %v1654_v59 = vld [vmem:[#allocation2 + $0x109] sm:$0xff] }
 0x184   : > { %v7075_v30 = vpop.f32.mrb[17].mxu1  ;;  %1879 = vmatmul.mubr.f32.gmra.mrb[122].mxu1 %v6807_v44 }
 0x185   : > { %v774_v38 = vpop.f32.mrb[2].mxu0  ;;  %1883 = vmatprep.mubr.f32.mxu1 %v1650_v62 }
 0x186   : > { %5340 = vmatmul.mubr.f32.gmra.mrb[108].mxu0 %v6971_v60  ;;  %v776_v35 = vpop.f32.mrb[3].mxu0  ;;  %v7080_v19 = vadd.f32 %v7010_v40, %v774_v38  ;;  %v1655_v38 = vld [vmem:[#allocation2 + $0x111] sm:$0xff] }
 0x187   : > { %v7082_v43 = vpop.f32.mrb[18].mxu1  ;;  %5342 = vmatprep.mubr.f32.mxu0 %v6974_v41 }
 0x188   : > { %v7085_v51 = vpop.f32.mrb[19].mxu1  ;;  %1884 = vmatmul.mubr.f32.gmra.mrb[124].mxu1 %v6814_v49 }
 0x189   : > { %v779_v14 = vpop.f32.mrb[4].mxu0  ;;  %1888 = vmatprep.mubr.f32.mxu1 %v1651_v29  ;;  %v1656_v29 = vld [vmem:[#allocation2 + $0x121] sm:$0xff] }
 0x18a   : > { %5343 = vmatmul.mubr.f32.gmra.mrb[110].mxu0 %v6979_v36  ;;  %v781_v44 = vpop.f32.mrb[5].mxu0  ;;  %v7090_v60 = vadd.f32 %v7024_v13, %v779_v14 }
 0x18b   : > { %v7092_v57 = vpop.f32.mrb[20].mxu1  ;;  %5345 = vmatprep.mubr.f32.mxu0 %v6981_v42  ;;  %v1657_v44 = vld [vmem:[#allocation2 + $0x129] sm:$0xff] }
 0x18c   : > { %v7095_v40 = vpop.f32.mrb[21].mxu1  ;;  %1889 = vmatmul.mubr.f32.gmra.mrb[126].mxu1 %v6821_v58 }
 0x18d   : > { %v784_v41 = vpop.f32.mrb[6].mxu0  ;;  %1893 = vmatprep.mubr.f32.mxu1 %v1652_v52 }
 0x18e   : > { %5346 = vmatmul.mubr.f32.gmra.mrb[112].mxu0 %v6985_v46  ;;  %v786_v49 = vpop.f32.mrb[7].mxu0  ;;  %v7100_v36 = vadd.f32 %v7019_v6, %v784_v41 }
 0x18f   : > { %v7102_v56 = vpop.f32.mrb[22].mxu1  ;;  %5348 = vmatprep.mubr.f32.mxu0 %v6987_v53  ;;  %v1658_v49 = vld [vmem:[#allocation2 + $0x139] sm:$0xff] }
 0x190   : > { %v7105_v13 = vpop.f32.mrb[23].mxu1  ;;  %1894 = vmatmul.mubr.f32.gmra.mrb[128].mxu1 %v6828_v4 }
 0x191   : > { %v789_v42 = vpop.f32.mrb[8].mxu0  ;;  %1898 = vmatprep.mubr.f32.mxu1 %v1653_v1  ;;  %v1697_v1 = vld [vmem:[#allocation2 + $0x18a] sm:$0xff] }
 0x192   : > { %v791_v58 = vpop.f32.mrb[9].mxu0  ;;  %5349 = vmatmul.mubr.f32.gmra.mrb[114].mxu0 %v6991_v55  ;;  %v7110_v46 = vadd.f32 %v7031_v28, %v789_v42 }
 0x193   : > { %v7112_v62 = vpop.f32.mrb[24].mxu1  ;;  %5351 = vmatprep.mubr.f32.mxu0 %v6993_v31 }
 0x194   : > { %v7115_v6 = vpop.f32.mrb[25].mxu1  ;;  %1899 = vmatmul.mubr.f32.gmra.mrb[130].mxu1 %v6835_v11 }
 0x195   : > { %v794_v53 = vpop.f32.mrb[10].mxu0  ;;  %1903 = vmatprep.mubr.f32.mxu1 %v1654_v59 }
 0x196   : > { %v796_v4 = vpop.f32.mrb[11].mxu0  ;;  %5352 = vmatmul.mubr.f32.gmra.mrb[116].mxu0 %v6997_v3  ;;  %v7120_v35 = vadd.f32 %v7028_v50, %v794_v53  ;;  %v1659_v53 = vld [vmem:[#allocation2 + $0x141] sm:$0xff] }
 0x197   : > { %v7122_v55 = vpop.f32.mrb[26].mxu1  ;;  %5354 = vmatprep.mubr.f32.mxu0 %v7000_v32  ;;  %v1699_v4 = vld [vmem:[#allocation2 + $0x1a2] sm:$0xff] }
 0x198   : > { %v7125_v28 = vpop.f32.mrb[27].mxu1  ;;  %1904 = vmatmul.mubr.f32.gmra.mrb[132].mxu1 %v6842_v20 }
 0x199   : > { %v799_v31 = vpop.f32.mrb[12].mxu0  ;;  %1908 = vmatprep.mubr.f32.mxu1 %v1655_v38 }
 0x19a   : > { %v801_v11 = vpop.f32.mrb[13].mxu0  ;;  %5355 = vmatmul.mubr.f32.gmra.mrb[118].mxu0 %v7004_v16  ;;  %v7130_v14 = vadd.f32 %v7038_v27, %v799_v31 }
 0x19b   : > { %v7132_v3 = vpop.f32.mrb[28].mxu1  ;;  %5357 = vmatprep.mubr.f32.mxu0 %v7007_v22  ;;  %v1696_v22 = vld [vmem:[#allocation2 + $0x182] sm:$0xff]  ;;  %v1660_v11 = vld [vmem:[#allocation2 + $0x151] sm:$0xff] }
 0x19c   : > { %v7135_v50 = vpop.f32.mrb[29].mxu1  ;;  %1909 = vmatmul.mubr.f32.gmra.mrb[134].mxu1 %v6849_v23 }
 0x19d   : > { %v804_v32 = vpop.f32.mrb[14].mxu0  ;;  %1913 = vmatprep.mubr.f32.mxu1 %v1656_v29 }
 0x19e   : > { %v806_v20 = vpop.f32.mrb[15].mxu0  ;;  %5358 = vmatmul.mubr.f32.gmra.mrb[120].mxu0 %v7013_v37  ;;  %v7140_v52 = vadd.f32 %v7035_v34, %v804_v32 }
 0x19f   : > { %v7142_v16 = vpop.f32.mrb[30].mxu1  ;;  %5360 = vmatprep.mubr.f32.mxu0 %v7016_v61 }
 0x1a0   : > { %v7145_v27 = vpop.f32.mrb[31].mxu1  ;;  %1914 = vmatmul.mubr.f32.gmra.mrb[136].mxu1 %v6856_v33  ;;  %v1698_v33 = vld [vmem:[#allocation2 + $0x19a] sm:$0xff] }
 0x1a1   : > { %v809_v41 = vpop.f32.mrb[16].mxu0  ;;  %1918 = vmatprep.mubr.f32.mxu1 %v1657_v44 }
 0x1a2   : > { %v811_v23 = vpop.f32.mrb[17].mxu0  ;;  %5361 = vmatmul.mubr.f32.gmra.mrb[122].mxu0 %v7022_v45  ;;  %v7150_v37 = vadd.f32 %v7045_v54, %v809_v41 }
 0x1a3   : > { %v1219_v34 = vpop.f32.mrb[32].mxu1  ;;  %5363 = vmatprep.mubr.f32.mxu0 %v1696_v22  ;;  %v1661_v22 = vld [vmem:[#allocation2 + $0x159] sm:$0xff] }
 0x1a4   : > { %v7153_v42 = vadd.f32 %v1219_v34, %v7070_v15  ;;  %v1221_v61 = vpop.f32.mrb[33].mxu1  ;;  %1919 = vmatmul.mubr.f32.gmra.mrb[138].mxu1 %v6863_v39  ;;  %v1662_v34 = vld [vmem:[#allocation2 + $0x169] sm:$0xff] }
 0x1a5   : > { %v814_v58 = vpop.f32.mrb[18].mxu0  ;;  %1923 = vmatprep.mubr.f32.mxu1 %v1658_v49 }
 0x1a6   : > { %v816_v59 = vpop.f32.mrb[19].mxu0  ;;  %5364 = vmatmul.mubr.f32.gmra.mrb[124].mxu0 %v1697_v1  ;;  %v7157_v45 = vadd.f32 %v7042_v47, %v814_v58  ;;  %v1663_v58 = vld [vmem:[#allocation2 + $0x171] sm:$0xff] }
 0x1a7   : > { %v1224_v54 = vpop.f32.mrb[34].mxu1  ;;  %5366 = vmatprep.mubr.f32.mxu0 %v1698_v33 }
 0x1a8   : > { %v7160_v38 = vadd.f32 %v1224_v54, %v7080_v19  ;;  %v1226_v15 = vpop.f32.mrb[35].mxu1  ;;  %1924 = vmatmul.mubr.f32.gmra.mrb[140].mxu1 %v6870_v63 }
 0x1a9   : > { %v819_v31 = vpop.f32.mrb[20].mxu0  ;;  %1928 = vmatprep.mubr.f32.mxu1 %v1659_v53 }
 0x1aa   : > { %v821_v39 = vpop.f32.mrb[21].mxu0  ;;  %5367 = vmatmul.mubr.f32.gmra.mrb[126].mxu0 %v1699_v4  ;;  %v7164_v29 = vadd.f32 %v7052_v5, %v819_v31  ;;  %v1664_v4 = vld [vmem:[#allocation2 + $0x181] sm:$0xff] }
 0x1ab   : > { %v1229_v32 = vpop.f32.mrb[36].mxu1 }
 0x1ac   : > { %v7167_v47 = vadd.f32 %v1229_v32, %v7090_v60  ;;  %v1231_v20 = vpop.f32.mrb[37].mxu1  ;;  %1929 = vmatmul.mubr.f32.gmra.mrb[142].mxu1 %v6876_v2 }
 0x1ad   : > { %v824_v19 = vpop.f32.mrb[22].mxu0  ;;  %1933 = vmatprep.mubr.f32.mxu1 %v1660_v11  ;;  %v1665_v11 = vld [vmem:[#allocation2 + $0x189] sm:$0xff] }
 0x1ae   : > { %v826_v44 = vpop.f32.mrb[23].mxu0  ;;  %v7171_v63 = vadd.f32 %v7049_v7, %v824_v19 }
 0x1af   : > { %v1234_v41 = vpop.f32.mrb[38].mxu1 }
 0x1b0   : > { %v7174_v23 = vadd.f32 %v1234_v41, %v7100_v36  ;;  %v1236_v5 = vpop.f32.mrb[39].mxu1  ;;  %1934 = vmatmul.mubr.f32.gmra.mrb[144].mxu1 %v6881_v48 }
 0x1b1   : > { %v829_v49 = vpop.f32.mrb[24].mxu0  ;;  %1938 = vmatprep.mubr.f32.mxu1 %v1661_v22  ;;  %v1666_v22 = vld [vmem:[#allocation2 + $0x199] sm:$0xff] }
 0x1b2   : > { %v831_v60 = vpop.f32.mrb[25].mxu0  ;;  %v7178_v2 = vadd.f32 %v7059_v12, %v829_v49 }
 0x1b3   : > { %v1239_v1 = vpop.f32.mrb[40].mxu1 }
 0x1b4   : > { %v7181_v61 = vadd.f32 %v1239_v1, %v7110_v46  ;;  %v1241_v7 = vpop.f32.mrb[41].mxu1  ;;  %1939 = vmatmul.mubr.f32.gmra.mrb[146].mxu1 %v6887_v8 }
 0x1b5   : > { %v834_v33 = vpop.f32.mrb[26].mxu0  ;;  %1943 = vmatprep.mubr.f32.mxu1 %v1662_v34 }
 0x1b6   : > { %v836_v36 = vpop.f32.mrb[27].mxu0  ;;  %v7185_v48 = vadd.f32 %v7056_v24, %v834_v33 }
 0x1b7   : > { %v1244_v59 = vpop.f32.mrb[42].mxu1 }
 0x1b8   : > { %v7188_v53 = vadd.f32 %v1244_v59, %v7120_v35  ;;  %v1246_v12 = vpop.f32.mrb[43].mxu1  ;;  %1944 = vmatmul.mubr.f32.gmra.mrb[148].mxu1 %v6893_v9 }
 0x1b9   : > { %v839_v54 = vpop.f32.mrb[28].mxu0  ;;  %1948 = vmatprep.mubr.f32.mxu1 %v1663_v58 }
 0x1ba   : > { %v841_v46 = vpop.f32.mrb[29].mxu0  ;;  %v7192_v8 = vadd.f32 %v7066_v21, %v839_v54 }
 0x1bb   : > { %v1249_v15 = vpop.f32.mrb[44].mxu1 }
 0x1bc   : > { %v7195_v31 = vadd.f32 %v1249_v15, %v7130_v14  ;;  %v1251_v24 = vpop.f32.mrb[45].mxu1  ;;  %1949 = vmatmul.mubr.f32.gmra.mrb[150].mxu1 %v6899_v17 }
 0x1bd   : > { %v844_v39 = vpop.f32.mrb[30].mxu0  ;;  %1953 = vmatprep.mubr.f32.mxu1 %v1664_v4 }
 0x1be   : > { %v846_v35 = vpop.f32.mrb[31].mxu0  ;;  %v1070_v9 = vadd.f32 %v7063_v10, %v844_v39 }
 0x1bf   : > { %v1254_v32 = vpop.f32.mrb[46].mxu1 }
 0x1c0   : > { %v7200_v20 = vadd.f32 %v1254_v32, %v7140_v52  ;;  %v1256_v19 = vpop.f32.mrb[47].mxu1  ;;  %1954 = vmatmul.mubr.f32.gmra.mrb[152].mxu1 %v6905_v18  ;;  %v1634_v52 = vld [vmem:[#allocation2 + $0x198] sm:$0xff]  ;;  %v1667_v18 = vld [vmem:[#allocation2 + $0x1a1] sm:$0xff] }
 0x1c1   : > { %v849_v21 = vpop.f32.mrb[32].mxu0  ;;  %1958 = vmatprep.mubr.f32.mxu1 %v1665_v11 }
 0x1c2   : > { %v1075_v14 = vadd.f32 %v7075_v30, %v849_v21  ;;  %v851_v44 = vpop.f32.mrb[33].mxu0 }
 0x1c3   : > { %v1259_v17 = vpop.f32.mrb[48].mxu1 }
 0x1c4   : > { %v7205_v41 = vadd.f32 %v1259_v17, %v7150_v37  ;;  %v1261_v5 = vpop.f32.mrb[49].mxu1  ;;  %1959 = vmatmul.mubr.f32.gmra.mrb[154].mxu1 %v6911_v26  ;;  %v1635_v37 = vld [vmem:[#allocation2 + $0x1a0] sm:$0xff] }
 0x1c5   : > { %v854_v10 = vpop.f32.mrb[34].mxu0  ;;  %1963 = vmatprep.mubr.f32.mxu1 %v1666_v22 }
 0x1c6   : > { %v1080_v49 = vadd.f32 %v7072_v25, %v854_v10  ;;  %v856_v60 = vpop.f32.mrb[35].mxu0 }
 0x1c7   : > { %v1264_v34 = vpop.f32.mrb[50].mxu1 }
 0x1c8   : > { %v7210_v1 = vadd.f32 %v1264_v34, %v7157_v45  ;;  %v1266_v30 = vpop.f32.mrb[51].mxu1  ;;  %1964 = vmatmul.mubr.f32.gmra.mrb[156].mxu1 %v1634_v52 }
 0x1c9   : > { %v859_v7 = vpop.f32.mrb[36].mxu0  ;;  %1968 = vmatprep.mubr.f32.mxu1 %v1667_v18 }
 0x1ca   : > { %v1085_v33 = vadd.f32 %v7085_v51, %v859_v7  ;;  %v861_v36 = vpop.f32.mrb[37].mxu0 }
 0x1cb   : > { %v1269_v26 = vpop.f32.mrb[52].mxu1 }
 0x1cc   : > { %v7214_v58 = vadd.f32 %v1269_v26, %v7164_v29  ;;  %v1271_v59 = vpop.f32.mrb[53].mxu1  ;;  %1969 = vmatmul.mubr.f32.gmra.mrb[158].mxu1 %v1635_v37 }
 0x1cd   : > { %v864_v25 = vpop.f32.mrb[38].mxu0 }
 0x1ce   : > { %v1090_v12 = vadd.f32 %v7082_v43, %v864_v25  ;;  %v866_v54 = vpop.f32.mrb[39].mxu0 }
 0x1cf   : > { %v1274_v45 = vpop.f32.mrb[54].mxu1 }
 0x1d0   : > { %v7218_v46 = vadd.f32 %v1274_v45, %v7171_v63  ;;  %v1276_v4 = vpop.f32.mrb[55].mxu1 }
 0x1d1   : > { %v869_v15 = vpop.f32.mrb[40].mxu0 }
 0x1d2   : > { %v1095_v24 = vadd.f32 %v7095_v40, %v869_v15  ;;  %v871_v51 = vpop.f32.mrb[41].mxu0 }
 0x1d3   : > { %v1279_v39 = vpop.f32.mrb[56].mxu1 }
 0x1d4   : > { %v7222_v35 = vadd.f32 %v1279_v39, %v7178_v2  ;;  %v1281_v29 = vpop.f32.mrb[57].mxu1 }
 0x1d5   : > { %v874_v11 = vpop.f32.mrb[42].mxu0 }
 0x1d6   : > { %v1100_v32 = vadd.f32 %v7092_v57, %v874_v11  ;;  %v876_v19 = vpop.f32.mrb[43].mxu0 }
 0x1d7   : > { %v1284_v43 = vpop.f32.mrb[58].mxu1 }
 0x1d8   : > { %v7226_v21 = vadd.f32 %v1284_v43, %v7185_v48  ;;  %v1286_v63 = vpop.f32.mrb[59].mxu1 }
 0x1d9   : > { %v879_v44 = vpop.f32.mrb[44].mxu0 }
 0x1da   : > { %v1105_v22 = vadd.f32 %v7105_v13, %v879_v44  ;;  %v881_v17 = vpop.f32.mrb[45].mxu0 }
 0x1db   : > { %v1289_v40 = vpop.f32.mrb[60].mxu1 }
 0x1dc   : > { %v7230_v5 = vadd.f32 %v1289_v40, %v7192_v8  ;;  %v1291_v2 = vpop.f32.mrb[61].mxu1 }
 0x1dd   : > { %v884_v10 = vpop.f32.mrb[46].mxu0 }
 0x1de   : > { %v1110_v52 = vadd.f32 %v7102_v56, %v884_v10  ;;  %v886_v60 = vpop.f32.mrb[47].mxu0 }
 0x1df   : > { %v1294_v57 = vpop.f32.mrb[62].mxu1 }
 0x1e0   : > { %v7233_v18 = vadd.f32 %v1294_v57, %v1070_v9  ;;  %v1296_v34 = vpop.f32.mrb[63].mxu1 }
 0x1e1   : > { %v889_v48 = vpop.f32.mrb[48].mxu0 }
 0x1e2   : > { %v1115_v30 = vadd.f32 %v7115_v6, %v889_v48  ;;  %v891_v7 = vpop.f32.mrb[49].mxu0 }
 0x1e3   : > { %v1299_v37 = vpop.f32.mrb[64].mxu1 }
 0x1e4   : > { %v7236_v13 = vadd.f32 %v1299_v37, %v1075_v14  ;;  %v1301_v36 = vpop.f32.mrb[65].mxu1 }
 0x1e5   : > { %v894_v26 = vpop.f32.mrb[50].mxu0 }
 0x1e6   : > { %v1120_v8 = vadd.f32 %v7112_v62, %v894_v26  ;;  %v896_v59 = vpop.f32.mrb[51].mxu0 }
 0x1e7   : > { %v1304_v25 = vpop.f32.mrb[66].mxu1 }
 0x1e8   : > { %v7239_v54 = vadd.f32 %v1304_v25, %v1080_v49  ;;  %v1306_v56 = vpop.f32.mrb[67].mxu1 }
 0x1e9   : > { %v899_v45 = vpop.f32.mrb[52].mxu0 }
 0x1ea   : > { %v1125_v9 = vadd.f32 %v7125_v28, %v899_v45  ;;  %v901_v4 = vpop.f32.mrb[53].mxu0 }
 0x1eb   : > { %v1309_v15 = vpop.f32.mrb[68].mxu1 }
 0x1ec   : > { %v7242_v51 = vadd.f32 %v1309_v15, %v1085_v33  ;;  %v1311_v6 = vpop.f32.mrb[69].mxu1 }
 0x1ed   : > { %v904_v39 = vpop.f32.mrb[54].mxu0 }
 0x1ee   : > { %v1130_v14 = vadd.f32 %v7122_v55, %v904_v39  ;;  %v906_v29 = vpop.f32.mrb[55].mxu0 }
 0x1ef   : > { %v1314_v11 = vpop.f32.mrb[70].mxu1 }
 0x1f0   : > { %v7245_v19 = vadd.f32 %v1314_v11, %v1090_v12  ;;  %v1316_v62 = vpop.f32.mrb[71].mxu1 }
 0x1f1   : > { %v909_v43 = vpop.f32.mrb[56].mxu0 }
 0x1f2   : > { %v1135_v49 = vadd.f32 %v7135_v50, %v909_v43  ;;  %v911_v63 = vpop.f32.mrb[57].mxu0 }
 0x1f3   : > { %v1319_v44 = vpop.f32.mrb[72].mxu1 }
 0x1f4   : > { %v7248_v17 = vadd.f32 %v1319_v44, %v1095_v24  ;;  %v1321_v28 = vpop.f32.mrb[73].mxu1 }
 0x1f5   : > { %v914_v40 = vpop.f32.mrb[58].mxu0 }
 0x1f6   : > { %v1140_v33 = vadd.f32 %v7132_v3, %v914_v40  ;;  %v916_v2 = vpop.f32.mrb[59].mxu0 }
 0x1f7   : > { %v1324_v10 = vpop.f32.mrb[74].mxu1 }
 0x1f8   : > { %v7251_v60 = vadd.f32 %v1324_v10, %v1100_v32  ;;  %v1326_v55 = vpop.f32.mrb[75].mxu1 }
 0x1f9   : > { %v919_v57 = vpop.f32.mrb[60].mxu0 }
 0x1fa   : > { %v1145_v12 = vadd.f32 %v7145_v27, %v919_v57  ;;  %v921_v34 = vpop.f32.mrb[61].mxu0 }
 0x1fb   : > { %v1329_v48 = vpop.f32.mrb[76].mxu1 }
 0x1fc   : > { %v7254_v7 = vadd.f32 %v1329_v48, %v1105_v22  ;;  %v1331_v50 = vpop.f32.mrb[77].mxu1 }
 0x1fd   : > { %v924_v37 = vpop.f32.mrb[62].mxu0 }
 0x1fe   : > { %v7257_v24 = vadd.f32 %v7142_v16, %v924_v37  ;;  %v926_v36 = vpop.f32.mrb[63].mxu0 }
 0x1ff   : > { %v1334_v26 = vpop.f32.mrb[78].mxu1 }
 0x200   : > { %v7259_v3 = vadd.f32 %v1334_v26, %v1110_v52  ;;  %v1336_v59 = vpop.f32.mrb[79].mxu1 }
 0x201   : > { %v5243_v32 = vpop.f32.mrb[64].mxu0  ;;  %v2827_v59 = vld [vmem:[#allocation8 + $0x180] sm:$0xff] }
 0x202   : > { %v7262_v25 = vadd.f32 %v5243_v32, %v7160_v38  ;;  %v1444_v56 = vpop.f32.mrb[65].mxu0  ;;  %v2828_v32 = vld [vmem:[#allocation8 + $0x188] sm:$0xff] }
 0x203   : > { %v1339_v27 = vpop.f32.mrb[80].mxu1  ;;  %v7265_v45 = vadd.f32 %v1444_v56, %v7153_v42  ;;  %v5850_v56 = vpack.c.bf16 %v2828_v32, %v2827_v59 }
 0x204   : > { %v7267_v22 = vadd.f32 %v1339_v27, %v1115_v30  ;;  %v1341_v4 = vpop.f32.mrb[81].mxu1 }
 0x205   : > { %v5246_v15 = vpop.f32.mrb[66].mxu0  ;;  %5851 = vmatpush1.bf16.msra.mxu0 %v5850_v56 }
 0x206   : > { %v7270_v16 = vadd.f32 %v5246_v15, %v7174_v23  ;;  %v1454_v6 = vpop.f32.mrb[67].mxu0  ;;  %5852 = vmatprep.subr.bf16.mxu0 %v6330_v0 }
 0x207   : > { %v1344_v52 = vpop.f32.mrb[82].mxu1  ;;  %v7273_v39 = vadd.f32 %v1454_v6, %v7167_v47 }
 0x208   : > { %v7275_v29 = vadd.f32 %v1344_v52, %v1120_v8  ;;  %v1346_v38 = vpop.f32.mrb[83].mxu1 }
 0x209   : > { %v5249_v11 = vpop.f32.mrb[68].mxu0 }
 0x20a   : > { %v7278_v62 = vadd.f32 %v5249_v11, %v7188_v53  ;;  %v1464_v42 = vpop.f32.mrb[69].mxu0  ;;  %v2859_v11 = vld [vmem:[#allocation8 + $0x280] sm:$0xff] }
 0x20b   : > { %v1349_v30 = vpop.f32.mrb[84].mxu1  ;;  %v7281_v43 = vadd.f32 %v1464_v42, %v7181_v61 }
 0x20c   : > { %v7283_v63 = vadd.f32 %v1349_v30, %v1125_v9  ;;  %v1351_v23 = vpop.f32.mrb[85].mxu1 }
 0x20d   : > { %v5252_v44 = vpop.f32.mrb[70].mxu0 }
 0x20e   : > { %v7286_v28 = vadd.f32 %v5252_v44, %v7200_v20  ;;  %v1474_v47 = vpop.f32.mrb[71].mxu0 }
 0x20f   : > { %v1354_v8 = vpop.f32.mrb[86].mxu1  ;;  %v7289_v40 = vadd.f32 %v1474_v47, %v7195_v31 }
 0x210   : > { %v7291_v2 = vadd.f32 %v1354_v8, %v1130_v14  ;;  %v1356_v53 = vpop.f32.mrb[87].mxu1 }
 0x211   : > { %v5255_v10 = vpop.f32.mrb[72].mxu0 }
 0x212   : > { %v7294_v55 = vadd.f32 %v5255_v10, %v7210_v1  ;;  %v1484_v61 = vpop.f32.mrb[73].mxu0 }
 0x213   : > { %v1359_v9 = vpop.f32.mrb[88].mxu1  ;;  %v7297_v57 = vadd.f32 %v1484_v61, %v7205_v41 }
 0x214   : > { %v7299_v34 = vadd.f32 %v1359_v9, %v1135_v49  ;;  %v1361_v20 = vpop.f32.mrb[89].mxu1 }
 0x215   : > { %v5258_v48 = vpop.f32.mrb[74].mxu0 }
 0x216   : > { %v7302_v50 = vadd.f32 %v5258_v48, %v7218_v46  ;;  %v1494_v31 = vpop.f32.mrb[75].mxu0  ;;  %v2829_v48 = vld [vmem:[#allocation8 + $0x190] sm:$0xff] }
 0x217   : > { %v1364_v14 = vpop.f32.mrb[90].mxu1  ;;  %v7305_v37 = vadd.f32 %v1494_v31, %v7214_v58  ;;  %v2830_v31 = vld [vmem:[#allocation8 + $0x198] sm:$0xff] }
 0x218   : > { %v7307_v36 = vadd.f32 %v1364_v14, %v1140_v33  ;;  %v1366_v1 = vpop.f32.mrb[91].mxu1 }
 0x219   : > { %v5261_v26 = vpop.f32.mrb[76].mxu0 }
 0x21a   : > { %v7310_v41 = vadd.f32 %v5261_v26, %v7226_v21  ;;  %v1504_v49 = vpop.f32.mrb[77].mxu0 }
 0x21b   : > { %v1369_v27 = vpop.f32.mrb[92].mxu1  ;;  %v7313_v46 = vadd.f32 %v1504_v49, %v7222_v35  ;;  %v2832_v49 = vld [vmem:[#allocation8 + $0x1a8] sm:$0xff] }
 0x21c   : > { %v7315_v4 = vadd.f32 %v1369_v27, %v1145_v12  ;;  %v1371_v15 = vpop.f32.mrb[93].mxu1  ;;  %v2860_v12 = vld [vmem:[#allocation8 + $0x288] sm:$0xff] }
 0x21d   : > { %v5264_v58 = vpop.f32.mrb[78].mxu0  ;;  %v5897_v30 = vpack.c.bf16 %v2860_v12, %v2859_v11 }
 0x21e   : > { %v7319_v33 = vadd.f32 %v5264_v58, %v7233_v18  ;;  %v1514_v6 = vpop.f32.mrb[79].mxu0 }
 0x21f   : > { %v1374_v52 = vpop.f32.mrb[94].mxu1  ;;  %v7322_v21 = vadd.f32 %v1514_v6, %v7230_v5  ;;  %5898 = vmatprep.subr.bf16.mxu1 %v5897_v30 }
 0x220   : > { %v7325_v38 = vadd.f32 %v1374_v52, %v7257_v24  ;;  %v1376_v35 = vpop.f32.mrb[95].mxu1  ;;  %5900 = vmatpush3.bf16.msra.mxu1 %v5897_v30 }
 0x221   : > { %v5267_v42 = vpop.f32.mrb[80].mxu0  ;;  %v2834_v35 = vld [vmem:[#allocation8 + $0x1b8] sm:$0xff] }
 0x222   : > { %v7328_v23 = vadd.f32 %v5267_v42, %v7239_v54  ;;  %v1524_v44 = vpop.f32.mrb[81].mxu0 }
 0x223   : > { %v7331_v18 = vadd.f32 %v1524_v44, %v7236_v13  ;;  %v7333_v47 = vpop.f32.mrb[96].mxu1 }
 0x224   : > { %v1817_v5 = vpop.f32.mrb[97].mxu1 }
 0x225   : > { %v5270_v8 = vpop.f32.mrb[82].mxu0 }
 0x226   : > { %v7336_v24 = vadd.f32 %v5270_v8, %v7245_v19  ;;  %v1534_v53 = vpop.f32.mrb[83].mxu0  ;;  %v5853_v19 = vpack.c.bf16 %v2830_v31, %v2829_v48  ;;  %v2836_v8 = vld [vmem:[#allocation8 + $0x1c8] sm:$0xff] }
 0x227   : > { %v7339_v10 = vadd.f32 %v1534_v53, %v7242_v51  ;;  %v7341_v61 = vpop.f32.mrb[98].mxu1 }
 0x228   : > { %v1822_v54 = vpop.f32.mrb[99].mxu1  ;;  %5854 = vmatpush1.bf16.msra.mxu0 %v5853_v19  ;;  %v2838_v19 = vld [vmem:[#allocation8 + $0x1d8] sm:$0xff] }
 0x229   : > { %v5273_v9 = vpop.f32.mrb[84].mxu0  ;;  %5855 = vmatprep.subr.bf16.mxu0 %v6330_v0 }
 0x22a   : > { %v7344_v13 = vadd.f32 %v5273_v9, %v7251_v60  ;;  %v1544_v20 = vpop.f32.mrb[85].mxu0  ;;  %v2831_v60 = vld [vmem:[#allocation8 + $0x1a0] sm:$0xff] }
 0x22b   : > { %v7347_v14 = vadd.f32 %v1544_v20, %v7248_v17  ;;  %v7349_v1 = vpop.f32.mrb[100].mxu1  ;;  %v5856_v17 = vpack.c.bf16 %v2832_v49, %v2831_v60 }
 0x22c   : > { %v1827_v26 = vpop.f32.mrb[101].mxu1 }
 0x22d   : > { %v5276_v59 = vpop.f32.mrb[86].mxu0  ;;  %5857 = vmatpush1.bf16.msra.mxu0 %v5856_v17 }
 0x22e   : > { %v7352_v51 = vadd.f32 %v5276_v59, %v7259_v3  ;;  %v1554_v32 = vpop.f32.mrb[87].mxu0  ;;  %5858 = vmatprep.subr.bf16.mxu0 %v6330_v0  ;;  %v2833_v3 = vld [vmem:[#allocation8 + $0x1b0] sm:$0xff] }
 0x22f   : > { %v7356_v56 = vadd.f32 %v1554_v32, %v7254_v7  ;;  %v7358_v27 = vpop.f32.mrb[102].mxu1  ;;  %v5859_v7 = vpack.c.bf16 %v2834_v35, %v2833_v3 }
 0x230   : > { %v1832_v15 = vpop.f32.mrb[103].mxu1 }
 0x231   : > { %v5279_v58 = vpop.f32.mrb[88].mxu0  ;;  %5860 = vmatpush1.bf16.msra.mxu0 %v5859_v7  ;;  %v2840_v15 = vld [vmem:[#allocation8 + $0x1e8] sm:$0xff] }
 0x232   : > { %v7361_v6 = vadd.f32 %v5279_v58, %v7275_v29  ;;  %v1564_v52 = vpop.f32.mrb[89].mxu0  ;;  %5861 = vmatprep.subr.bf16.mxu0 %v6330_v0  ;;  %v2835_v29 = vld [vmem:[#allocation8 + $0x1c0] sm:$0xff] }
 0x233   : > { %v7365_v11 = vadd.f32 %v1564_v52, %v7267_v22  ;;  %v7367_v12 = vpop.f32.mrb[104].mxu1  ;;  %v5862_v22 = vpack.c.bf16 %v2836_v8, %v2835_v29 }
 0x234   : > { %v1837_v42 = vpop.f32.mrb[105].mxu1 }
 0x235   : > { %v5282_v30 = vpop.f32.mrb[90].mxu0  ;;  %5863 = vmatpush1.bf16.msra.mxu0 %v5862_v22 }
 0x236   : > { %v7370_v44 = vadd.f32 %v5282_v30, %v7291_v2  ;;  %v1574_v5 = vpop.f32.mrb[91].mxu0  ;;  %5864 = vmatprep.subr.bf16.mxu0 %v6330_v0  ;;  %v2837_v2 = vld [vmem:[#allocation8 + $0x1d0] sm:$0xff]  ;;  %v2842_v30 = vld [vmem:[#allocation8 + $0x1f8] sm:$0xff] }
 0x237   : > { %v7374_v53 = vadd.f32 %v1574_v5, %v7283_v63  ;;  %v1840_v54 = vpop.f32.mrb[106].mxu1  ;;  %v5865_v63 = vpack.c.bf16 %v2838_v19, %v2837_v2  ;;  %v7399_v5 = vld [vmem:[%s9092_s2] ss:$0 sm:$0xff] }
 0x238   : > { %v1842_v9 = vpop.f32.mrb[107].mxu1 }
 0x239   : > { %v5285_v20 = vpop.f32.mrb[92].mxu0  ;;  %5866 = vmatpush1.bf16.msra.mxu0 %v5865_v63  ;;  %v2843_v63 = vld [vmem:[#allocation8 + $0x200] sm:$0xff] }
 0x23a   : > { %v7377_v48 = vadd.f32 %v5285_v20, %v7307_v36  ;;  %v1584_v31 = vpop.f32.mrb[93].mxu0  ;;  %5867 = vmatprep.subr.bf16.mxu0 %v6330_v0  ;;  %v2839_v36 = vld [vmem:[#allocation8 + $0x1e0] sm:$0xff] }
 0x23b   : > { %v7381_v26 = vadd.f32 %v1584_v31, %v7299_v34  ;;  %v7383_v59 = vpop.f32.mrb[108].mxu1  ;;  %v5868_v34 = vpack.c.bf16 %v2840_v15, %v2839_v36 }
 0x23c   : > { %v1847_v32 = vpop.f32.mrb[109].mxu1 }
 0x23d   : > { %v5288_v60 = vpop.f32.mrb[94].mxu0  ;;  %5869 = vmatpush1.bf16.msra.mxu0 %v5868_v34  ;;  %v2844_v32 = vld [vmem:[#allocation8 + $0x208] sm:$0xff] }
 0x23e   : > { %v7386_v49 = vadd.f32 %v5288_v60, %v7325_v38  ;;  %v1594_v17 = vpop.f32.mrb[95].mxu0  ;;  %5870 = vmatprep.subr.bf16.mxu0 %v6330_v0  ;;  %v2841_v38 = vld [vmem:[#allocation8 + $0x1f0] sm:$0xff] }
 0x23f   : > { %v7390_v58 = vadd.f32 %v1594_v17, %v7315_v4  ;;  %v7392_v52 = vpop.f32.mrb[110].mxu1  ;;  %v5871_v8 = vpack.c.bf16 %v2842_v30, %v2841_v38 }
 0x240   : > { %v1852_v3 = vpop.f32.mrb[111].mxu1 }
 0x241   : > { %v5323_v35 = vpop.f32.mrb[96].mxu0  ;;  %5872 = vmatpush1.bf16.msra.mxu0 %v5871_v8 }
 0x242   : > { %v2046_v7 = vadd.f32 %v5323_v35, %v7341_v61  ;;  %v2040_v42 = vpop.f32.mrb[97].mxu0  ;;  %5873 = vmatprep.subr.bf16.mxu0 %v6330_v0  ;;  %v2861_v35 = vld [vmem:[#allocation8 + $0x290] sm:$0xff] }
 0x243   : > { %v7401_v4 = vpop.f32.mrb[112].mxu1  ;;  %v2041_v29 = vadd.f32 %v2040_v42, %v7333_v47 }
 0x244   : > { %v2200_v22 = vadd.f32 %v2046_v7, %v7262_v25  ;;  %v1857_v9 = vpop.f32.mrb[113].mxu1  ;;  %v2862_v7 = vld [vmem:[#allocation8 + $0x298] sm:$0xff] }
 0x245   : > { %v2199_v61 = vadd.f32 %v2041_v29, %v7265_v45  ;;  %v5326_v20 = vpop.f32.mrb[98].mxu0  ;;  %v5874_v45 = vpack.c.bf16 %v2844_v32, %v2843_v63  ;;  %v5901_v30 = vpack.c.bf16 %v2862_v7, %v2861_v35  ;;  %v2845_v29 = vld [vmem:[#allocation8 + $0x210] sm:$0xff] }
 0x246   : > { %v7407_v31 = vadd.f32 %v7399_v5, %v2200_v22  ;;  %v2056_v2 = vadd.f32 %v5326_v20, %v7358_v27  ;;  %v2050_v19 = vpop.f32.mrb[99].mxu0 }
 0x247   : > { %v7412_v47 = vadd.f32 %v7399_v5, %v2199_v61  ;;  %v7414_v60 = vpop.f32.mrb[114].mxu1  ;;  %v2051_v25 = vadd.f32 %v2050_v19, %v7349_v1  ;;  %5875 = vmatpush1.bf16.msra.mxu0 %v5874_v45  ;;  %5902 = vmatprep.subr.bf16.mxu1 %v5901_v30  ;;  %v2863_v45 = vld [vmem:[#allocation8 + $0x2a0] sm:$0xff] }
 0x248   : > { %v2308_v17 = vmul.f32 %v7407_v31, %v7407_v31  ;;  %v2202_v36 = vadd.f32 %v2056_v2, %v7270_v16  ;;  %v1862_v15 = vpop.f32.mrb[115].mxu1  ;;  %5876 = vmatprep.subr.bf16.mxu0 %v6330_v0  ;;  %v2846_v16 = vld [vmem:[#allocation8 + $0x218] sm:$0xff]  ;;  %5904 = vmatpush3.bf16.msra.mxu1 %v5901_v30 }
 0x249   : > { %v2307_v27 = vmul.f32 %v7412_v47, %v7412_v47  ;;  %v2201_v34 = vadd.f32 %v2051_v25, %v7273_v39  ;;  %v5329_v3 = vpop.f32.mrb[100].mxu0  ;;  %v2270_v8 = vadd.f32 %v7407_v31, %v7412_v47  ;;  %v5877_v61 = vpack.c.bf16 %v2846_v16, %v2845_v29 }
 0x24a   : > { %v7424_v42 = vadd.f32 %v7399_v5, %v2202_v36  ;;  %v2066_v1 = vadd.f32 %v5329_v3, %v1840_v54  ;;  %v2060_v38 = vpop.f32.mrb[101].mxu0  ;;  %v2864_v36 = vld [vmem:[#allocation8 + $0x2a8] sm:$0xff] }
 0x24b   : > { %v7430_v22 = vadd.f32 %v7399_v5, %v2201_v34  ;;  %v7432_v39 = vpop.f32.mrb[116].mxu1  ;;  %v2061_v9 = vadd.f32 %v2060_v38, %v7367_v12  ;;  %v2339_v20 = vadd.f32 %v2308_v17, %v2307_v27  ;;  %5878 = vmatpush1.bf16.msra.mxu0 %v5877_v61  ;;  %v5905_v27 = vpack.c.bf16 %v2864_v36, %v2863_v45  ;;  %v2847_v34 = vld [vmem:[#allocation8 + $0x220] sm:$0xff]  ;;  %v2848_v3 = vld [vmem:[#allocation8 + $0x228] sm:$0xff]  ;;  %v2850_v45 = vld [vmem:[#allocation8 + $0x238] sm:$0xff] }
 0x24c   : > { %v2204_v54 = vadd.f32 %v2066_v1, %v7278_v62  ;;  %v1867_v2 = vpop.f32.mrb[117].mxu1  ;;  %v2310_v12 = vmul.f32 %v7424_v42, %v7424_v42  ;;  %5879 = vmatprep.subr.bf16.mxu0 %v6330_v0 }
 0x24d   : > { %v2271_v19 = vadd.f32 %v2270_v8, %v7430_v22  ;;  %v2309_v63 = vmul.f32 %v7430_v22, %v7430_v22  ;;  %v2203_v32 = vadd.f32 %v2061_v9, %v7281_v43  ;;  %v5332_v25 = vpop.f32.mrb[102].mxu0  ;;  %5906 = vmatprep.subr.bf16.mxu1 %v5905_v27  ;;  %v2866_v2 = vld [vmem:[#allocation8 + $0x2b8] sm:$0xff] }
 0x24e   : > { %v7443_v17 = vadd.f32 %v7399_v5, %v2204_v54  ;;  %v2076_v62 = vadd.f32 %v5332_v25, %v7392_v52  ;;  %v2070_v15 = vpop.f32.mrb[103].mxu0  ;;  %v5880_v52 = vpack.c.bf16 %v2848_v3, %v2847_v34  ;;  %5908 = vmatpush3.bf16.msra.mxu1 %v5905_v27  ;;  %v2865_v54 = vld [vmem:[#allocation8 + $0x2b0] sm:$0xff] }
 0x24f   : > { %v2340_v43 = vadd.f32 %v2339_v20, %v2309_v63  ;;  %v7448_v35 = vadd.f32 %v7399_v5, %v2203_v32  ;;  %v2272_v7 = vadd.f32 %v2271_v19, %v7424_v42  ;;  %v1870_v1 = vpop.f32.mrb[118].mxu1  ;;  %v2071_v38 = vadd.f32 %v2070_v15, %v7383_v59  ;;  %v2849_v25 = vld [vmem:[#allocation8 + $0x230] sm:$0xff] }
 0x250   : > { %v2206_v30 = vadd.f32 %v2076_v62, %v7286_v28  ;;  %v1872_v29 = vpop.f32.mrb[119].mxu1  ;;  %v2312_v59 = vmul.f32 %v7443_v17, %v7443_v17  ;;  %5881 = vmatpush1.bf16.msra.mxu0 %v5880_v52  ;;  %v5909_v32 = vpack.c.bf16 %v2866_v2, %v2865_v54  ;;  %v2868_v52 = vld [vmem:[#allocation8 + $0x2c8] sm:$0xff] }
 0x251   : > { %v2273_v16 = vadd.f32 %v2272_v7, %v7448_v35  ;;  %v2311_v8 = vmul.f32 %v7448_v35, %v7448_v35  ;;  %v2341_v9 = vadd.f32 %v2340_v43, %v2310_v12  ;;  %v2205_v61 = vadd.f32 %v2071_v38, %v7289_v40  ;;  %v5335_v20 = vpop.f32.mrb[104].mxu0  ;;  %5882 = vmatprep.subr.bf16.mxu0 %v6330_v0  ;;  %v2867_v29 = vld [vmem:[#allocation8 + $0x2c0] sm:$0xff] }
 0x252   : > { %v7460_v28 = vadd.f32 %v7399_v5, %v2206_v30  ;;  %v2086_v19 = vadd.f32 %v5335_v20, %v7414_v60  ;;  %v2080_v63 = vpop.f32.mrb[105].mxu0  ;;  %5910 = vmatprep.subr.bf16.mxu1 %v5909_v32  ;;  %v5883_v60 = vpack.c.bf16 %v2850_v45, %v2849_v25  ;;  %v2852_v20 = vld [vmem:[#allocation8 + $0x248] sm:$0xff]  ;;  %v2869_v45 = vld [vmem:[#allocation8 + $0x2d0] sm:$0xff] }
 0x253   : > { %v2342_v36 = vadd.f32 %v2341_v9, %v2311_v8  ;;  %v7464_v40 = vadd.f32 %v7399_v5, %v2205_v61  ;;  %v2274_v12 = vadd.f32 %v2273_v16, %v7443_v17  ;;  %v1875_v62 = vpop.f32.mrb[120].mxu1  ;;  %v2081_v15 = vadd.f32 %v2080_v63, %v7401_v4  ;;  %5912 = vmatpush3.bf16.msra.mxu1 %v5909_v32  ;;  %v2851_v61 = vld [vmem:[#allocation8 + $0x240] sm:$0xff] }
 0x254   : > { %v2208_v27 = vadd.f32 %v2086_v19, %v7294_v55  ;;  %v1877_v34 = vpop.f32.mrb[121].mxu1  ;;  %v2314_v4 = vmul.f32 %v7460_v28, %v7460_v28  ;;  %5884 = vmatpush1.bf16.msra.mxu0 %v5883_v60  ;;  %v5913_v9 = vpack.c.bf16 %v2868_v52, %v2867_v29  ;;  %v5886_v25 = vpack.c.bf16 %v2852_v20, %v2851_v61  ;;  %v2856_v20 = vld [vmem:[#allocation8 + $0x268] sm:$0xff] }
 0x255   : > { %v2275_v3 = vadd.f32 %v2274_v12, %v7464_v40  ;;  %v2313_v43 = vmul.f32 %v7464_v40, %v7464_v40  ;;  %v2343_v7 = vadd.f32 %v2342_v36, %v2312_v59  ;;  %v2207_v38 = vadd.f32 %v2081_v15, %v7297_v57  ;;  %v5338_v30 = vpop.f32.mrb[106].mxu0  ;;  %5885 = vmatprep.subr.bf16.mxu0 %v6330_v0  ;;  %v2870_v36 = vld [vmem:[#allocation8 + $0x2d8] sm:$0xff]  ;;  %v2853_v12 = vld [vmem:[#allocation8 + $0x250] sm:$0xff] }
 0x256   : > { %v7477_v55 = vadd.f32 %v7399_v5, %v2208_v27  ;;  %v2096_v16 = vadd.f32 %v5338_v30, %v1870_v1  ;;  %v2090_v8 = vpop.f32.mrb[107].mxu0  ;;  %5914 = vmatprep.subr.bf16.mxu1 %v5913_v9  ;;  %v5917_v29 = vpack.c.bf16 %v2870_v36, %v2869_v45 }
 0x257   : > { %v2344_v54 = vadd.f32 %v2343_v7, %v2313_v43  ;;  %v7480_v2 = vadd.f32 %v7399_v5, %v2207_v38  ;;  %v2276_v57 = vadd.f32 %v2275_v3, %v7460_v28  ;;  %v1880_v59 = vpop.f32.mrb[122].mxu1  ;;  %v2091_v19 = vadd.f32 %v2090_v8, %v7432_v39  ;;  %5916 = vmatpush3.bf16.msra.mxu1 %v5913_v9  ;;  %v2854_v3 = vld [vmem:[#allocation8 + $0x258] sm:$0xff]  ;;  %v2871_v43 = vld [vmem:[#allocation8 + $0x2e0] sm:$0xff]  ;;  %v2872_v7 = vld [vmem:[#allocation8 + $0x2e8] sm:$0xff] }
 0x258   : > { %v2316_v63 = vmul.f32 %v7477_v55, %v7477_v55  ;;  %v2210_v1 = vadd.f32 %v2096_v16, %v7302_v50  ;;  %v1882_v32 = vpop.f32.mrb[123].mxu1  ;;  %5887 = vmatpush1.bf16.msra.mxu0 %v5886_v25  ;;  %v5889_v52 = vpack.c.bf16 %v2854_v3, %v2853_v12  ;;  %v2855_v16 = vld [vmem:[#allocation8 + $0x260] sm:$0xff]  ;;  %5918 = vmatprep.subr.bf16.mxu1 %v5917_v29 }
 0x259   : > { %v2277_v15 = vadd.f32 %v2276_v57, %v7480_v2  ;;  %v2315_v27 = vmul.f32 %v7480_v2, %v7480_v2  ;;  %v2345_v34 = vadd.f32 %v2344_v54, %v2314_v4  ;;  %v2209_v39 = vadd.f32 %v2091_v19, %v7305_v37  ;;  %v5341_v60 = vpop.f32.mrb[108].mxu0  ;;  %5888 = vmatprep.subr.bf16.mxu0 %v6330_v0  ;;  %v2873_v54 = vld [vmem:[#allocation8 + $0x2f0] sm:$0xff]  ;;  %v2874_v57 = vld [vmem:[#allocation8 + $0x2f8] sm:$0xff] }
 0x25a   : > { %v7493_v50 = vadd.f32 %v7399_v5, %v2210_v1  ;;  %v2106_v38 = vadd.f32 %v5341_v60, %v1880_v59  ;;  %v2100_v30 = vpop.f32.mrb[109].mxu0  ;;  %v5921_v1 = vpack.c.bf16 %v2872_v7, %v2871_v43 }
 0x25b   : > { %v2346_v8 = vadd.f32 %v2345_v34, %v2315_v27  ;;  %v7496_v61 = vadd.f32 %v7399_v5, %v2209_v39  ;;  %v2278_v37 = vadd.f32 %v2277_v15, %v7477_v55  ;;  %v1885_v4 = vpop.f32.mrb[124].mxu1  ;;  %v2101_v9 = vadd.f32 %v2100_v30, %v1875_v62  ;;  %5920 = vmatpush3.bf16.msra.mxu1 %v5917_v29 }
 0x25c   : > { %v2212_v59 = vadd.f32 %v2106_v38, %v7310_v41  ;;  %v1887_v19 = vpop.f32.mrb[125].mxu1  ;;  %5890 = vmatpush1.bf16.msra.mxu0 %v5889_v52  ;;  %5922 = vmatprep.subr.bf16.mxu1 %v5921_v1  ;;  %v5892_v15 = vpack.c.bf16 %v2856_v20, %v2855_v16  ;;  %v5925_v27 = vpack.c.bf16 %v2874_v57, %v2873_v54 }
 0x25d   : > { %v2279_v32 = vadd.f32 %v2278_v37, %v7496_v61  ;;  %v2317_v25 = vmul.f32 %v7496_v61, %v7496_v61  ;;  %v2347_v45 = vadd.f32 %v2346_v8, %v2316_v63  ;;  %v2211_v36 = vadd.f32 %v2101_v9, %v7313_v46  ;;  %v5344_v12 = vpop.f32.mrb[110].mxu0  ;;  %5891 = vmatprep.subr.bf16.mxu0 %v6330_v0  ;;  %v2857_v63 = vld [vmem:[#allocation8 + $0x270] sm:$0xff]  ;;  %v2858_v46 = vld [vmem:[#allocation8 + $0x278] sm:$0xff]  ;;  %v2714_v8 = vld [vmem:[#allocation8 + $0x100] sm:$0xff] }
 0x25e   : > { %v2110_v62 = vpop.f32.mrb[111].mxu0  ;;  %v2318_v41 = vmul.f32 %v7493_v50, %v7493_v50  ;;  %v2715_v37 = vld [vmem:[#allocation8 + $0x108] sm:$0xff]  ;;  %v5895_v20 = vpack.c.bf16 %v2858_v46, %v2857_v63  ;;  %v7517_v54 = vadd.f32 %v7399_v5, %v2212_v59 }
 0x25f   : > { %v2348_v34 = vadd.f32 %v2347_v45, %v2317_v25  ;;  %v7508_v39 = vadd.f32 %v7399_v5, %v2211_v36  ;;  %v1890_v60 = vpop.f32.mrb[126].mxu1  ;;  %v2111_v3 = vadd.f32 %v2110_v62, %v1885_v4  ;;  %v2280_v43 = vadd.f32 %v2279_v32, %v7493_v50  ;;  %5924 = vmatpush3.bf16.msra.mxu1 %v5921_v1 }
 0x260   : > { %v2116_v7 = vadd.f32 %v5344_v12, %v1890_v60  ;;  %v1892_v38 = vpop.f32.mrb[127].mxu1  ;;  %5893 = vmatpush1.bf16.msra.mxu0 %v5892_v15  ;;  %5926 = vmatprep.subr.bf16.mxu1 %v5925_v27  ;;  %v7520_v19 = vpack.c.bf16 %v2715_v37, %v2714_v8  ;;  %v2320_v59 = vmul.f32 %v7517_v54, %v7517_v54 }
 0x261   : > { %v2319_v30 = vmul.f32 %v7508_v39, %v7508_v39  ;;  %v2349_v29 = vadd.f32 %v2348_v34, %v2318_v41  ;;  %v2213_v52 = vadd.f32 %v2111_v3, %v7322_v21  ;;  %v5347_v16 = vpop.f32.mrb[112].mxu0  ;;  %5894 = vmatprep.subr.bf16.mxu0 %v6330_v0  ;;  %v2281_v21 = vadd.f32 %v2280_v43, %v7508_v39 }
 0x262   : > { %v2214_v4 = vadd.f32 %v2116_v7, %v7319_v33  ;;  %v2120_v9 = vpop.f32.mrb[113].mxu0 }
 0x263   : > { %v1895_v57 = vpop.f32.mrb[128].mxu1  ;;  %v2350_v25 = vadd.f32 %v2349_v29, %v2319_v30  ;;  %v7524_v45 = vadd.f32 %v7399_v5, %v2213_v52  ;;  %5928 = vmatpush3.bf16.msra.mxu1 %v5925_v27  ;;  %v2282_v15 = vadd.f32 %v2281_v21, %v7517_v54 }
 0x264   : > { %v2121_v32 = vadd.f32 %v2120_v9, %v1895_v57  ;;  %v1897_v1 = vpop.f32.mrb[129].mxu1  ;;  %5896 = vmatpush1.bf16.msra.mxu0 %v5895_v20  ;;  %5929 = vmatprep.subr.bf16.mxu1 %v6330_v0  ;;  %v7536_v46 = vadd.f32 %v7399_v5, %v2214_v4 }
 0x265   : > { %v5350_v33 = vpop.f32.mrb[114].mxu0  ;;  %5978 = vmatprep.subr.bf16.mxu0 %v7520_v19  ;;  %v2321_v60 = vmul.f32 %v7524_v45, %v7524_v45  ;;  %v2351_v27 = vadd.f32 %v2350_v25, %v2320_v59  ;;  %v2283_v7 = vadd.f32 %v2282_v15, %v7524_v45 }
 0x266   : > { %v2215_v36 = vadd.f32 %v2121_v32, %v7331_v18  ;;  %v2130_v12 = vpop.f32.mrb[115].mxu0 }
 0x267   : > { %v1900_v62 = vpop.f32.mrb[130].mxu1  ;;  %v2352_v29 = vadd.f32 %v2351_v27, %v2321_v60  ;;  %v2284_v20 = vadd.f32 %v2283_v7, %v7536_v46 }
 0x268   : > { %v2126_v41 = vadd.f32 %v5347_v16, %v1900_v62  ;;  %v1902_v34 = vpop.f32.mrb[131].mxu1  ;;  %v7540_v52 = vadd.f32 %v7399_v5, %v2215_v36 }
 0x269   : > { %v5353_v3 = vpop.f32.mrb[116].mxu0 }
 0x26a   : > { %v2216_v18 = vadd.f32 %v2126_v41, %v7328_v23  ;;  %v2140_v63 = vpop.f32.mrb[117].mxu0  ;;  %v2322_v23 = vmul.f32 %v7536_v46, %v7536_v46  ;;  %v2323_v32 = vmul.f32 %v7540_v52, %v7540_v52  ;;  %v2285_v15 = vadd.f32 %v2284_v20, %v7540_v52 }
 0x26b   : > { %v1905_v43 = vpop.f32.mrb[132].mxu1 }
 0x26c   : > { %v2131_v38 = vadd.f32 %v2130_v12, %v1905_v43  ;;  %v1907_v30 = vpop.f32.mrb[133].mxu1  ;;  %v7546_v9 = vadd.f32 %v7399_v5, %v2216_v18  ;;  %v2353_v1 = vadd.f32 %v2352_v29, %v2322_v23 }
 0x26d   : > { %v5356_v16 = vpop.f32.mrb[118].mxu0 }
 0x26e   : > { %v2217_v8 = vadd.f32 %v2131_v38, %v7339_v10  ;;  %v2150_v37 = vpop.f32.mrb[119].mxu0  ;;  %v2324_v59 = vmul.f32 %v7546_v9, %v7546_v9  ;;  %v2354_v60 = vadd.f32 %v2353_v1, %v2323_v32  ;;  %v2286_v18 = vadd.f32 %v2285_v15, %v7546_v9 }
 0x26f   : > { %v1910_v4 = vpop.f32.mrb[134].mxu1 }
 0x270   : > { %v2136_v57 = vadd.f32 %v5350_v33, %v1910_v4  ;;  %v1912_v21 = vpop.f32.mrb[135].mxu1  ;;  %v7552_v36 = vadd.f32 %v7399_v5, %v2217_v8  ;;  %v2355_v38 = vadd.f32 %v2354_v60, %v2324_v59 }
 0x271   : > { %v5359_v25 = vpop.f32.mrb[120].mxu0 }
 0x272   : > { %v2218_v10 = vadd.f32 %v2136_v57, %v7336_v24  ;;  %v2160_v12 = vpop.f32.mrb[121].mxu0  ;;  %v2325_v24 = vmul.f32 %v7552_v36, %v7552_v36  ;;  %v2287_v29 = vadd.f32 %v2286_v18, %v7552_v36 }
 0x273   : > { %v1915_v62 = vpop.f32.mrb[136].mxu1 }
 0x274   : > { %v7559_v33 = vadd.f32 %v7399_v5, %v2218_v10  ;;  %v2141_v41 = vadd.f32 %v2140_v63, %v1915_v62  ;;  %v1917_v34 = vpop.f32.mrb[137].mxu1  ;;  %v2356_v57 = vadd.f32 %v2355_v38, %v2325_v24 }
 0x275   : > { %v7561_v27 = vpop.f32.mrb[122].mxu0 }
 0x276   : > { %v2219_v43 = vadd.f32 %v2141_v41, %v7347_v14  ;;  %v2170_v7 = vpop.f32.mrb[123].mxu0  ;;  %v2326_v8 = vmul.f32 %v7559_v33, %v7559_v33  ;;  %v2288_v21 = vadd.f32 %v2287_v29, %v7559_v33 }
 0x277   : > { %v1920_v30 = vpop.f32.mrb[138].mxu1 }
 0x278   : > { %v7571_v63 = vadd.f32 %v7399_v5, %v2219_v43  ;;  %v2146_v23 = vadd.f32 %v5353_v3, %v1920_v30  ;;  %v1922_v4 = vpop.f32.mrb[139].mxu1  ;;  %v2357_v59 = vadd.f32 %v2356_v57, %v2326_v8 }
 0x279   : > { %v7573_v20 = vpop.f32.mrb[124].mxu0 }
 0x27a   : > { %v2327_v14 = vmul.f32 %v7571_v63, %v7571_v63  ;;  %v2220_v32 = vadd.f32 %v2146_v23, %v7344_v13  ;;  %v2180_v1 = vpop.f32.mrb[125].mxu0  ;;  %v2289_v62 = vadd.f32 %v2288_v21, %v7571_v63 }
 0x27b   : > { %v1925_v10 = vpop.f32.mrb[140].mxu1 }
 0x27c   : > { %v7581_v15 = vadd.f32 %v7399_v5, %v2220_v32  ;;  %v2151_v3 = vadd.f32 %v2150_v37, %v1925_v10  ;;  %v1927_v41 = vpop.f32.mrb[141].mxu1  ;;  %v2358_v60 = vadd.f32 %v2357_v59, %v2327_v14 }
 0x27d   : > { %v7583_v34 = vpop.f32.mrb[126].mxu0 }
 0x27e   : > { %v2290_v18 = vadd.f32 %v2289_v62, %v7581_v15  ;;  %v2328_v24 = vmul.f32 %v7581_v15, %v7581_v15  ;;  %v2221_v13 = vadd.f32 %v2151_v3, %v7356_v56  ;;  %v2190_v43 = vpop.f32.mrb[127].mxu0 }
 0x27f   : > { %v1930_v38 = vpop.f32.mrb[142].mxu1 }
 0x280   : > { %v2359_v30 = vadd.f32 %v2358_v60, %v2328_v24  ;;  %v7590_v29 = vadd.f32 %v7399_v5, %v2221_v13  ;;  %v2156_v8 = vadd.f32 %v5356_v16, %v1930_v38  ;;  %v1932_v23 = vpop.f32.mrb[143].mxu1 }
 0x282   : > { %v2291_v37 = vadd.f32 %v2290_v18, %v7590_v29  ;;  %v2329_v4 = vmul.f32 %v7590_v29, %v7590_v29  ;;  %v2222_v57 = vadd.f32 %v2156_v8, %v7352_v51 }
 0x283   : > { %v1935_v21 = vpop.f32.mrb[144].mxu1 }
 0x284   : > { %v2360_v14 = vadd.f32 %v2359_v30, %v2329_v4  ;;  %v7597_v32 = vadd.f32 %v7399_v5, %v2222_v57  ;;  %v2161_v56 = vadd.f32 %v2160_v12, %v1935_v21  ;;  %v1937_v10 = vpop.f32.mrb[145].mxu1 }
 0x286   : > { %v2292_v59 = vadd.f32 %v2291_v37, %v7597_v32  ;;  %v2330_v16 = vmul.f32 %v7597_v32, %v7597_v32  ;;  %v2223_v62 = vadd.f32 %v2161_v56, %v7365_v11 }
 0x287   : > { %v1940_v3 = vpop.f32.mrb[146].mxu1 }
 0x288   : > { %v2361_v41 = vadd.f32 %v2360_v14, %v2330_v16  ;;  %v7604_v60 = vadd.f32 %v7399_v5, %v2223_v62  ;;  %v2166_v51 = vadd.f32 %v5359_v25, %v1940_v3  ;;  %v1942_v18 = vpop.f32.mrb[147].mxu1 }
 0x28a   : > { %v2293_v24 = vadd.f32 %v2292_v59, %v7604_v60  ;;  %v2331_v12 = vmul.f32 %v7604_v60, %v7604_v60  ;;  %v2224_v13 = vadd.f32 %v2166_v51, %v7361_v6 }
 0x28b   : > { %v1945_v38 = vpop.f32.mrb[148].mxu1 }
 0x28c   : > { %v2362_v30 = vadd.f32 %v2361_v41, %v2331_v12  ;;  %v7611_v8 = vadd.f32 %v7399_v5, %v2224_v13  ;;  %v2171_v11 = vadd.f32 %v2170_v7, %v1945_v38  ;;  %v1947_v23 = vpop.f32.mrb[149].mxu1 }
 0x28e   : > { %v2294_v37 = vadd.f32 %v2293_v24, %v7611_v8  ;;  %v2332_v25 = vmul.f32 %v7611_v8, %v7611_v8  ;;  %v2225_v4 = vadd.f32 %v2171_v11, %v7374_v53 }
 0x28f   : > { %v1950_v57 = vpop.f32.mrb[150].mxu1 }
 0x290   : > { %v2363_v21 = vadd.f32 %v2362_v30, %v2332_v25  ;;  %v7618_v14 = vadd.f32 %v7399_v5, %v2225_v4  ;;  %v2176_v6 = vadd.f32 %v7561_v27, %v1950_v57  ;;  %v1952_v56 = vpop.f32.mrb[151].mxu1 }
 0x292   : > { %v2295_v10 = vadd.f32 %v2294_v37, %v7618_v14  ;;  %v2333_v7 = vmul.f32 %v7618_v14, %v7618_v14  ;;  %v2226_v59 = vadd.f32 %v2176_v6, %v7370_v44 }
 0x293   : > { %v1955_v16 = vpop.f32.mrb[152].mxu1 }
 0x294   : > { %v2364_v62 = vadd.f32 %v2363_v21, %v2333_v7  ;;  %v7626_v3 = vadd.f32 %v7399_v5, %v2226_v59  ;;  %v2181_v53 = vadd.f32 %v2180_v1, %v1955_v16  ;;  %v1957_v41 = vpop.f32.mrb[153].mxu1 }
 0x296   : > { %v2296_v51 = vadd.f32 %v2295_v10, %v7626_v3  ;;  %v2334_v27 = vmul.f32 %v7626_v3, %v7626_v3  ;;  %v2227_v18 = vadd.f32 %v2181_v53, %v7381_v26 }
 0x297   : > { %v1960_v24 = vpop.f32.mrb[154].mxu1 }
 0x298   : > { %v2365_v12 = vadd.f32 %v2364_v62, %v2334_v27  ;;  %v7633_v13 = vadd.f32 %v7399_v5, %v2227_v18  ;;  %v2186_v44 = vadd.f32 %v7573_v20, %v1960_v24  ;;  %v1962_v38 = vpop.f32.mrb[155].mxu1 }
 0x29a   : > { %v2297_v30 = vadd.f32 %v2296_v51, %v7633_v13  ;;  %v2335_v1 = vmul.f32 %v7633_v13, %v7633_v13  ;;  %v2228_v11 = vadd.f32 %v2186_v44, %v7377_v48 }
 0x29b   : > { %v1965_v23 = vpop.f32.mrb[156].mxu1 }
 0x29c   : > { %v2366_v37 = vadd.f32 %v2365_v12, %v2335_v1  ;;  %v7641_v25 = vadd.f32 %v7399_v5, %v2228_v11  ;;  %v2191_v26 = vadd.f32 %v2190_v43, %v1965_v23  ;;  %v1967_v4 = vpop.f32.mrb[157].mxu1 }
 0x29e   : > { %v2298_v57 = vadd.f32 %v2297_v30, %v7641_v25  ;;  %v2336_v20 = vmul.f32 %v7641_v25, %v7641_v25  ;;  %v2229_v21 = vadd.f32 %v2191_v26, %v7390_v58 }
 0x29f   : > { %v1970_v6 = vpop.f32.mrb[158].mxu1 }
 0x2a0   : > { %v2367_v56 = vadd.f32 %v2366_v37, %v2336_v20  ;;  %v7648_v10 = vadd.f32 %v7399_v5, %v2229_v21  ;;  %v2196_v48 = vadd.f32 %v7583_v34, %v1970_v6  ;;  %v1972_v7 = vpop.f32.mrb[159].mxu1 }
 0x2a2   : > { %v2299_v59 = vadd.f32 %v2298_v57, %v7648_v10  ;;  %v2337_v43 = vmul.f32 %v7648_v10, %v7648_v10  ;;  %v2230_v16 = vadd.f32 %v2196_v48, %v7386_v49 }
 0x2a4   : > { %v2368_v62 = vadd.f32 %v2367_v56, %v2337_v43  ;;  %v2269_v53 = vadd.f32 %v7399_v5, %v2230_v16 }
 0x2a6   : > { %v2300_v41 = vadd.f32 %v2299_v59, %v2269_v53  ;;  %v2338_v58 = vmul.f32 %v2269_v53, %v2269_v53 }
 0x2a8   : > { %v2301_v51 = vrot.slane %v2300_v41, 4  ;;  %v2369_v27 = vadd.f32 %v2368_v62, %v2338_v58 }
 0x2aa   : > { %v2302_v18 = vadd.f32 %v2301_v51, %v2300_v41  ;;  %v2370_v24 = vrot.slane %v2369_v27, 4 }
 0x2ac   : > { %v2303_v12 = vrot.slane %v2302_v18, 2  ;;  %v2371_v44 = vadd.f32 %v2370_v24, %v2369_v27 }
 0x2ae   : > { %v2304_v34 = vadd.f32 %v2303_v12, %v2302_v18  ;;  %v2372_v38 = vrot.slane %v2371_v44, 2 }
 0x2b0   : > { %v2305_v30 = vrot.slane %v2304_v34, 1  ;;  %v2373_v1 = vadd.f32 %v2372_v38, %v2371_v44 }
 0x2b2   : > { %v2306_v11 = vadd.f32 %v2305_v30, %v2304_v34  ;;  %v2374_v23 = vrot.slane %v2373_v1, 1 }
 0x2b4   : > { %v2375_v37 = vadd.f32 %v2374_v23, %v2373_v1  ;;  %v7656_v26 = vmul.f32 0.00390625, %v2306_v11 }
 0x2b6   : > { %v2377_v49 = vmul.f32 0.00390625, %v2375_v37  ;;  %v2378_v5 = vmul.f32 %v7656_v26, %v7656_v26  ;;  %v2411_v4 = vsub.f32 %v2269_v53, %v7656_v26  ;;  %v2400_v21 = vsub.f32 %v7571_v63, %v7656_v26 }
 0x2b7   : > { %v2401_v6 = vsub.f32 %v7581_v15, %v7656_v26  ;;  %v2402_v56 = vsub.f32 %v7590_v29, %v7656_v26  ;;  %v2403_v48 = vsub.f32 %v7597_v32, %v7656_v26  ;;  %v2404_v7 = vsub.f32 %v7604_v60, %v7656_v26 }
 0x2b8   : > { %v2379_v57 = vsub.f32 %v2377_v49, %v2378_v5  ;;  %v2405_v59 = vsub.f32 %v7611_v8, %v7656_v26  ;;  %v2406_v43 = vsub.f32 %v7618_v14, %v7656_v26  ;;  %v2407_v63 = vsub.f32 %v7626_v3, %v7656_v26 }
 0x2b9   : > { %v2408_v15 = vsub.f32 %v7633_v13, %v7656_v26  ;;  %v2409_v29 = vsub.f32 %v7641_v25, %v7656_v26  ;;  %v2410_v32 = vsub.f32 %v7648_v10, %v7656_v26  ;;  %v2380_v60 = vsub.f32 %v7412_v47, %v7656_v26 }
 0x2ba   : > { %v2412_v20 = vadd.f32 1e-05, %v2379_v57  ;;  %v2381_v8 = vsub.f32 %v7407_v31, %v7656_v26  ;;  %v2382_v14 = vsub.f32 %v7430_v22, %v7656_v26  ;;  %v2383_v3 = vsub.f32 %v7424_v42, %v7656_v26 }
 0x2bb   : > { %v2384_v13 = vsub.f32 %v7448_v35, %v7656_v26  ;;  %v2385_v25 = vsub.f32 %v7443_v17, %v7656_v26  ;;  %v2386_v10 = vsub.f32 %v7464_v40, %v7656_v26  ;;  %v2387_v47 = vsub.f32 %v7460_v28, %v7656_v26 }
 0x2bc   : > { %6161 = vrsqrt.f32 %v2412_v20  ;;  %v2388_v31 = vsub.f32 %v7480_v2, %v7656_v26  ;;  %v2389_v22 = vsub.f32 %v7477_v55, %v7656_v26  ;;  %v2390_v42 = vsub.f32 %v7496_v61, %v7656_v26 }
 0x2bd   : > { %v2391_v35 = vsub.f32 %v7493_v50, %v7656_v26  ;;  %v2392_v17 = vsub.f32 %v7508_v39, %v7656_v26  ;;  %v2393_v40 = vsub.f32 %v7517_v54, %v7656_v26  ;;  %v2394_v28 = vsub.f32 %v7524_v45, %v7656_v26 }
 0x2be   : > { %v2395_v2 = vsub.f32 %v7536_v46, %v7656_v26  ;;  %v2396_v55 = vsub.f32 %v7540_v52, %v7656_v26  ;;  %v2397_v61 = vsub.f32 %v7546_v9, %v7656_v26  ;;  %v2398_v50 = vsub.f32 %v7552_v36, %v7656_v26 }
 0x2bf   : > { %v2399_v39 = vsub.f32 %v7559_v33, %v7656_v26 }
 0x2c6   : > { %v6162_v16 = vpop.eup %6161 }
 0x2c7   : > { %v2445_v54 = vmul.f32 %v6162_v16, %v2411_v4  ;;  %v2414_v62 = vmul.f32 %v6162_v16, %v2380_v60  ;;  %v2415_v53 = vmul.f32 %v6162_v16, %v2381_v8  ;;  %v2416_v45 = vmul.f32 %v6162_v16, %v2382_v14 }
 0x2c8   : > { %v2417_v41 = vmul.f32 %v6162_v16, %v2383_v3  ;;  %v2418_v58 = vmul.f32 %v6162_v16, %v2384_v13  ;;  %v2419_v46 = vmul.f32 %v6162_v16, %v2385_v25  ;;  %v2420_v51 = vmul.f32 %v6162_v16, %v2386_v10 }
 0x2c9   : > { %v2477_v27 = vmax.f32 %v2445_v54, 0.0  ;;  %v7723_v18 = vmul.f32 %v6162_v16, %v2387_v47  ;;  %v7725_v52 = vmul.f32 %v6162_v16, %v2388_v31  ;;  %v7727_v9 = vmul.f32 %v6162_v16, %v2389_v22 }
 0x2ca   : > { %v7729_v24 = vmul.f32 %v6162_v16, %v2390_v42  ;;  %v7731_v36 = vmul.f32 %v6162_v16, %v2391_v35  ;;  %v7733_v33 = vmul.f32 %v6162_v16, %v2392_v17  ;;  %v7735_v12 = vmul.f32 %v6162_v16, %v2393_v40 }
 0x2cb   : > { %2509 = vst [vmem:[#allocation2 + $0x189] sm:$0xff] %v2477_v27  ;;  %v7737_v44 = vmul.f32 %v6162_v16, %v2394_v28  ;;  %v7739_v34 = vmul.f32 %v6162_v16, %v2395_v2  ;;  %v7741_v38 = vmul.f32 %v6162_v16, %v2396_v55  ;;  %v7743_v30 = vmul.f32 %v6162_v16, %v2397_v61 }
 0x2cc   : > { %v7745_v1 = vmul.f32 %v6162_v16, %v2398_v50  ;;  %v7747_v11 = vmul.f32 %v6162_v16, %v2399_v39  ;;  %v7749_v23 = vmul.f32 %v6162_v16, %v2400_v21  ;;  %v7751_v37 = vmul.f32 %v6162_v16, %v2401_v6 }
 0x2cd   : > { %v7753_v26 = vmul.f32 %v6162_v16, %v2402_v56  ;;  %v7755_v49 = vmul.f32 %v6162_v16, %v2403_v48  ;;  %v7757_v5 = vmul.f32 %v6162_v16, %v2404_v7  ;;  %v7759_v4 = vmul.f32 %v6162_v16, %v2405_v59 }
 0x2ce   : > { %v7761_v57 = vmul.f32 %v6162_v16, %v2406_v43  ;;  %v7763_v20 = vmul.f32 %v6162_v16, %v2407_v63  ;;  %v7765_v60 = vmul.f32 %v6162_v16, %v2408_v15  ;;  %v7767_v8 = vmul.f32 %v6162_v16, %v2409_v29 }
 0x2cf   : > { %v7769_v21 = vmul.f32 %v6162_v16, %v2410_v32  ;;  %v7771_v6 = vmax.f32 %v2414_v62, 0.0  ;;  %v7773_v56 = vmax.f32 %v2415_v53, 0.0  ;;  %v7775_v48 = vmax.f32 %v2416_v45, 0.0 }
 0x2d0   : > { %v7777_v7 = vmax.f32 %v2417_v41, 0.0  ;;  %v7779_v59 = vmax.f32 %v2418_v58, 0.0  ;;  %v7781_v43 = vmax.f32 %v2419_v46, 0.0  ;;  %v7783_v63 = vmax.f32 %v2420_v51, 0.0 }
 0x2d1   : > { %v2453_v15 = vmax.f32 %v7723_v18, 0.0  ;;  %v9118_v29 = vmax.f32 %v7725_v52, 0.0  ;;  %v9117_v32 = vmax.f32 %v7727_v9, 0.0  ;;  %v9116_v14 = vmax.f32 %v7729_v24, 0.0  ;;  %2478 = vst [vmem:[#allocation2 + $0x19] sm:$0xff] %v7771_v6  ;;  %2479 = vst [vmem:[#allocation2 + $0x21] sm:$0xff] %v7773_v56  ;;  %2939 = vmatprep.mubr.f32.mxu0 %v7771_v6 }
 0x2d2   : > { %2480 = vst [vmem:[#allocation2 + $0x31] sm:$0xff] %v7775_v48  ;;  %2510 = vst [vmem:[#allocation2 + $0x1] sm:$0xff] %v7775_v48  ;;  %v9115_v3 = vmax.f32 %v7731_v36, 0.0  ;;  %v9114_v13 = vmax.f32 %v7733_v33, 0.0  ;;  %v9113_v25 = vmax.f32 %v7735_v12, 0.0  ;;  %v9112_v10 = vmax.f32 %v7737_v44, 0.0 }
 0x2d3   : > { %2481 = vst [vmem:[#allocation2 + $0x39] sm:$0xff] %v7777_v7  ;;  %2482 = vst [vmem:[#allocation2 + $0x49] sm:$0xff] %v7779_v59  ;;  %v2566_v47 = vld [vmem:[#allocation2 + $0x18f] sm:$0x1]  ;;  %v9111_v31 = vmax.f32 %v7739_v34, 0.0  ;;  %v9110_v22 = vmax.f32 %v7741_v38, 0.0 }
 0x2d4   : > { %2483 = vst [vmem:[#allocation2 + $0x51] sm:$0xff] %v7781_v43  ;;  %2484 = vst [vmem:[#allocation2 + $0x61] sm:$0xff] %v7783_v63  ;;  %v9109_v42 = vmax.f32 %v7743_v30, 0.0  ;;  %v9108_v35 = vmax.f32 %v7745_v1, 0.0  ;;  %v9107_v17 = vmax.f32 %v7747_v11, 0.0  ;;  %v9106_v40 = vmax.f32 %v7749_v23, 0.0 }
 0x2d5   : > { %2511 = vst [vmem:[#allocation2 + $0x9] sm:$0xff] %v7777_v7  ;;  %2485 = vst [vmem:[#allocation2 + $0x69] sm:$0xff] %v2453_v15  ;;  %v9105_v28 = vmax.f32 %v7751_v37, 0.0  ;;  %v9104_v2 = vmax.f32 %v7753_v26, 0.0  ;;  %v9103_v16 = vmax.f32 %v7755_v49, 0.0  ;;  %v9102_v55 = vmax.f32 %v7757_v5, 0.0 }
 0x2d6   : > { %2486 = vst [vmem:[#allocation2 + $0x79] sm:$0xff] %v9118_v29  ;;  %2487 = vst [vmem:[#allocation2 + $0x81] sm:$0xff] %v9117_v32  ;;  %v9101_v61 = vmax.f32 %v7759_v4, 0.0  ;;  %v9100_v50 = vmax.f32 %v7761_v57, 0.0  ;;  %v9099_v39 = vmax.f32 %v7763_v20, 0.0  ;;  %v2474_v54 = vmax.f32 %v7765_v60, 0.0 }
 0x2d7   : > { %2488 = vst [vmem:[#allocation2 + $0x91] sm:$0xff] %v9116_v14  ;;  %2584 = vst [vmem:[#allocation2 + $0x191] sm:$0x1] %v2566_v47  ;;  %v2475_v62 = vmax.f32 %v7767_v8, 0.0  ;;  %v2476_v53 = vmax.f32 %v7769_v21, 0.0  ;;  %v2682_v60 = vld [vmem:[#allocation8] sm:$0xff] }
 0x2d8   : > { %2489 = vst [vmem:[#allocation2 + $0x99] sm:$0xff] %v9115_v3  ;;  %2490 = vst [vmem:[#allocation2 + $0xa9] sm:$0xff] %v9114_v13  ;;  %v7861_v45 = vld [vmem:[#allocation2 + $0x1a] sm:$0xff]  ;;  %v2551_v58 = vld [vmem:[#allocation2 + $0x27] sm:$0x1] }
 0x2d9   : > { %2491 = vst [vmem:[#allocation2 + $0xb1] sm:$0xff] %v9113_v25  ;;  %2492 = vst [vmem:[#allocation2 + $0xc1] sm:$0xff] %v9112_v10  ;;  %v2515_v41 = vld [vmem:[#allocation2 + $0x1a] sm:$0x1]  ;;  %5401 = vmatprep.mubr.f32.mxu1 %v7861_v45  ;;  %v2516_v51 = vld [vmem:[#allocation2 + $0x32] sm:$0x1] }
 0x2da   : > { %2493 = vst [vmem:[#allocation2 + $0xc9] sm:$0xff] %v9111_v31  ;;  %2494 = vst [vmem:[#allocation2 + $0xd9] sm:$0xff] %v9110_v22  ;;  %v2552_v46 = vld [vmem:[#allocation2 + $0x3f] sm:$0x1]  ;;  %v2517_v47 = vld [vmem:[#allocation2 + $0x4a] sm:$0x1] }
 0x2db   : > { %2495 = vst [vmem:[#allocation2 + $0xe1] sm:$0xff] %v9109_v42  ;;  %2496 = vst [vmem:[#allocation2 + $0xf1] sm:$0xff] %v9108_v35  ;;  %v2553_v27 = vld [vmem:[#allocation2 + $0x57] sm:$0x1]  ;;  %v2683_v21 = vld [vmem:[#allocation8 + $0x8] sm:$0xff] }
 0x2dc   : > { %2497 = vst [vmem:[#allocation2 + $0xf9] sm:$0xff] %v9107_v17  ;;  %2498 = vst [vmem:[#allocation2 + $0x109] sm:$0xff] %v9106_v40  ;;  %v2554_v8 = vld [vmem:[#allocation2 + $0x6f] sm:$0x1]  ;;  %v7897_v22 = vld [vmem:[#allocation2 + $0x38] sm:$0xff] }
 0x2dd   : > { %2499 = vst [vmem:[#allocation2 + $0x111] sm:$0xff] %v9105_v28  ;;  %2500 = vst [vmem:[#allocation2 + $0x121] sm:$0xff] %v9104_v2  ;;  %v2721_v40 = vld [vmem:[#allocation8 + $0x138] sm:$0xff] }
 0x2de   : > { %2501 = vst [vmem:[#allocation2 + $0x129] sm:$0xff] %v9103_v16  ;;  %2502 = vst [vmem:[#allocation2 + $0x139] sm:$0xff] %v9102_v55  ;;  %v2697_v32 = vld [vmem:[#allocation8 + $0x78] sm:$0xff] }
 0x2df   : > { %2503 = vst [vmem:[#allocation2 + $0x141] sm:$0xff] %v9101_v61  ;;  %2504 = vst [vmem:[#allocation2 + $0x151] sm:$0xff] %v9100_v50  ;;  %v2684_v50 = vld [vmem:[#allocation8 + $0x10] sm:$0xff]  ;;  %v2685_v61 = vld [vmem:[#allocation8 + $0x18] sm:$0xff] }
 0x2e0   : > { %2505 = vst [vmem:[#allocation2 + $0x159] sm:$0xff] %v9099_v39  ;;  %2506 = vst [vmem:[#allocation2 + $0x169] sm:$0xff] %v2474_v54  ;;  %v2556_v39 = vld [vmem:[#allocation2 + $0x9f] sm:$0x1]  ;;  %v2521_v17 = vld [vmem:[#allocation2 + $0xaa] sm:$0x1] }
 0x2e1   : > { %2507 = vst [vmem:[#allocation2 + $0x171] sm:$0xff] %v2475_v62  ;;  %2508 = vst [vmem:[#allocation2 + $0x181] sm:$0xff] %v2476_v53  ;;  %v2717_v53 = vld [vmem:[#allocation8 + $0x118] sm:$0xff] }
 0x2e2   : > { %2512 = vst [vmem:[#allocation2 + $0x199] sm:$0xff] %v2474_v54  ;;  %2513 = vst [vmem:[#allocation2 + $0x1a1] sm:$0xff] %v2475_v62  ;;  %v2555_v54 = vld [vmem:[#allocation2 + $0x87] sm:$0x1]  ;;  %v7949_v18 = vld [vmem:[#allocation2 + $0xda] sm:$0xff] }
 0x2e3   : > { %2533 = vst [vmem:[#allocation2 + $0x18] sm:$0x1] %v2515_v41  ;;  %2569 = vst [vmem:[#allocation2 + $0x29] sm:$0x1] %v2551_v58  ;;  %v2716_v62 = vld [vmem:[#allocation8 + $0x110] sm:$0xff] }
 0x2e4   : > { %2570 = vst [vmem:[#allocation2 + $0x41] sm:$0x1] %v2552_v46  ;;  %2534 = vst [vmem:[#allocation2 + $0x30] sm:$0x1] %v2516_v51  ;;  %v2518_v41 = vld [vmem:[#allocation2 + $0x62] sm:$0x1]  ;;  %v5930_v46 = vpack.c.bf16 %v2683_v21, %v2682_v60  ;;  %v5981_v16 = vpack.c.bf16 %v2717_v53, %v2716_v62  ;;  %v5933_v62 = vpack.c.bf16 %v2685_v61, %v2684_v50 }
 0x2e5   : > { %2571 = vst [vmem:[#allocation2 + $0x59] sm:$0x1] %v2553_v27  ;;  %2572 = vst [vmem:[#allocation2 + $0x71] sm:$0x1] %v2554_v8  ;;  %v2557_v58 = vld [vmem:[#allocation2 + $0xb7] sm:$0x1] }
 0x2e6   : > { %2535 = vst [vmem:[#allocation2 + $0x48] sm:$0x1] %v2517_v47  ;;  %2573 = vst [vmem:[#allocation2 + $0x89] sm:$0x1] %v2555_v54  ;;  %v2558_v51 = vld [vmem:[#allocation2 + $0xcf] sm:$0x1] }
 0x2e7   : > { %2574 = vst [vmem:[#allocation2 + $0xa1] sm:$0x1] %v2556_v39  ;;  %2536 = vst [vmem:[#allocation2 + $0x60] sm:$0x1] %v2518_v41  ;;  %v2718_v27 = vld [vmem:[#allocation8 + $0x120] sm:$0xff]  ;;  %v2719_v47 = vld [vmem:[#allocation8 + $0x128] sm:$0xff] }
 0x2e8   : > { %2575 = vst [vmem:[#allocation2 + $0xb9] sm:$0x1] %v2557_v58  ;;  %2576 = vst [vmem:[#allocation2 + $0xd1] sm:$0x1] %v2558_v51  ;;  %v7870_v39 = vld [vmem:[#allocation2 + $0x32] sm:$0xff]  ;;  %v2720_v58 = vld [vmem:[#allocation8 + $0x130] sm:$0xff]  ;;  %v5985_v28 = vpack.c.bf16 %v2719_v47, %v2718_v27 }
 0x2e9   : > { %v2519_v54 = vld [vmem:[#allocation2 + $0x7a] sm:$0x1]  ;;  %v2559_v60 = vld [vmem:[#allocation2 + $0xe7] sm:$0x1]  ;;  %v2686_v21 = vld [vmem:[#allocation8 + $0x20] sm:$0xff]  ;;  %v5989_v42 = vpack.c.bf16 %v2721_v40, %v2720_v58  ;;  %9148 = vst [vmem:[#allocation15_spill] sm:$0xff] %v7949_v18 }
 0x2ea   : > { %v7864_v55 = vld [vmem:[#allocation2 + $0x18] sm:$0xff]  ;;  %v7866_v8 = vld [vmem:[#allocation2 + $0x22] sm:$0xff]  ;;  %2537 = vst [vmem:[#allocation2 + $0x78] sm:$0x1] %v2519_v54  ;;  %2577 = vst [vmem:[#allocation2 + $0xe9] sm:$0x1] %v2559_v60 }
 0x2eb   : > { %2940 = vmatmul.mubr.f32.vlgmr.msra.gmra.mrb[128].mxu0 %v7864_v55  ;;  %5402 = vmatmul.mubr.f32.vlgmr.msra.gmra.mrb[160].mxu1 %v7866_v8  ;;  %v2687_v53 = vld [vmem:[#allocation8 + $0x28] sm:$0xff]  ;;  %v7875_v51 = vld [vmem:[#allocation2 + $0x20] sm:$0xff]  ;;  %v2561_v61 = vld [vmem:[#allocation2 + $0x117] sm:$0x1]  ;;  %2539 = vst [vmem:[#allocation2 + $0xa8] sm:$0x1] %v2521_v17 }
 0x2ec   : > { %2944 = vmatprep.mubr.f32.mxu0 %v7773_v56  ;;  %5404 = vmatprep.mubr.f32.mxu1 %v7870_v39  ;;  %v2560_v41 = vld [vmem:[#allocation2 + $0xff] sm:$0x1]  ;;  %v2688_v50 = vld [vmem:[#allocation8 + $0x30] sm:$0xff]  ;;  %2579 = vst [vmem:[#allocation2 + $0x119] sm:$0x1] %v2561_v61  ;;  %v7886_v54 = vld [vmem:[#allocation2 + $0x30] sm:$0xff]  ;;  %v5936_v27 = vpack.c.bf16 %v2687_v53, %v2686_v21 }
 0x2ed   : > { %5931 = vmatpush1.bf16.msra.mxu1 %v5930_v46  ;;  %5980 = vmatpush3.bf16.msra.mxu0 %v7520_v19  ;;  %v7877_v2 = vld [vmem:[#allocation2 + $0x3a] sm:$0xff]  ;;  %2578 = vst [vmem:[#allocation2 + $0x101] sm:$0x1] %v2560_v41  ;;  %v7882_v46 = vld [vmem:[#allocation2 + $0x4a] sm:$0xff]  ;;  %v2520_v19 = vld [vmem:[#allocation2 + $0x92] sm:$0x1] }
 0x2ee   : > { %5932 = vmatprep.subr.bf16.mxu1 %v6330_v0  ;;  %5982 = vmatprep.subr.bf16.mxu0 %v5981_v16  ;;  %2538 = vst [vmem:[#allocation2 + $0x90] sm:$0x1] %v2520_v19  ;;  %v2689_v47 = vld [vmem:[#allocation8 + $0x38] sm:$0xff]  ;;  %v7888_v41 = vld [vmem:[#allocation2 + $0x52] sm:$0xff]  ;;  %v2563_v35 = vld [vmem:[#allocation2 + $0x147] sm:$0x1] }
 0x2ef   : > { %2945 = vmatmul.mubr.f32.gmra.mrb[130].mxu0 %v7875_v51  ;;  %5405 = vmatmul.mubr.f32.gmra.mrb[162].mxu1 %v7877_v2  ;;  %v2562_v60 = vld [vmem:[#allocation2 + $0x12f] sm:$0x1]  ;;  %2581 = vst [vmem:[#allocation2 + $0x149] sm:$0x1] %v2563_v35  ;;  %v2722_v21 = vld [vmem:[#allocation8 + $0x140] sm:$0xff]  ;;  %v5939_v61 = vpack.c.bf16 %v2689_v47, %v2688_v50  ;;  %v2724_v17 = vld [vmem:[#allocation8 + $0x150] sm:$0xff] }
 0x2f0   : > { %2949 = vmatprep.mubr.f32.mxu0 %v7775_v48  ;;  %5407 = vmatprep.mubr.f32.mxu1 %v7882_v46  ;;  %2580 = vst [vmem:[#allocation2 + $0x131] sm:$0x1] %v2562_v60  ;;  %v2690_v53 = vld [vmem:[#allocation8 + $0x40] sm:$0xff]  ;;  %v2564_v19 = vld [vmem:[#allocation2 + $0x15f] sm:$0x1]  ;;  %v2692_v47 = vld [vmem:[#allocation8 + $0x50] sm:$0xff] }
 0x2f1   : > { %5934 = vmatpush1.bf16.msra.mxu1 %v5933_v62  ;;  %5984 = vmatpush3.bf16.msra.mxu0 %v5981_v16  ;;  %v7893_v62 = vld [vmem:[#allocation2 + $0x62] sm:$0xff]  ;;  %v2723_v16 = vld [vmem:[#allocation8 + $0x148] sm:$0xff]  ;;  %2582 = vst [vmem:[#allocation2 + $0x161] sm:$0x1] %v2564_v19  ;;  %v2565_v58 = vld [vmem:[#allocation2 + $0x177] sm:$0x1] }
 0x2f2   : > { %5935 = vmatprep.subr.bf16.mxu1 %v6330_v0  ;;  %5986 = vmatprep.subr.bf16.mxu0 %v5985_v28  ;;  %v2691_v60 = vld [vmem:[#allocation8 + $0x48] sm:$0xff]  ;;  %v2522_v40 = vld [vmem:[#allocation2 + $0xc2] sm:$0x1]  ;;  %v7899_v31 = vld [vmem:[#allocation2 + $0x6a] sm:$0xff]  ;;  %2583 = vst [vmem:[#allocation2 + $0x179] sm:$0x1] %v2565_v58  ;;  %v5993_v35 = vpack.c.bf16 %v2723_v16, %v2722_v21 }
 0x2f3   : > { %2950 = vmatmul.mubr.f32.gmra.mrb[132].mxu0 %v7886_v54  ;;  %5408 = vmatmul.mubr.f32.gmra.mrb[164].mxu1 %v7888_v41  ;;  %2540 = vst [vmem:[#allocation2 + $0xc0] sm:$0x1] %v2522_v40  ;;  %v7904_v50 = vld [vmem:[#allocation2 + $0x7a] sm:$0xff]  ;;  %v2514_v19 = vld [vmem:[#allocation2 + $0x2] sm:$0x1]  ;;  %v5942_v40 = vpack.c.bf16 %v2691_v60, %v2690_v53  ;;  %v2693_v58 = vld [vmem:[#allocation8 + $0x58] sm:$0xff] }
 0x2f4   : > { %2954 = vmatprep.mubr.f32.mxu0 %v7777_v7  ;;  %5410 = vmatprep.mubr.f32.mxu1 %v7893_v62  ;;  %2532 = vst [vmem:[#allocation2] sm:$0x1] %v2514_v19  ;;  %v2524_v21 = vld [vmem:[#allocation2 + $0xf2] sm:$0x1]  ;;  %v7908_v10 = vld [vmem:[#allocation2 + $0x48] sm:$0xff] }
 0x2f5   : > { %5937 = vmatpush1.bf16.msra.mxu1 %v5936_v27  ;;  %5988 = vmatpush3.bf16.msra.mxu0 %v5985_v28  ;;  %v2523_v28 = vld [vmem:[#allocation2 + $0xda] sm:$0x1]  ;;  %v2725_v27 = vld [vmem:[#allocation8 + $0x158] sm:$0xff]  ;;  %v2726_v16 = vld [vmem:[#allocation8 + $0x160] sm:$0xff]  ;;  %2542 = vst [vmem:[#allocation2 + $0xf0] sm:$0x1] %v2524_v21 }
 0x2f6   : > { %5938 = vmatprep.subr.bf16.mxu1 %v6330_v0  ;;  %5990 = vmatprep.subr.bf16.mxu0 %v5989_v42  ;;  %2541 = vst [vmem:[#allocation2 + $0xd8] sm:$0x1] %v2523_v28  ;;  %v7910_v25 = vld [vmem:[#allocation2 + $0x82] sm:$0xff]  ;;  %v2525_v13 = vld [vmem:[#allocation2 + $0x10a] sm:$0x1]  ;;  %v5997_v3 = vpack.c.bf16 %v2725_v27, %v2724_v17  ;;  %v7915_v53 = vld [vmem:[#allocation2 + $0x92] sm:$0xff]  ;;  %v5945_v28 = vpack.c.bf16 %v2693_v58, %v2692_v47 }
 0x2f7   : > { %2955 = vmatmul.mubr.f32.gmra.mrb[134].mxu0 %v7897_v22  ;;  %5411 = vmatmul.mubr.f32.gmra.mrb[166].mxu1 %v7899_v31  ;;  %2543 = vst [vmem:[#allocation2 + $0x108] sm:$0x1] %v2525_v13  ;;  %v2527_v60 = vld [vmem:[#allocation2 + $0x13a] sm:$0x1]  ;;  %v2694_v19 = vld [vmem:[#allocation8 + $0x60] sm:$0xff]  ;;  %v2728_v47 = vld [vmem:[#allocation8 + $0x170] sm:$0xff] }
 0x2f8   : > { %2959 = vmatprep.mubr.f32.mxu0 %v7779_v59  ;;  %5413 = vmatprep.mubr.f32.mxu1 %v7904_v50  ;;  %v2695_v21 = vld [vmem:[#allocation8 + $0x68] sm:$0xff]  ;;  %2545 = vst [vmem:[#allocation2 + $0x138] sm:$0x1] %v2527_v60  ;;  %v7919_v17 = vld [vmem:[#allocation2 + $0x50] sm:$0xff]  ;;  %v2696_v60 = vld [vmem:[#allocation8 + $0x70] sm:$0xff] }
 0x2f9   : > { %5940 = vmatpush1.bf16.msra.mxu1 %v5939_v61  ;;  %5992 = vmatpush3.bf16.msra.mxu0 %v5989_v42  ;;  %v2526_v42 = vld [vmem:[#allocation2 + $0x122] sm:$0x1]  ;;  %v2727_v61 = vld [vmem:[#allocation8 + $0x168] sm:$0xff]  ;;  %v2528_v14 = vld [vmem:[#allocation2 + $0x152] sm:$0x1]  ;;  %v5948_v58 = vpack.c.bf16 %v2695_v21, %v2694_v19 }
 0x2fa   : > { %5941 = vmatprep.subr.bf16.mxu1 %v6330_v0  ;;  %5994 = vmatprep.subr.bf16.mxu0 %v5993_v35  ;;  %2544 = vst [vmem:[#allocation2 + $0x120] sm:$0x1] %v2526_v42  ;;  %v7921_v27 = vld [vmem:[#allocation2 + $0x9a] sm:$0xff]  ;;  %v6001_v13 = vpack.c.bf16 %v2727_v61, %v2726_v16  ;;  %v7926_v42 = vld [vmem:[#allocation2 + $0xaa] sm:$0xff]  ;;  %2546 = vst [vmem:[#allocation2 + $0x150] sm:$0x1] %v2528_v14 }
 0x2fb   : > { %2960 = vmatmul.mubr.f32.gmra.mrb[136].mxu0 %v7908_v10  ;;  %5414 = vmatmul.mubr.f32.gmra.mrb[168].mxu1 %v7910_v25  ;;  %v7930_v16 = vld [vmem:[#allocation2 + $0x60] sm:$0xff]  ;;  %v7932_v61 = vld [vmem:[#allocation2 + $0xb2] sm:$0xff] }
 0x2fc   : > { %2964 = vmatprep.mubr.f32.mxu0 %v7781_v43  ;;  %5416 = vmatprep.mubr.f32.mxu1 %v7915_v53  ;;  %v7937_v29 = vld [vmem:[#allocation2 + $0xc2] sm:$0xff]  ;;  %v2698_v19 = vld [vmem:[#allocation8 + $0x80] sm:$0xff]  ;;  %v2699_v21 = vld [vmem:[#allocation8 + $0x88] sm:$0xff] }
 0x2fd   : > { %5943 = vmatpush1.bf16.msra.mxu1 %v5942_v40  ;;  %5996 = vmatpush3.bf16.msra.mxu0 %v5993_v35  ;;  %v2729_v40 = vld [vmem:[#allocation8 + $0x178] sm:$0xff]  ;;  %9146 = vst [vmem:[#allocation13_spill] sm:$0xff] %v7937_v29 }
 0x2fe   : > { %5944 = vmatprep.subr.bf16.mxu1 %v6330_v0  ;;  %5998 = vmatprep.subr.bf16.mxu0 %v5997_v3  ;;  %v2529_v35 = vld [vmem:[#allocation2 + $0x16a] sm:$0x1]  ;;  %v6005_v14 = vpack.c.bf16 %v2729_v40, %v2728_v47  ;;  %v2550_v40 = vld [vmem:[#allocation2 + $0xf] sm:$0x1] }
 0x2ff   : > { %2965 = vmatmul.mubr.f32.gmra.mrb[138].mxu0 %v7919_v17  ;;  %5417 = vmatmul.mubr.f32.gmra.mrb[170].mxu1 %v7921_v27  ;;  %2547 = vst [vmem:[#allocation2 + $0x168] sm:$0x1] %v2529_v35  ;;  %v7942_v35 = vld [vmem:[#allocation2 + $0x68] sm:$0xff]  ;;  %2568 = vst [vmem:[#allocation2 + $0x11] sm:$0x1] %v2550_v40  ;;  %v7969_v40 = vld [vmem:[#allocation2 + $0xfa] sm:$0xff] }
 0x300   : > { %2969 = vmatprep.mubr.f32.mxu0 %v7783_v63  ;;  %5419 = vmatprep.mubr.f32.mxu1 %v7926_v42  ;;  %v7944_v47 = vld [vmem:[#allocation2 + $0xca] sm:$0xff]  ;;  %9153 = vst [vmem:[#allocation18_spill] sm:$0xff] %v7969_v40 }
 0x301   : > { %5946 = vmatpush1.bf16.msra.mxu1 %v5945_v28  ;;  %6000 = vmatpush3.bf16.msra.mxu0 %v5997_v3  ;;  %v2530_v28 = vld [vmem:[#allocation2 + $0x182] sm:$0x1]  ;;  %v5951_v3 = vpack.c.bf16 %v2697_v32, %v2696_v60  ;;  %9147 = vst [vmem:[#allocation14_spill] sm:$0xff] %v7944_v47  ;;  %v5954_v32 = vpack.c.bf16 %v2699_v21, %v2698_v19  ;;  %v2702_v19 = vld [vmem:[#allocation8 + $0xa0] sm:$0xff] }
 0x302   : > { %5947 = vmatprep.subr.bf16.mxu1 %v6330_v0  ;;  %6002 = vmatprep.subr.bf16.mxu0 %v6001_v13  ;;  %2548 = vst [vmem:[#allocation2 + $0x180] sm:$0x1] %v2530_v28  ;;  %v7956_v60 = vld [vmem:[#allocation2 + $0xe2] sm:$0xff] }
 0x303   : > { %2970 = vmatmul.mubr.f32.gmra.mrb[140].mxu0 %v7930_v16  ;;  %5420 = vmatmul.mubr.f32.gmra.mrb[172].mxu1 %v7932_v61  ;;  %9150 = vst [vmem:[#allocation16_spill] sm:$0xff] %v7956_v60  ;;  %v2701_v28 = vld [vmem:[#allocation8 + $0x98] sm:$0xff]  ;;  %v7967_v21 = vld [vmem:[#allocation2 + $0x80] sm:$0xff] }
 0x304   : > { %2974 = vmatprep.mubr.f32.mxu0 %v2453_v15  ;;  %5422 = vmatprep.mubr.f32.mxu1 %v7937_v29  ;;  %v9149_v15 = vmax.f32 %v7725_v52, 0.0  ;;  %v7962_v52 = vld [vmem:[#allocation2 + $0xf2] sm:$0xff]  ;;  %v9170_v29 = vmax.f32 %v7741_v38, 0.0  ;;  %v2567_v38 = vld [vmem:[#allocation2 + $0x1a7] sm:$0x1] }
 0x305   : > { %5949 = vmatpush1.bf16.msra.mxu1 %v5948_v58  ;;  %6004 = vmatpush3.bf16.msra.mxu0 %v6001_v13  ;;  %v2700_v13 = vld [vmem:[#allocation8 + $0x90] sm:$0xff]  ;;  %v7954_v58 = vld [vmem:[#allocation2 + $0x78] sm:$0xff]  ;;  %9151 = vst [vmem:[#allocation17_spill] sm:$0xff] %v7962_v52  ;;  %2585 = vst [vmem:[#allocation2 + $0x1a9] sm:$0x1] %v2567_v38  ;;  %v9174_v38 = vmax.f32 %v7749_v23, 0.0 }
 0x306   : > { %5950 = vmatprep.subr.bf16.mxu1 %v6330_v0  ;;  %6006 = vmatprep.subr.bf16.mxu0 %v6005_v14  ;;  %v8076_v23 = vld [vmem:[#allocation2 + $0x110] sm:$0xff] }
 0x307   : > { %2975 = vmatmul.mubr.f32.gmra.mrb[142].mxu0 %v7942_v35  ;;  %5423 = vmatmul.mubr.f32.gmra.mrb[174].mxu1 %v7944_v47  ;;  %v3906_v47 = vld [vmem:[#allocation8 + $0x410] sm:$0xff] }
 0x308   : > { %2979 = vmatprep.mubr.f32.mxu0 %v9149_v15  ;;  %5425 = vmatprep.mubr.f32.mxu1 %v7949_v18  ;;  %v2703_v15 = vld [vmem:[#allocation8 + $0xa8] sm:$0xff]  ;;  %v3904_v18 = vld [vmem:[#allocation8 + $0x400] sm:$0xff] }
 0x309   : > { %5952 = vmatpush1.bf16.msra.mxu1 %v5951_v3  ;;  %6008 = vmatpush3.bf16.msra.mxu0 %v6005_v14  ;;  %v9152_v3 = vmax.f32 %v7727_v9, 0.0  ;;  %v5957_v14 = vpack.c.bf16 %v2701_v28, %v2700_v13  ;;  %v9155_v9 = vmax.f32 %v7729_v24, 0.0  ;;  %v2704_v13 = vld [vmem:[#allocation8 + $0xb0] sm:$0xff]  ;;  %v7979_v28 = vld [vmem:[#allocation2 + $0x90] sm:$0xff]  ;;  %v9158_v24 = vmax.f32 %v7731_v36, 0.0 }
 0x30a   : > { %5953 = vmatprep.subr.bf16.mxu1 %v6330_v0  ;;  %6009 = vmatprep.subr.bf16.mxu0 %v6330_v0  ;;  %v9161_v36 = vmax.f32 %v7733_v33, 0.0  ;;  %v9164_v33 = vmax.f32 %v7735_v12, 0.0  ;;  %v9167_v12 = vmax.f32 %v7737_v44, 0.0  ;;  %v3905_v44 = vld [vmem:[#allocation8 + $0x408] sm:$0xff] }
 0x30b   : > { %2980 = vmatmul.mubr.f32.gmra.mrb[144].mxu0 %v7954_v58  ;;  %5426 = vmatmul.mubr.f32.gmra.mrb[176].mxu1 %v7956_v60  ;;  %v7974_v60 = vld [vmem:[#allocation2 + $0x10a] sm:$0xff] }
 0x30c   : > { %2984 = vmatprep.mubr.f32.mxu0 %v9152_v3  ;;  %5428 = vmatprep.mubr.f32.mxu1 %v7962_v52  ;;  %9154 = vst [vmem:[#allocation19_spill] sm:$0xff] %v7974_v60  ;;  %v7981_v3 = vld [vmem:[#allocation2 + $0x112] sm:$0xff]  ;;  %v2705_v52 = vld [vmem:[#allocation8 + $0xb8] sm:$0xff] }
 0x30d   : > { %5955 = vmatpush1.bf16.msra.mxu1 %v5954_v32  ;;  %v5960_v32 = vpack.c.bf16 %v2703_v15, %v2702_v19  ;;  %9156 = vst [vmem:[#allocation20_spill] sm:$0xff] %v7981_v3  ;;  %v2706_v19 = vld [vmem:[#allocation8 + $0xc0] sm:$0xff]  ;;  %v7991_v15 = vld [vmem:[#allocation2 + $0x98] sm:$0xff] }
 0x30e   : > { %5956 = vmatprep.subr.bf16.mxu1 %v6330_v0 }
 0x30f   : > { %2985 = vmatmul.mubr.f32.gmra.mrb[146].mxu0 %v7967_v21  ;;  %5429 = vmatmul.mubr.f32.gmra.mrb[178].mxu1 %v7969_v40  ;;  %v7986_v40 = vld [vmem:[#allocation2 + $0x122] sm:$0xff] }
 0x310   : > { %2989 = vmatprep.mubr.f32.mxu0 %v9155_v9  ;;  %5431 = vmatprep.mubr.f32.mxu1 %v7974_v60  ;;  %9157 = vst [vmem:[#allocation21_spill] sm:$0xff] %v7986_v40  ;;  %v7993_v9 = vld [vmem:[#allocation2 + $0x12a] sm:$0xff]  ;;  %v2707_v60 = vld [vmem:[#allocation8 + $0xc8] sm:$0xff] }
 0x311   : > { %5958 = vmatpush1.bf16.msra.mxu1 %v5957_v14  ;;  %v5963_v14 = vpack.c.bf16 %v2705_v52, %v2704_v13  ;;  %9159 = vst [vmem:[#allocation22_spill] sm:$0xff] %v7993_v9  ;;  %v5966_v52 = vpack.c.bf16 %v2707_v60, %v2706_v19  ;;  %v8003_v13 = vld [vmem:[#allocation2 + $0xa8] sm:$0xff]  ;;  %v8015_v19 = vld [vmem:[#allocation2 + $0xb0] sm:$0xff] }
 0x312   : > { %5959 = vmatprep.subr.bf16.mxu1 %v6330_v0 }
 0x313   : > { %2990 = vmatmul.mubr.f32.gmra.mrb[148].mxu0 %v7979_v28  ;;  %5432 = vmatmul.mubr.f32.gmra.mrb[180].mxu1 %v7981_v3  ;;  %v7998_v3 = vld [vmem:[#allocation2 + $0x13a] sm:$0xff] }
 0x314   : > { %2994 = vmatprep.mubr.f32.mxu0 %v9158_v24  ;;  %5434 = vmatprep.mubr.f32.mxu1 %v7986_v40  ;;  %9160 = vst [vmem:[#allocation23_spill] sm:$0xff] %v7998_v3  ;;  %v8005_v24 = vld [vmem:[#allocation2 + $0x142] sm:$0xff] }
 0x315   : > { %5961 = vmatpush1.bf16.msra.mxu1 %v5960_v32  ;;  %v2708_v32 = vld [vmem:[#allocation8 + $0xd0] sm:$0xff]  ;;  %9162 = vst [vmem:[#allocation24_spill] sm:$0xff] %v8005_v24  ;;  %v2709_v40 = vld [vmem:[#allocation8 + $0xd8] sm:$0xff] }
 0x316   : > { %5962 = vmatprep.subr.bf16.mxu1 %v6330_v0  ;;  %v5969_v60 = vpack.c.bf16 %v2709_v40, %v2708_v32  ;;  %v8027_v32 = vld [vmem:[#allocation2 + $0xc0] sm:$0xff] }
 0x317   : > { %2995 = vmatmul.mubr.f32.gmra.mrb[150].mxu0 %v7991_v15  ;;  %5435 = vmatmul.mubr.f32.gmra.mrb[182].mxu1 %v7993_v9  ;;  %v8010_v9 = vld [vmem:[#allocation2 + $0x152] sm:$0xff] }
 0x318   : > { %2999 = vmatprep.mubr.f32.mxu0 %v9161_v36  ;;  %5437 = vmatprep.mubr.f32.mxu1 %v7998_v3  ;;  %9163 = vst [vmem:[#allocation25_spill] sm:$0xff] %v8010_v9  ;;  %v8017_v36 = vld [vmem:[#allocation2 + $0x15a] sm:$0xff] }
 0x319   : > { %5964 = vmatpush1.bf16.msra.mxu1 %v5963_v14  ;;  %v2710_v14 = vld [vmem:[#allocation8 + $0xe0] sm:$0xff]  ;;  %9165 = vst [vmem:[#allocation26_spill] sm:$0xff] %v8017_v36  ;;  %v2711_v3 = vld [vmem:[#allocation8 + $0xe8] sm:$0xff] }
 0x31a   : > { %5965 = vmatprep.subr.bf16.mxu1 %v6330_v0  ;;  %v5972_v40 = vpack.c.bf16 %v2711_v3, %v2710_v14  ;;  %v2825_v14 = vld [vmem:[#allocation2 + $0x18a] sm:$0xff] }
 0x31b   : > { %3000 = vmatmul.mubr.f32.gmra.mrb[152].mxu0 %v8003_v13  ;;  %5438 = vmatmul.mubr.f32.gmra.mrb[184].mxu1 %v8005_v24  ;;  %v8022_v24 = vld [vmem:[#allocation2 + $0x16a] sm:$0xff] }
 0x31c   : > { %3004 = vmatprep.mubr.f32.mxu0 %v9164_v33  ;;  %5440 = vmatprep.mubr.f32.mxu1 %v8010_v9  ;;  %9166 = vst [vmem:[#allocation27_spill] sm:$0xff] %v8022_v24  ;;  %v8029_v33 = vld [vmem:[#allocation2 + $0x172] sm:$0xff]  ;;  %v2713_v9 = vld [vmem:[#allocation8 + $0xf8] sm:$0xff] }
 0x31d   : > { %5967 = vmatpush1.bf16.msra.mxu1 %v5966_v52  ;;  %v2712_v52 = vld [vmem:[#allocation8 + $0xf0] sm:$0xff]  ;;  %9168 = vst [vmem:[#allocation28_spill] sm:$0xff] %v8029_v33 }
 0x31e   : > { %5968 = vmatprep.subr.bf16.mxu1 %v6330_v0  ;;  %v5975_v3 = vpack.c.bf16 %v2713_v9, %v2712_v52  ;;  %v9171_v52 = vmax.f32 %v7743_v30, 0.0  ;;  %v8055_v30 = vld [vmem:[#allocation2 + $0xf0] sm:$0xff] }
 0x31f   : > { %3005 = vmatmul.mubr.f32.gmra.mrb[154].mxu0 %v8015_v19  ;;  %5441 = vmatmul.mubr.f32.gmra.mrb[186].mxu1 %v8017_v36  ;;  %v2824_v36 = vld [vmem:[#allocation2 + $0x182] sm:$0xff] }
 0x320   : > { %3009 = vmatprep.mubr.f32.mxu0 %v9167_v12  ;;  %5443 = vmatprep.mubr.f32.mxu1 %v8022_v24  ;;  %v9169_v12 = vmax.f32 %v7739_v34, 0.0  ;;  %v6057_v24 = vpack.c.bf16 %v3905_v44, %v3904_v18  ;;  %v8043_v34 = vld [vmem:[#allocation2 + $0xd8] sm:$0xff] }
 0x321   : > { %5970 = vmatpush1.bf16.msra.mxu1 %v5969_v60  ;;  %v8036_v60 = vld [vmem:[#allocation2 + $0xc8] sm:$0xff]  ;;  %v3909_v18 = vld [vmem:[#allocation8 + $0x428] sm:$0xff] }
 0x322   : > { %5971 = vmatprep.subr.bf16.mxu1 %v6330_v0 }
 0x323   : > { %3010 = vmatmul.mubr.f32.gmra.mrb[156].mxu0 %v8027_v32  ;;  %5444 = vmatmul.mubr.f32.gmra.mrb[188].mxu1 %v8029_v33  ;;  %v3907_v33 = vld [vmem:[#allocation8 + $0x418] sm:$0xff] }
 0x324   : > { %3014 = vmatprep.mubr.f32.mxu0 %v9169_v12  ;;  %5446 = vmatprep.mubr.f32.mxu1 %v2824_v36  ;;  %v6061_v9 = vpack.c.bf16 %v3907_v33, %v3906_v47  ;;  %v2586_v36 = vld [vmem:[#allocation2] sm:$0xff]  ;;  %v2587_v47 = vld [vmem:[#allocation2 + $0x8] sm:$0xff] }
 0x325   : > { %5973 = vmatpush1.bf16.msra.mxu1 %v5972_v40  ;;  %v3908_v40 = vld [vmem:[#allocation8 + $0x420] sm:$0xff]  ;;  %v3910_v33 = vld [vmem:[#allocation8 + $0x430] sm:$0xff]  ;;  %v3911_v12 = vld [vmem:[#allocation8 + $0x438] sm:$0xff] }
 0x326   : > { %5974 = vmatprep.subr.bf16.mxu1 %v6330_v0  ;;  %v6065_v44 = vpack.c.bf16 %v3909_v18, %v3908_v40  ;;  %v2531_v40 = vld [vmem:[#allocation2 + $0x19a] sm:$0x1]  ;;  %v9173_v18 = vmax.f32 %v7747_v11, 0.0  ;;  %v8069_v11 = vld [vmem:[#allocation2 + $0x108] sm:$0xff] }
 0x327   : > { %3015 = vmatmul.mubr.f32.gmra.mrb[158].mxu0 %v8036_v60  ;;  %5447 = vmatmul.mubr.f32.gmra.mrb[190].mxu1 %v2825_v14  ;;  %v3912_v14 = vld [vmem:[#allocation8 + $0x440] sm:$0xff]  ;;  %2549 = vst [vmem:[#allocation2 + $0x198] sm:$0x1] %v2531_v40  ;;  %v2760_v40 = vld [vmem:[#allocation2 + $0x180] sm:$0xff] }
 0x328   : > { %3019 = vmatprep.mubr.f32.mxu0 %v9170_v29  ;;  %3389 = vmatprep.mubr.f32.mxu1 %v7775_v48  ;;  %v8049_v29 = vld [vmem:[#allocation2 + $0xe0] sm:$0xff] }
 0x329   : > { %5976 = vmatpush1.bf16.msra.mxu1 %v5975_v3  ;;  %v9172_v3 = vmax.f32 %v7745_v1, 0.0  ;;  %v8062_v1 = vld [vmem:[#allocation2 + $0xf8] sm:$0xff] }
 0x32a   : > { %6058 = vmatprep.subr.bf16.mxu1 %v6057_v24 }
 0x32b   : > { %3020 = vmatmul.mubr.f32.gmra.mrb[160].mxu0 %v8043_v34 }
 0x32c   : > { %3390 = vmatmul.mubr.f32.vlgmr.msra.gmra.mrb[192].mxu1 %v2586_v36  ;;  %3024 = vmatprep.mubr.f32.mxu0 %v9171_v52  ;;  %v3913_v36 = vld [vmem:[#allocation8 + $0x448] sm:$0xff]  ;;  %v3915_v52 = vld [vmem:[#allocation8 + $0x458] sm:$0xff] }
 0x32d   : > { %3394 = vmatprep.mubr.f32.mxu1 %v7777_v7  ;;  %6060 = vmatpush3.bf16.msra.mxu1 %v6057_v24  ;;  %v6069_v24 = vpack.c.bf16 %v3911_v12, %v3910_v33  ;;  %v3919_v33 = vld [vmem:[#allocation8 + $0x478] sm:$0xff]  ;;  %v9176_v12 = vmax.f32 %v7753_v26, 0.0  ;;  %v9178_v26 = vmax.f32 %v7757_v5, 0.0  ;;  %v9180_v5 = vmax.f32 %v7761_v57, 0.0 }
 0x32e   : > { %6062 = vmatprep.subr.bf16.mxu1 %v6061_v9  ;;  %v8127_v57 = vld [vmem:[#allocation2 + $0x169] sm:$0xff] }
 0x32f   : > { %3025 = vmatmul.mubr.f32.gmra.mrb[162].mxu0 %v8049_v29 }
 0x330   : > { %3395 = vmatmul.mubr.f32.gmra.mrb[194].mxu1 %v2587_v47  ;;  %3029 = vmatprep.mubr.f32.mxu0 %v9172_v3  ;;  %v9175_v47 = vmax.f32 %v7751_v37, 0.0  ;;  %v8083_v37 = vld [vmem:[#allocation2 + $0x120] sm:$0xff]  ;;  %v8131_v3 = vld [vmem:[#allocation2 + $0x91] sm:$0xff] }
 0x331   : > { %3399 = vmatprep.mubr.f32.mxu1 %v7771_v6  ;;  %6064 = vmatpush3.bf16.msra.mxu1 %v6061_v9  ;;  %v6073_v6 = vpack.c.bf16 %v3913_v36, %v3912_v14  ;;  %v3914_v9 = vld [vmem:[#allocation8 + $0x450] sm:$0xff]  ;;  %v8148_v36 = vld [vmem:[#allocation2 + $0xa9] sm:$0xff] }
 0x332   : > { %6066 = vmatprep.subr.bf16.mxu1 %v6065_v44  ;;  %v2792_v14 = vld [vmem:[#allocation2 + $0x181] sm:$0xff] }
 0x333   : > { %3030 = vmatmul.mubr.f32.gmra.mrb[164].mxu0 %v8055_v30 }
 0x334   : > { %3400 = vmatmul.mubr.f32.gmra.mrb[196].mxu1 %v7864_v55  ;;  %3034 = vmatprep.mubr.f32.mxu0 %v9173_v18  ;;  %v3916_v55 = vld [vmem:[#allocation8 + $0x460] sm:$0xff] }
 0x335   : > { %3404 = vmatprep.mubr.f32.mxu1 %v7773_v56  ;;  %6068 = vmatpush3.bf16.msra.mxu1 %v6065_v44  ;;  %v6077_v56 = vpack.c.bf16 %v3915_v52, %v3914_v9  ;;  %v3917_v44 = vld [vmem:[#allocation8 + $0x468] sm:$0xff]  ;;  %v3872_v9 = vld [vmem:[#allocation8 + $0x300] sm:$0xff] }
 0x336   : > { %6070 = vmatprep.subr.bf16.mxu1 %v6069_v24  ;;  %v8152_v18 = vld [vmem:[#allocation2 + $0xb1] sm:$0xff] }
 0x337   : > { %3035 = vmatmul.mubr.f32.gmra.mrb[166].mxu0 %v8062_v1  ;;  %v3873_v52 = vld [vmem:[#allocation8 + $0x308] sm:$0xff] }
 0x338   : > { %3405 = vmatmul.mubr.f32.gmra.mrb[198].mxu1 %v7875_v51  ;;  %3039 = vmatprep.mubr.f32.mxu0 %v9174_v38  ;;  %v3918_v51 = vld [vmem:[#allocation8 + $0x470] sm:$0xff] }
 0x339   : > { %3409 = vmatprep.mubr.f32.mxu1 %v7775_v48  ;;  %6072 = vmatpush3.bf16.msra.mxu1 %v6069_v24  ;;  %v6081_v48 = vpack.c.bf16 %v3917_v44, %v3916_v55  ;;  %v8141_v24 = vld [vmem:[#allocation2 + $0x99] sm:$0xff]  ;;  %v8156_v38 = vld [vmem:[#allocation2 + $0xc1] sm:$0xff]  ;;  %v2651_v55 = vld [vmem:[#allocation2 + $0xa] sm:$0xff] }
 0x33a   : > { %6074 = vmatprep.subr.bf16.mxu1 %v6073_v6  ;;  %v3875_v44 = vld [vmem:[#allocation8 + $0x318] sm:$0xff] }
 0x33b   : > { %3040 = vmatmul.mubr.f32.gmra.mrb[168].mxu0 %v8069_v11 }
 0x33c   : > { %3410 = vmatmul.mubr.f32.gmra.mrb[200].mxu1 %v7886_v54  ;;  %3044 = vmatprep.mubr.f32.mxu0 %v9175_v47  ;;  %v9177_v54 = vmax.f32 %v7755_v49, 0.0  ;;  %v9179_v49 = vmax.f32 %v7759_v4, 0.0  ;;  %v9181_v4 = vmax.f32 %v7763_v20, 0.0  ;;  %v8134_v20 = vld [vmem:[#allocation2 + $0x168] sm:$0xff] }
 0x33d   : > { %3414 = vmatprep.mubr.f32.mxu1 %v7777_v7  ;;  %6076 = vmatpush3.bf16.msra.mxu1 %v6073_v6  ;;  %v6085_v7 = vpack.c.bf16 %v3919_v33, %v3918_v51  ;;  %v2761_v6 = vld [vmem:[#allocation2 + $0x188] sm:$0xff]  ;;  %v3877_v51 = vld [vmem:[#allocation8 + $0x328] sm:$0xff] }
 0x33e   : > { %6078 = vmatprep.subr.bf16.mxu1 %v6077_v56  ;;  %v8160_v47 = vld [vmem:[#allocation2 + $0xc9] sm:$0xff]  ;;  %v8167_v33 = vld [vmem:[#allocation2 + $0xd9] sm:$0xff] }
 0x33f   : > { %3045 = vmatmul.mubr.f32.gmra.mrb[170].mxu0 %v8076_v23 }
 0x340   : > { %3415 = vmatmul.mubr.f32.gmra.mrb[202].mxu1 %v7897_v22  ;;  %3049 = vmatprep.mubr.f32.mxu0 %v9176_v12  ;;  %v8090_v22 = vld [vmem:[#allocation2 + $0x128] sm:$0xff] }
 0x341   : > { %3419 = vmatprep.mubr.f32.mxu1 %v7779_v59  ;;  %6080 = vmatpush3.bf16.msra.mxu1 %v6077_v56  ;;  %v8097_v59 = vld [vmem:[#allocation2 + $0x138] sm:$0xff]  ;;  %v6010_v56 = vpack.c.bf16 %v3873_v52, %v3872_v9  ;;  %v3879_v12 = vld [vmem:[#allocation8 + $0x338] sm:$0xff] }
 0x342   : > { %6082 = vmatprep.subr.bf16.mxu1 %v6081_v48  ;;  %v3893_v9 = vld [vmem:[#allocation8 + $0x3a8] sm:$0xff]  ;;  %v9185_v52 = vld [vmem:[#allocation16_spill] sm:$0xff] }
 0x343   : > { %3050 = vmatmul.mubr.f32.gmra.mrb[172].mxu0 %v8083_v37 }
 0x344   : > { %3420 = vmatmul.mubr.f32.gmra.mrb[204].mxu1 %v7908_v10  ;;  %3054 = vmatprep.mubr.f32.mxu0 %v9177_v54  ;;  %v8106_v10 = vld [vmem:[#allocation2 + $0x140] sm:$0xff]  ;;  %v8181_v54 = vld [vmem:[#allocation2 + $0xf1] sm:$0xff] }
 0x345   : > { %3424 = vmatprep.mubr.f32.mxu1 %v7781_v43  ;;  %6084 = vmatpush3.bf16.msra.mxu1 %v6081_v48  ;;  %v8103_v43 = vld [vmem:[#allocation2 + $0x69] sm:$0xff] }
 0x346   : > { %6086 = vmatprep.subr.bf16.mxu1 %v6085_v7  ;;  %v3876_v48 = vld [vmem:[#allocation8 + $0x320] sm:$0xff] }
 0x347   : > { %3055 = vmatmul.mubr.f32.gmra.mrb[174].mxu0 %v8090_v22 }
 0x348   : > { %3425 = vmatmul.mubr.f32.gmra.mrb[206].mxu1 %v7919_v17  ;;  %3059 = vmatprep.mubr.f32.mxu0 %v9178_v26  ;;  %v8115_v17 = vld [vmem:[#allocation2 + $0x150] sm:$0xff]  ;;  %v8188_v26 = vld [vmem:[#allocation2 + $0xf9] sm:$0xff] }
 0x349   : > { %3429 = vmatprep.mubr.f32.mxu1 %v7783_v63  ;;  %6088 = vmatpush3.bf16.msra.mxu1 %v6085_v7  ;;  %v8112_v63 = vld [vmem:[#allocation2 + $0x79] sm:$0xff]  ;;  %v8174_v7 = vld [vmem:[#allocation2 + $0xe1] sm:$0xff] }
 0x34b   : > { %3060 = vmatmul.mubr.f32.gmra.mrb[176].mxu0 %v8097_v59 }
 0x34c   : > { %3430 = vmatmul.mubr.f32.gmra.mrb[208].mxu1 %v7930_v16  ;;  %3064 = vmatprep.mubr.f32.mxu0 %v9179_v49  ;;  %v8121_v16 = vld [vmem:[#allocation2 + $0x81] sm:$0xff]  ;;  %v8195_v49 = vld [vmem:[#allocation2 + $0x109] sm:$0xff] }
 0x34d   : > { %3434 = vmatprep.mubr.f32.mxu1 %v8103_v43 }
 0x34f   : > { %3065 = vmatmul.mubr.f32.gmra.mrb[178].mxu0 %v8106_v10 }
 0x350   : > { %3435 = vmatmul.mubr.f32.gmra.mrb[210].mxu1 %v7942_v35  ;;  %3069 = vmatprep.mubr.f32.mxu0 %v9180_v5  ;;  %v8124_v35 = vld [vmem:[#allocation2 + $0x158] sm:$0xff] }
 0x351   : > { %3439 = vmatprep.mubr.f32.mxu1 %v8112_v63  ;;  %v8202_v5 = vld [vmem:[#allocation2 + $0x111] sm:$0xff] }
 0x353   : > { %3070 = vmatmul.mubr.f32.gmra.mrb[180].mxu0 %v8115_v17 }
 0x354   : > { %3440 = vmatmul.mubr.f32.gmra.mrb[212].mxu1 %v7954_v58  ;;  %3074 = vmatprep.mubr.f32.mxu0 %v9181_v4  ;;  %v8137_v58 = vld [vmem:[#allocation2 + $0x171] sm:$0xff]  ;;  %v8209_v4 = vld [vmem:[#allocation2 + $0x121] sm:$0xff] }
 0x355   : > { %3444 = vmatprep.mubr.f32.mxu1 %v8121_v16 }
 0x357   : > { %3075 = vmatmul.mubr.f32.gmra.mrb[182].mxu0 %v8124_v35 }
 0x358   : > { %3445 = vmatmul.mubr.f32.gmra.mrb[214].mxu1 %v7967_v21  ;;  %3079 = vmatprep.mubr.f32.mxu0 %v8127_v57  ;;  %v8144_v21 = vld [vmem:[#allocation2 + $0x170] sm:$0xff] }
 0x359   : > { %3449 = vmatprep.mubr.f32.mxu1 %v8131_v3 }
 0x35b   : > { %3080 = vmatmul.mubr.f32.gmra.mrb[184].mxu0 %v8134_v20 }
 0x35c   : > { %3450 = vmatmul.mubr.f32.gmra.mrb[216].mxu1 %v7979_v28  ;;  %3084 = vmatprep.mubr.f32.mxu0 %v8137_v58  ;;  %v2793_v28 = vld [vmem:[#allocation2 + $0x189] sm:$0xff] }
 0x35d   : > { %3454 = vmatprep.mubr.f32.mxu1 %v8141_v24 }
 0x35f   : > { %3085 = vmatmul.mubr.f32.gmra.mrb[186].mxu0 %v8144_v21 }
 0x360   : > { %3455 = vmatmul.mubr.f32.gmra.mrb[218].mxu1 %v7991_v15  ;;  %3089 = vmatprep.mubr.f32.mxu0 %v2792_v14  ;;  %v2650_v15 = vld [vmem:[#allocation2 + $0x2] sm:$0xff] }
 0x361   : > { %3459 = vmatprep.mubr.f32.mxu1 %v8148_v36  ;;  %v3891_v14 = vld [vmem:[#allocation8 + $0x398] sm:$0xff] }
 0x363   : > { %3090 = vmatmul.mubr.f32.gmra.mrb[188].mxu0 %v2760_v40  ;;  %v9183_v40 = vld [vmem:[#allocation14_spill] sm:$0xff] }
 0x364   : > { %3460 = vmatmul.mubr.f32.gmra.mrb[220].mxu1 %v8003_v13  ;;  %3094 = vmatprep.mubr.f32.mxu0 %v2793_v28  ;;  %v3874_v13 = vld [vmem:[#allocation8 + $0x310] sm:$0xff]  ;;  %v8216_v28 = vld [vmem:[#allocation2 + $0x129] sm:$0xff] }
 0x365   : > { %3464 = vmatprep.mubr.f32.mxu1 %v8152_v18 }
 0x367   : > { %3095 = vmatmul.mubr.f32.gmra.mrb[190].mxu0 %v2761_v6  ;;  %v3892_v6 = vld [vmem:[#allocation8 + $0x3a0] sm:$0xff] }
 0x368   : > { %3465 = vmatmul.mubr.f32.gmra.mrb[222].mxu1 %v8015_v19  ;;  %5481 = vmatprep.mubr.f32.mxu0 %v2650_v15  ;;  %v6013_v19 = vpack.c.bf16 %v3875_v44, %v3874_v13  ;;  %v8223_v15 = vld [vmem:[#allocation2 + $0x139] sm:$0xff]  ;;  %v3895_v13 = vld [vmem:[#allocation8 + $0x3b8] sm:$0xff] }
 0x369   : > { %3469 = vmatprep.mubr.f32.mxu1 %v8156_v38  ;;  %v9187_v44 = vld [vmem:[#allocation18_spill] sm:$0xff] }
 0x36b   : > { %5482 = vmatmul.mubr.f32.vlgmr.msra.gmra.mrb[192].mxu0 %v2651_v55  ;;  %v3894_v55 = vld [vmem:[#allocation8 + $0x3b0] sm:$0xff] }
 0x36c   : > { %3470 = vmatmul.mubr.f32.gmra.mrb[224].mxu1 %v8027_v32  ;;  %5484 = vmatprep.mubr.f32.mxu0 %v7861_v45  ;;  %v6016_v45 = vpack.c.bf16 %v3877_v51, %v3876_v48  ;;  %v3878_v32 = vld [vmem:[#allocation8 + $0x330] sm:$0xff]  ;;  %v3896_v51 = vld [vmem:[#allocation8 + $0x3c0] sm:$0xff] }
 0x36d   : > { %3474 = vmatprep.mubr.f32.mxu1 %v8160_v47  ;;  %6011 = vmatpush1.bf16.msra.mxu0 %v6010_v56  ;;  %v9186_v56 = vld [vmem:[#allocation17_spill] sm:$0xff]  ;;  %v9188_v48 = vld [vmem:[#allocation19_spill] sm:$0xff] }
 0x36e   : > { %6012 = vmatprep.subr.bf16.mxu0 %v6330_v0 }
 0x36f   : > { %5485 = vmatmul.mubr.f32.gmra.mrb[194].mxu0 %v7866_v8  ;;  %v6019_v8 = vpack.c.bf16 %v3879_v12, %v3878_v32  ;;  %v9189_v32 = vld [vmem:[#allocation20_spill] sm:$0xff]  ;;  %v8237_v12 = vld [vmem:[#allocation2 + $0x151] sm:$0xff] }
 0x370   : > { %3475 = vmatmul.mubr.f32.gmra.mrb[226].mxu1 %v8036_v60  ;;  %5487 = vmatprep.mubr.f32.mxu0 %v7870_v39  ;;  %v3880_v39 = vld [vmem:[#allocation8 + $0x340] sm:$0xff]  ;;  %v3881_v60 = vld [vmem:[#allocation8 + $0x348] sm:$0xff] }
 0x371   : > { %3479 = vmatprep.mubr.f32.mxu1 %v8167_v33  ;;  %6014 = vmatpush1.bf16.msra.mxu0 %v6013_v19  ;;  %v8230_v19 = vld [vmem:[#allocation2 + $0x141] sm:$0xff] }
 0x372   : > { %6015 = vmatprep.subr.bf16.mxu0 %v6330_v0 }
 0x373   : > { %5488 = vmatmul.mubr.f32.gmra.mrb[196].mxu0 %v7877_v2  ;;  %v6022_v2 = vpack.c.bf16 %v3881_v60, %v3880_v39  ;;  %v3898_v39 = vld [vmem:[#allocation8 + $0x3d0] sm:$0xff]  ;;  %v3899_v60 = vld [vmem:[#allocation8 + $0x3d8] sm:$0xff] }
 0x374   : > { %3480 = vmatmul.mubr.f32.gmra.mrb[228].mxu1 %v8043_v34  ;;  %5490 = vmatprep.mubr.f32.mxu0 %v7882_v46  ;;  %v3882_v46 = vld [vmem:[#allocation8 + $0x350] sm:$0xff]  ;;  %v3883_v34 = vld [vmem:[#allocation8 + $0x358] sm:$0xff] }
 0x375   : > { %3484 = vmatprep.mubr.f32.mxu1 %v8174_v7  ;;  %6017 = vmatpush1.bf16.msra.mxu0 %v6016_v45  ;;  %v3897_v45 = vld [vmem:[#allocation8 + $0x3c8] sm:$0xff] }
 0x376   : > { %6018 = vmatprep.subr.bf16.mxu0 %v6330_v0 }
 0x377   : > { %5491 = vmatmul.mubr.f32.gmra.mrb[198].mxu0 %v7888_v41  ;;  %v6025_v41 = vpack.c.bf16 %v3883_v34, %v3882_v46  ;;  %v8244_v46 = vld [vmem:[#allocation2 + $0x159] sm:$0xff] }
 0x378   : > { %3485 = vmatmul.mubr.f32.gmra.mrb[230].mxu1 %v8049_v29  ;;  %5493 = vmatprep.mubr.f32.mxu0 %v7893_v62  ;;  %v3884_v62 = vld [vmem:[#allocation8 + $0x360] sm:$0xff]  ;;  %v3885_v29 = vld [vmem:[#allocation8 + $0x368] sm:$0xff]  ;;  %v9192_v34 = vld [vmem:[#allocation23_spill] sm:$0xff] }
 0x379   : > { %3489 = vmatprep.mubr.f32.mxu1 %v8181_v54  ;;  %6020 = vmatpush1.bf16.msra.mxu0 %v6019_v8  ;;  %v9190_v8 = vld [vmem:[#allocation21_spill] sm:$0xff] }
 0x37a   : > { %6021 = vmatprep.subr.bf16.mxu0 %v6330_v0 }
 0x37b   : > { %5494 = vmatmul.mubr.f32.gmra.mrb[200].mxu0 %v7899_v31  ;;  %v6028_v31 = vpack.c.bf16 %v3885_v29, %v3884_v62  ;;  %v3901_v62 = vld [vmem:[#allocation8 + $0x3e8] sm:$0xff]  ;;  %v9193_v29 = vld [vmem:[#allocation24_spill] sm:$0xff] }
 0x37c   : > { %3490 = vmatmul.mubr.f32.gmra.mrb[232].mxu1 %v8055_v30  ;;  %5496 = vmatprep.mubr.f32.mxu0 %v7904_v50  ;;  %v3886_v50 = vld [vmem:[#allocation8 + $0x370] sm:$0xff]  ;;  %v3887_v30 = vld [vmem:[#allocation8 + $0x378] sm:$0xff] }
 0x37d   : > { %3494 = vmatprep.mubr.f32.mxu1 %v8188_v26  ;;  %6023 = vmatpush1.bf16.msra.mxu0 %v6022_v2  ;;  %v9191_v2 = vld [vmem:[#allocation22_spill] sm:$0xff] }
 0x37e   : > { %6024 = vmatprep.subr.bf16.mxu0 %v6330_v0 }
 0x37f   : > { %5497 = vmatmul.mubr.f32.gmra.mrb[202].mxu0 %v7910_v25  ;;  %v6031_v25 = vpack.c.bf16 %v3887_v30, %v3886_v50  ;;  %v3902_v50 = vld [vmem:[#allocation8 + $0x3f0] sm:$0xff]  ;;  %v3903_v30 = vld [vmem:[#allocation8 + $0x3f8] sm:$0xff] }
 0x380   : > { %3495 = vmatmul.mubr.f32.gmra.mrb[234].mxu1 %v8062_v1  ;;  %5499 = vmatprep.mubr.f32.mxu0 %v7915_v53  ;;  %v3888_v53 = vld [vmem:[#allocation8 + $0x380] sm:$0xff]  ;;  %v3889_v1 = vld [vmem:[#allocation8 + $0x388] sm:$0xff] }
 0x381   : > { %3499 = vmatprep.mubr.f32.mxu1 %v8195_v49  ;;  %6026 = vmatpush1.bf16.msra.mxu0 %v6025_v41  ;;  %v3900_v41 = vld [vmem:[#allocation8 + $0x3e0] sm:$0xff] }
 0x382   : > { %6027 = vmatprep.subr.bf16.mxu0 %v6330_v0 }
 0x383   : > { %5500 = vmatmul.mubr.f32.gmra.mrb[204].mxu0 %v7921_v27  ;;  %v9182_v27 = vld [vmem:[#allocation13_spill] sm:$0xff] }
 0x384   : > { %3500 = vmatmul.mubr.f32.gmra.mrb[236].mxu1 %v8069_v11  ;;  %5502 = vmatprep.mubr.f32.mxu0 %v7926_v42  ;;  %v6034_v42 = vpack.c.bf16 %v3889_v1, %v3888_v53  ;;  %v3890_v11 = vld [vmem:[#allocation8 + $0x390] sm:$0xff]  ;;  %v9197_v1 = vld [vmem:[#allocation28_spill] sm:$0xff] }
 0x385   : > { %3504 = vmatprep.mubr.f32.mxu1 %v8202_v5  ;;  %6029 = vmatpush1.bf16.msra.mxu0 %v6028_v31  ;;  %v9194_v31 = vld [vmem:[#allocation25_spill] sm:$0xff]  ;;  %v9196_v53 = vld [vmem:[#allocation27_spill] sm:$0xff] }
 0x386   : > { %6030 = vmatprep.subr.bf16.mxu0 %v6330_v0 }
 0x387   : > { %5503 = vmatmul.mubr.f32.gmra.mrb[206].mxu0 %v7932_v61  ;;  %v9184_v61 = vld [vmem:[#allocation15_spill] sm:$0xff] }
 0x388   : > { %3505 = vmatmul.mubr.f32.gmra.mrb[238].mxu1 %v8076_v23  ;;  %5505 = vmatprep.mubr.f32.mxu0 %v9182_v27  ;;  %v6037_v23 = vpack.c.bf16 %v3891_v14, %v3890_v11  ;;  %v3839_v27 = vld [vmem:[#allocation2 + $0x32] sm:$0xff]  ;;  %v3840_v11 = vld [vmem:[#allocation2 + $0x3a] sm:$0xff]  ;;  %v3841_v14 = vld [vmem:[#allocation2 + $0x4a] sm:$0xff] }
 0x389   : > { %3509 = vmatprep.mubr.f32.mxu1 %v8209_v4  ;;  %6032 = vmatpush1.bf16.msra.mxu0 %v6031_v25  ;;  %v9195_v25 = vld [vmem:[#allocation26_spill] sm:$0xff] }
 0x38a   : > { %6033 = vmatprep.subr.bf16.mxu0 %v6330_v0 }
 0x38b   : > { %5506 = vmatmul.mubr.f32.gmra.mrb[208].mxu0 %v9183_v40  ;;  %v3842_v40 = vld [vmem:[#allocation2 + $0x52] sm:$0xff] }
 0x38c   : > { %3510 = vmatmul.mubr.f32.gmra.mrb[240].mxu1 %v8083_v37  ;;  %5508 = vmatprep.mubr.f32.mxu0 %v9184_v61  ;;  %v6040_v37 = vpack.c.bf16 %v3893_v9, %v3892_v6  ;;  %v3843_v61 = vld [vmem:[#allocation2 + $0x62] sm:$0xff]  ;;  %v3810_v6 = vld [vmem:[#allocation2 + $0x51] sm:$0xff]  ;;  %v3845_v9 = vld [vmem:[#allocation2 + $0x7a] sm:$0xff] }
 0x38d   : > { %3514 = vmatprep.mubr.f32.mxu1 %v8216_v28  ;;  %6035 = vmatpush1.bf16.msra.mxu0 %v6034_v42  ;;  %v3775_v42 = vld [vmem:[#allocation2 + $0x30] sm:$0xff] }
 0x38e   : > { %6036 = vmatprep.subr.bf16.mxu0 %v6330_v0 }
 0x38f   : > { %5509 = vmatmul.mubr.f32.gmra.mrb[210].mxu0 %v9185_v52  ;;  %v3778_v52 = vld [vmem:[#allocation2 + $0x50] sm:$0xff] }
 0x390   : > { %3515 = vmatmul.mubr.f32.gmra.mrb[242].mxu1 %v8090_v22  ;;  %5511 = vmatprep.mubr.f32.mxu0 %v9186_v56  ;;  %v6043_v22 = vpack.c.bf16 %v3895_v13, %v3894_v55  ;;  %v3846_v56 = vld [vmem:[#allocation2 + $0x82] sm:$0xff]  ;;  %v3847_v55 = vld [vmem:[#allocation2 + $0x92] sm:$0xff] }
 0x391   : > { %3519 = vmatprep.mubr.f32.mxu1 %v8223_v15  ;;  %6038 = vmatpush1.bf16.msra.mxu0 %v6037_v23  ;;  %v3844_v23 = vld [vmem:[#allocation2 + $0x6a] sm:$0xff]  ;;  %v3779_v13 = vld [vmem:[#allocation2 + $0x60] sm:$0xff] }
 0x392   : > { %6039 = vmatprep.subr.bf16.mxu0 %v6330_v0 }
 0x393   : > { %5512 = vmatmul.mubr.f32.gmra.mrb[212].mxu0 %v9187_v44  ;;  %v3848_v44 = vld [vmem:[#allocation2 + $0x9a] sm:$0xff] }
 0x394   : > { %3520 = vmatmul.mubr.f32.gmra.mrb[244].mxu1 %v8097_v59  ;;  %5514 = vmatprep.mubr.f32.mxu0 %v9188_v48  ;;  %v6046_v59 = vpack.c.bf16 %v3897_v45, %v3896_v51  ;;  %v3849_v48 = vld [vmem:[#allocation2 + $0xaa] sm:$0xff] }
 0x395   : > { %3524 = vmatprep.mubr.f32.mxu1 %v8230_v19  ;;  %6041 = vmatpush1.bf16.msra.mxu0 %v6040_v37  ;;  %v3811_v37 = vld [vmem:[#allocation2 + $0x61] sm:$0xff] }
 0x396   : > { %6042 = vmatprep.subr.bf16.mxu0 %v6330_v0 }
 0x397   : > { %5515 = vmatmul.mubr.f32.gmra.mrb[214].mxu0 %v9189_v32 }
 0x398   : > { %3525 = vmatmul.mubr.f32.gmra.mrb[246].mxu1 %v8106_v10  ;;  %5517 = vmatprep.mubr.f32.mxu0 %v9190_v8  ;;  %v6049_v10 = vpack.c.bf16 %v3899_v60, %v3898_v39  ;;  %v3780_v8 = vld [vmem:[#allocation2 + $0x68] sm:$0xff] }
 0x399   : > { %3529 = vmatprep.mubr.f32.mxu1 %v8237_v12  ;;  %6044 = vmatpush1.bf16.msra.mxu0 %v6043_v22  ;;  %v3851_v60 = vld [vmem:[#allocation2 + $0xc2] sm:$0xff] }
 0x39a   : > { %6045 = vmatprep.subr.bf16.mxu0 %v6330_v0 }
 0x39b   : > { %5518 = vmatmul.mubr.f32.gmra.mrb[216].mxu0 %v9191_v2 }
 0x39c   : > { %3530 = vmatmul.mubr.f32.gmra.mrb[248].mxu1 %v8115_v17  ;;  %5520 = vmatprep.mubr.f32.mxu0 %v9192_v34  ;;  %v6052_v17 = vpack.c.bf16 %v3901_v62, %v3900_v41  ;;  %v3781_v62 = vld [vmem:[#allocation2 + $0x78] sm:$0xff] }
 0x39d   : > { %3534 = vmatprep.mubr.f32.mxu1 %v8244_v46  ;;  %6047 = vmatpush1.bf16.msra.mxu0 %v6046_v59  ;;  %v3850_v59 = vld [vmem:[#allocation2 + $0xb2] sm:$0xff] }
 0x39e   : > { %6048 = vmatprep.subr.bf16.mxu0 %v6330_v0 }
 0x39f   : > { %5521 = vmatmul.mubr.f32.gmra.mrb[218].mxu0 %v9193_v29  ;;  %v3852_v29 = vld [vmem:[#allocation2 + $0xca] sm:$0xff] }
 0x3a0   : > { %3535 = vmatmul.mubr.f32.gmra.mrb[250].mxu1 %v8124_v35  ;;  %5523 = vmatprep.mubr.f32.mxu0 %v9194_v31  ;;  %v6055_v35 = vpack.c.bf16 %v3903_v30, %v3902_v50  ;;  %v3853_v31 = vld [vmem:[#allocation2 + $0xda] sm:$0xff] }
 0x3a1   : > { %3539 = vmatprep.mubr.f32.mxu1 %v8127_v57  ;;  %6050 = vmatpush1.bf16.msra.mxu0 %v6049_v10  ;;  %v3807_v57 = vld [vmem:[#allocation2 + $0x31] sm:$0xff] }
 0x3a2   : > { %6051 = vmatprep.subr.bf16.mxu0 %v6330_v0 }
 0x3a3   : > { %5524 = vmatmul.mubr.f32.gmra.mrb[220].mxu0 %v9195_v25 }
 0x3a4   : > { %3540 = vmatmul.mubr.f32.gmra.mrb[252].mxu1 %v8134_v20  ;;  %5526 = vmatprep.mubr.f32.mxu0 %v9196_v53  ;;  %v3808_v20 = vld [vmem:[#allocation2 + $0x39] sm:$0xff] }
 0x3a5   : > { %3544 = vmatprep.mubr.f32.mxu1 %v8137_v58  ;;  %6053 = vmatpush1.bf16.msra.mxu0 %v6052_v17  ;;  %v3776_v58 = vld [vmem:[#allocation2 + $0x38] sm:$0xff]  ;;  %v3782_v53 = vld [vmem:[#allocation2 + $0x80] sm:$0xff] }
 0x3a6   : > { %6054 = vmatprep.subr.bf16.mxu0 %v6330_v0  ;;  %v3809_v0 = vld [vmem:[#allocation2 + $0x49] sm:$0xff] }
 0x3a7   : > { %5527 = vmatmul.mubr.f32.gmra.mrb[222].mxu0 %v9197_v1  ;;  %v3855_v1 = vld [vmem:[#allocation2 + $0xf2] sm:$0xff] }
 0x3a8   : > { %3545 = vmatmul.mubr.f32.gmra.mrb[254].mxu1 %v8144_v21  ;;  %3984 = vmatprep.mubr.f32.mxu0 %v3807_v57  ;;  %v3777_v21 = vld [vmem:[#allocation2 + $0x48] sm:$0xff] }
 0x3a9   : > { %6056 = vmatpush1.bf16.msra.mxu0 %v6055_v35  ;;  %5561 = vmatprep.mubr.f32.mxu1 %v3839_v27  ;;  %v3854_v35 = vld [vmem:[#allocation2 + $0xe2] sm:$0xff] }
 0x3ac   : > { %3985 = vmatmul.mubr.f32.vlgmr.msra.gmra.mrb[224].mxu0 %v3775_v42  ;;  %5562 = vmatmul.mubr.f32.vlgmr.msra.gmra.mrb[0].mxu1 %v3840_v11 }
 0x3ad   : > { %3989 = vmatprep.mubr.f32.mxu0 %v3808_v20  ;;  %5564 = vmatprep.mubr.f32.mxu1 %v3841_v14  ;;  %v3783_v20 = vld [vmem:[#allocation2 + $0x90] sm:$0xff]  ;;  %v3856_v14 = vld [vmem:[#allocation2 + $0xfa] sm:$0xff] }
 0x3b0   : > { %3990 = vmatmul.mubr.f32.gmra.mrb[226].mxu0 %v3776_v58  ;;  %5565 = vmatmul.mubr.f32.gmra.mrb[2].mxu1 %v3842_v40  ;;  %v3857_v58 = vld [vmem:[#allocation2 + $0x10a] sm:$0xff] }
 0x3b1   : > { %3994 = vmatprep.mubr.f32.mxu0 %v3809_v0  ;;  %5567 = vmatprep.mubr.f32.mxu1 %v3843_v61 }
 0x3b4   : > { %3995 = vmatmul.mubr.f32.gmra.mrb[228].mxu0 %v3777_v21  ;;  %5568 = vmatmul.mubr.f32.gmra.mrb[4].mxu1 %v3844_v23  ;;  %v3784_v23 = vld [vmem:[#allocation2 + $0x98] sm:$0xff] }
 0x3b5   : > { %3999 = vmatprep.mubr.f32.mxu0 %v3810_v6  ;;  %5570 = vmatprep.mubr.f32.mxu1 %v3845_v9  ;;  %v3858_v6 = vld [vmem:[#allocation2 + $0x112] sm:$0xff]  ;;  %v3859_v9 = vld [vmem:[#allocation2 + $0x122] sm:$0xff] }
 0x3b8   : > { %4000 = vmatmul.mubr.f32.gmra.mrb[230].mxu0 %v3778_v52  ;;  %5571 = vmatmul.mubr.f32.gmra.mrb[6].mxu1 %v3846_v56 }
 0x3b9   : > { %4004 = vmatprep.mubr.f32.mxu0 %v3811_v37  ;;  %5573 = vmatprep.mubr.f32.mxu1 %v3847_v55 }
 0x3bc   : > { %4005 = vmatmul.mubr.f32.gmra.mrb[232].mxu0 %v3779_v13  ;;  %5574 = vmatmul.mubr.f32.gmra.mrb[8].mxu1 %v3848_v44  ;;  %v3785_v13 = vld [vmem:[#allocation2 + $0xa8] sm:$0xff] }
 0x3bd   : > { %4009 = vmatprep.mubr.f32.mxu0 %v8103_v43  ;;  %5576 = vmatprep.mubr.f32.mxu1 %v3849_v48  ;;  %v3860_v44 = vld [vmem:[#allocation2 + $0x12a] sm:$0xff]  ;;  %v3861_v48 = vld [vmem:[#allocation2 + $0x13a] sm:$0xff] }
 0x3be   : > { %v2941_v22 = vpop.f32.mrb[128].mxu0  ;;  %v5403_v51 = vpop.f32.mrb[160].mxu1 }
 0x3bf   : > { %v2943_v45 = vpop.f32.mrb[129].mxu0  ;;  %v3166_v32 = vpop.f32.mrb[161].mxu1 }
 0x3c0   : > { %v8262_v39 = vadd.f32 %v3166_v32, %v2941_v22  ;;  %4010 = vmatmul.mubr.f32.gmra.mrb[234].mxu0 %v3780_v8  ;;  %5577 = vmatmul.mubr.f32.gmra.mrb[10].mxu1 %v3850_v59  ;;  %v3786_v8 = vld [vmem:[#allocation2 + $0xb0] sm:$0xff]  ;;  %v3862_v59 = vld [vmem:[#allocation2 + $0x142] sm:$0xff] }
 0x3c1   : > { %4014 = vmatprep.mubr.f32.mxu0 %v8112_v63  ;;  %5579 = vmatprep.mubr.f32.mxu1 %v3851_v60  ;;  %v3863_v60 = vld [vmem:[#allocation2 + $0x152] sm:$0xff] }
 0x3c2   : > { %v2946_v2 = vpop.f32.mrb[130].mxu0  ;;  %v5406_v34 = vpop.f32.mrb[162].mxu1 }
 0x3c3   : > { %v8265_v10 = vadd.f32 %v5403_v51, %v2946_v2  ;;  %v2948_v43 = vpop.f32.mrb[131].mxu0  ;;  %v3176_v41 = vpop.f32.mrb[163].mxu1 }
 0x3c4   : > { %4015 = vmatmul.mubr.f32.gmra.mrb[236].mxu0 %v3781_v62  ;;  %5580 = vmatmul.mubr.f32.gmra.mrb[12].mxu1 %v3852_v29  ;;  %v3787_v62 = vld [vmem:[#allocation2 + $0xc0] sm:$0xff] }
 0x3c5   : > { %4019 = vmatprep.mubr.f32.mxu0 %v8121_v16  ;;  %5582 = vmatprep.mubr.f32.mxu1 %v3853_v31  ;;  %v3864_v29 = vld [vmem:[#allocation2 + $0x15a] sm:$0xff]  ;;  %v3865_v31 = vld [vmem:[#allocation2 + $0x16a] sm:$0xff] }
 0x3c6   : > { %v2951_v17 = vpop.f32.mrb[132].mxu0  ;;  %v5409_v50 = vpop.f32.mrb[164].mxu1 }
 0x3c7   : > { %v8268_v30 = vadd.f32 %v3176_v41, %v2951_v17  ;;  %v2953_v63 = vpop.f32.mrb[133].mxu0  ;;  %v3186_v25 = vpop.f32.mrb[165].mxu1 }
 0x3c8   : > { %4020 = vmatmul.mubr.f32.gmra.mrb[238].mxu0 %v3782_v53  ;;  %5583 = vmatmul.mubr.f32.gmra.mrb[14].mxu1 %v3854_v35  ;;  %v3788_v53 = vld [vmem:[#allocation2 + $0xc8] sm:$0xff]  ;;  %v3866_v35 = vld [vmem:[#allocation2 + $0x172] sm:$0xff] }
 0x3c9   : > { %4024 = vmatprep.mubr.f32.mxu0 %v8131_v3  ;;  %5585 = vmatprep.mubr.f32.mxu1 %v3855_v1  ;;  %v3867_v1 = vld [vmem:[#allocation2 + $0x182] sm:$0xff] }
 0x3ca   : > { %v2956_v57 = vpop.f32.mrb[134].mxu0  ;;  %v5412_v27 = vpop.f32.mrb[166].mxu1 }
 0x3cb   : > { %v8271_v42 = vadd.f32 %v5406_v34, %v2956_v57  ;;  %v2958_v16 = vpop.f32.mrb[135].mxu0  ;;  %v3196_v11 = vpop.f32.mrb[167].mxu1 }
 0x3cc   : > { %4025 = vmatmul.mubr.f32.gmra.mrb[240].mxu0 %v3783_v20  ;;  %5586 = vmatmul.mubr.f32.gmra.mrb[16].mxu1 %v3856_v14  ;;  %v3789_v20 = vld [vmem:[#allocation2 + $0xd8] sm:$0xff]  ;;  %v3868_v14 = vld [vmem:[#allocation2 + $0x18a] sm:$0xff] }
 0x3cd   : > { %4029 = vmatprep.mubr.f32.mxu0 %v8141_v24  ;;  %5588 = vmatprep.mubr.f32.mxu1 %v3857_v58  ;;  %v3869_v58 = vld [vmem:[#allocation2 + $0x19a] sm:$0xff] }
 0x3ce   : > { %v2961_v40 = vpop.f32.mrb[136].mxu0  ;;  %v5415_v0 = vpop.f32.mrb[168].mxu1 }
 0x3cf   : > { %v8274_v61 = vadd.f32 %v3186_v25, %v2961_v40  ;;  %v2963_v3 = vpop.f32.mrb[137].mxu0  ;;  %v3206_v21 = vpop.f32.mrb[169].mxu1 }
 0x3d0   : > { %4030 = vmatmul.mubr.f32.gmra.mrb[242].mxu0 %v3784_v23  ;;  %5589 = vmatmul.mubr.f32.gmra.mrb[18].mxu1 %v3858_v6  ;;  %v3870_v6 = vld [vmem:[#allocation2 + $0x1a2] sm:$0xff] }
 0x3d1   : > { %4034 = vmatprep.mubr.f32.mxu0 %v8148_v36  ;;  %5591 = vmatprep.mubr.f32.mxu1 %v3859_v9 }
 0x3d2   : > { %v2966_v52 = vpop.f32.mrb[138].mxu0  ;;  %v8277_v56 = vpop.f32.mrb[170].mxu1 }
 0x3d3   : > { %v8279_v37 = vadd.f32 %v5409_v50, %v2966_v52  ;;  %v2968_v24 = vpop.f32.mrb[139].mxu0  ;;  %v3216_v55 = vpop.f32.mrb[171].mxu1 }
 0x3d4   : > { %4035 = vmatmul.mubr.f32.gmra.mrb[244].mxu0 %v3785_v13  ;;  %5592 = vmatmul.mubr.f32.gmra.mrb[20].mxu1 %v3860_v44 }
 0x3d5   : > { %4039 = vmatprep.mubr.f32.mxu0 %v8152_v18  ;;  %5594 = vmatprep.mubr.f32.mxu1 %v3861_v48 }
 0x3d6   : > { %v2971_v22 = vpop.f32.mrb[140].mxu0  ;;  %v8282_v51 = vpop.f32.mrb[172].mxu1 }
 0x3d7   : > { %v8284_v36 = vadd.f32 %v3196_v11, %v2971_v22  ;;  %v2973_v45 = vpop.f32.mrb[141].mxu0  ;;  %v8286_v32 = vpop.f32.mrb[173].mxu1 }
 0x3d8   : > { %4040 = vmatmul.mubr.f32.gmra.mrb[246].mxu0 %v3786_v8  ;;  %5595 = vmatmul.mubr.f32.gmra.mrb[22].mxu1 %v3862_v59  ;;  %v3792_v8 = vld [vmem:[#allocation2 + $0xf8] sm:$0xff] }
 0x3d9   : > { %4044 = vmatprep.mubr.f32.mxu0 %v8156_v38  ;;  %5597 = vmatprep.mubr.f32.mxu1 %v3863_v60 }
 0x3da   : > { %v2976_v2 = vpop.f32.mrb[142].mxu0  ;;  %v8289_v34 = vpop.f32.mrb[174].mxu1 }
 0x3db   : > { %v8291_v18 = vadd.f32 %v5412_v27, %v2976_v2  ;;  %v2978_v43 = vpop.f32.mrb[143].mxu0  ;;  %v8293_v41 = vpop.f32.mrb[175].mxu1 }
 0x3dc   : > { %4045 = vmatmul.mubr.f32.gmra.mrb[248].mxu0 %v3787_v62  ;;  %5598 = vmatmul.mubr.f32.gmra.mrb[24].mxu1 %v3864_v29  ;;  %v3793_v43 = vld [vmem:[#allocation2 + $0x108] sm:$0xff] }
 0x3dd   : > { %4049 = vmatprep.mubr.f32.mxu0 %v8160_v47  ;;  %5600 = vmatprep.mubr.f32.mxu1 %v3865_v31 }
 0x3de   : > { %v2981_v17 = vpop.f32.mrb[144].mxu0  ;;  %v8296_v50 = vpop.f32.mrb[176].mxu1 }
 0x3df   : > { %v8298_v38 = vadd.f32 %v3206_v21, %v2981_v17  ;;  %v2983_v63 = vpop.f32.mrb[145].mxu0  ;;  %v8300_v25 = vpop.f32.mrb[177].mxu1  ;;  %v3794_v17 = vld [vmem:[#allocation2 + $0x110] sm:$0xff] }
 0x3e0   : > { %4050 = vmatmul.mubr.f32.gmra.mrb[250].mxu0 %v3788_v53  ;;  %5601 = vmatmul.mubr.f32.gmra.mrb[26].mxu1 %v3866_v35 }
 0x3e1   : > { %4054 = vmatprep.mubr.f32.mxu0 %v8167_v33  ;;  %5603 = vmatprep.mubr.f32.mxu1 %v3867_v1  ;;  %v3795_v1 = vld [vmem:[#allocation2 + $0x120] sm:$0xff] }
 0x3e2   : > { %v2986_v57 = vpop.f32.mrb[146].mxu0  ;;  %v8303_v27 = vpop.f32.mrb[178].mxu1 }
 0x3e3   : > { %v8305_v47 = vadd.f32 %v5415_v0, %v2986_v57  ;;  %v2988_v16 = vpop.f32.mrb[147].mxu0  ;;  %v8307_v11 = vpop.f32.mrb[179].mxu1  ;;  %v3790_v0 = vld [vmem:[#allocation2 + $0xe0] sm:$0xff] }
 0x3e4   : > { %4055 = vmatmul.mubr.f32.gmra.mrb[252].mxu0 %v3789_v20  ;;  %5604 = vmatmul.mubr.f32.gmra.mrb[28].mxu1 %v3868_v14 }
 0x3e5   : > { %4059 = vmatprep.mubr.f32.mxu0 %v8174_v7  ;;  %5606 = vmatprep.mubr.f32.mxu1 %v3869_v58 }
 0x3e6   : > { %v2991_v40 = vpop.f32.mrb[148].mxu0  ;;  %v8310_v3 = vpop.f32.mrb[180].mxu1 }
 0x3e7   : > { %v8312_v33 = vadd.f32 %v3216_v55, %v2991_v40  ;;  %v2993_v21 = vpop.f32.mrb[149].mxu0  ;;  %v8314_v23 = vpop.f32.mrb[181].mxu1  ;;  %v3791_v55 = vld [vmem:[#allocation2 + $0xf0] sm:$0xff] }
 0x3e8   : > { %4060 = vmatmul.mubr.f32.gmra.mrb[254].mxu0 %v3790_v0  ;;  %5607 = vmatmul.mubr.f32.gmra.mrb[30].mxu1 %v3870_v6  ;;  %v3797_v0 = vld [vmem:[#allocation2 + $0x138] sm:$0xff] }
 0x3e9   : > { %4064 = vmatprep.mubr.f32.mxu0 %v8181_v54 }
 0x3ea   : > { %v2996_v9 = vpop.f32.mrb[150].mxu0  ;;  %v8317_v52 = vpop.f32.mrb[182].mxu1 }
 0x3eb   : > { %v8320_v7 = vadd.f32 %v8277_v56, %v2996_v9  ;;  %v2998_v24 = vpop.f32.mrb[151].mxu0  ;;  %v8322_v13 = vpop.f32.mrb[183].mxu1 }
 0x3ec   : > { %4065 = vmatmul.mubr.f32.gmra.mrb[0].mxu0 %v3791_v55  ;;  %v3798_v55 = vld [vmem:[#allocation2 + $0x140] sm:$0xff] }
 0x3ed   : > { %4069 = vmatprep.mubr.f32.mxu0 %v8188_v26 }
 0x3ee   : > { %v3001_v44 = vpop.f32.mrb[152].mxu0  ;;  %v8325_v48 = vpop.f32.mrb[184].mxu1 }
 0x3ef   : > { %v8328_v22 = vadd.f32 %v8286_v32, %v3001_v44  ;;  %v3003_v54 = vpop.f32.mrb[153].mxu0  ;;  %v8330_v45 = vpop.f32.mrb[185].mxu1 }
 0x3f0   : > { %4070 = vmatmul.mubr.f32.gmra.mrb[2].mxu0 %v3792_v8 }
 0x3f1   : > { %4074 = vmatprep.mubr.f32.mxu0 %v8195_v49 }
 0x3f2   : > { %v3006_v56 = vpop.f32.mrb[154].mxu0  ;;  %v8333_v59 = vpop.f32.mrb[186].mxu1 }
 0x3f3   : > { %v8336_v60 = vadd.f32 %v8282_v51, %v3006_v56  ;;  %v3008_v26 = vpop.f32.mrb[155].mxu0  ;;  %v8338_v2 = vpop.f32.mrb[187].mxu1  ;;  %v3799_v56 = vld [vmem:[#allocation2 + $0x150] sm:$0xff] }
 0x3f4   : > { %4075 = vmatmul.mubr.f32.gmra.mrb[4].mxu0 %v3793_v43 }
 0x3f5   : > { %4079 = vmatprep.mubr.f32.mxu0 %v8202_v5 }
 0x3f6   : > { %v3011_v32 = vpop.f32.mrb[156].mxu0  ;;  %v8341_v62 = vpop.f32.mrb[188].mxu1 }
 0x3f7   : > { %v8344_v29 = vadd.f32 %v8293_v41, %v3011_v32  ;;  %v3013_v49 = vpop.f32.mrb[157].mxu0  ;;  %v8346_v31 = vpop.f32.mrb[189].mxu1 }
 0x3f8   : > { %4080 = vmatmul.mubr.f32.gmra.mrb[6].mxu0 %v3794_v17  ;;  %v3800_v49 = vld [vmem:[#allocation2 + $0x158] sm:$0xff] }
 0x3f9   : > { %4084 = vmatprep.mubr.f32.mxu0 %v8209_v4  ;;  %v3796_v4 = vld [vmem:[#allocation2 + $0x128] sm:$0xff] }
 0x3fa   : > { %v3016_v51 = vpop.f32.mrb[158].mxu0  ;;  %v8349_v63 = vpop.f32.mrb[190].mxu1 }
 0x3fb   : > { %v8352_v53 = vadd.f32 %v8289_v34, %v3016_v51  ;;  %v3018_v5 = vpop.f32.mrb[159].mxu0  ;;  %v8354_v35 = vpop.f32.mrb[191].mxu1  ;;  %v3833_v51 = vld [vmem:[#allocation2 + $0x169] sm:$0xff] }
 0x3fc   : > { %4085 = vmatmul.mubr.f32.gmra.mrb[8].mxu0 %v3795_v1 }
 0x3fd   : > { %4089 = vmatprep.mubr.f32.mxu0 %v8216_v28 }
 0x3fe   : > { %v3021_v41 = vpop.f32.mrb[160].mxu0 }
 0x3ff   : > { %v8358_v57 = vadd.f32 %v8300_v25, %v3021_v41  ;;  %v3391_v16 = vpop.f32.mrb[192].mxu1  ;;  %v3023_v20 = vpop.f32.mrb[161].mxu0  ;;  %v3801_v41 = vld [vmem:[#allocation2 + $0x168] sm:$0xff] }
 0x400   : > { %v8361_v14 = vadd.f32 %v3391_v16, %v8262_v39  ;;  %v3393_v58 = vpop.f32.mrb[193].mxu1  ;;  %4090 = vmatmul.mubr.f32.gmra.mrb[10].mxu0 %v3796_v4  ;;  %v3834_v20 = vld [vmem:[#allocation2 + $0x171] sm:$0xff] }
 0x401   : > { %4094 = vmatprep.mubr.f32.mxu0 %v8223_v15 }
 0x402   : > { %v3026_v34 = vpop.f32.mrb[162].mxu0 }
 0x403   : > { %v8365_v40 = vadd.f32 %v8296_v50, %v3026_v34  ;;  %v3396_v21 = vpop.f32.mrb[194].mxu1  ;;  %v3028_v28 = vpop.f32.mrb[163].mxu0 }
 0x404   : > { %v8368_v25 = vadd.f32 %v3396_v21, %v8265_v10  ;;  %v3398_v6 = vpop.f32.mrb[195].mxu1  ;;  %4095 = vmatmul.mubr.f32.gmra.mrb[12].mxu0 %v3797_v0  ;;  %v3802_v21 = vld [vmem:[#allocation2 + $0x170] sm:$0xff]  ;;  %v3835_v0 = vld [vmem:[#allocation2 + $0x181] sm:$0xff] }
 0x405   : > { %4099 = vmatprep.mubr.f32.mxu0 %v8230_v19 }
 0x406   : > { %v3031_v39 = vpop.f32.mrb[164].mxu0 }
 0x407   : > { %v8372_v9 = vadd.f32 %v8307_v11, %v3031_v39  ;;  %v3401_v24 = vpop.f32.mrb[196].mxu1  ;;  %v3033_v15 = vpop.f32.mrb[165].mxu0 }
 0x408   : > { %v8375_v50 = vadd.f32 %v3401_v24, %v8268_v30  ;;  %v3403_v44 = vpop.f32.mrb[197].mxu1  ;;  %4100 = vmatmul.mubr.f32.gmra.mrb[14].mxu0 %v3798_v55  ;;  %v3803_v15 = vld [vmem:[#allocation2 + $0x180] sm:$0xff] }
 0x409   : > { %4104 = vmatprep.mubr.f32.mxu0 %v8237_v12  ;;  %v3836_v44 = vld [vmem:[#allocation2 + $0x189] sm:$0xff] }
 0x40a   : > { %v3036_v10 = vpop.f32.mrb[166].mxu0 }
 0x40b   : > { %v8379_v54 = vadd.f32 %v8303_v27, %v3036_v10  ;;  %v3406_v8 = vpop.f32.mrb[198].mxu1  ;;  %v3038_v19 = vpop.f32.mrb[167].mxu0 }
 0x40c   : > { %v8382_v11 = vadd.f32 %v3406_v8, %v8271_v42  ;;  %v3408_v26 = vpop.f32.mrb[199].mxu1  ;;  %4105 = vmatmul.mubr.f32.gmra.mrb[16].mxu0 %v3799_v56  ;;  %v3804_v56 = vld [vmem:[#allocation2 + $0x188] sm:$0xff] }
 0x40d   : > { %4109 = vmatprep.mubr.f32.mxu0 %v8244_v46 }
 0x40e   : > { %v3041_v30 = vpop.f32.mrb[168].mxu0 }
 0x40f   : > { %v8386_v43 = vadd.f32 %v8314_v23, %v3041_v30  ;;  %v3411_v32 = vpop.f32.mrb[200].mxu1  ;;  %v3043_v12 = vpop.f32.mrb[169].mxu0  ;;  %v3837_v30 = vld [vmem:[#allocation2 + $0x199] sm:$0xff] }
 0x410   : > { %v8389_v27 = vadd.f32 %v3411_v32, %v8274_v61  ;;  %v3413_v17 = vpop.f32.mrb[201].mxu1  ;;  %4110 = vmatmul.mubr.f32.gmra.mrb[18].mxu0 %v3800_v49 }
 0x411   : > { %4114 = vmatprep.mubr.f32.mxu0 %v3833_v51  ;;  %v3805_v17 = vld [vmem:[#allocation2 + $0x198] sm:$0xff] }
 0x412   : > { %v3046_v42 = vpop.f32.mrb[170].mxu0 }
 0x413   : > { %v8392_v5 = vadd.f32 %v8310_v3, %v3046_v42  ;;  %v3416_v1 = vpop.f32.mrb[202].mxu1  ;;  %v3048_v46 = vpop.f32.mrb[171].mxu0  ;;  %v3838_v42 = vld [vmem:[#allocation2 + $0x1a1] sm:$0xff] }
 0x414   : > { %v8395_v23 = vadd.f32 %v3416_v1, %v8279_v37  ;;  %v3418_v16 = vpop.f32.mrb[203].mxu1  ;;  %4115 = vmatmul.mubr.f32.gmra.mrb[20].mxu0 %v3801_v41 }
 0x415   : > { %4119 = vmatprep.mubr.f32.mxu0 %v3834_v20  ;;  %v3806_v16 = vld [vmem:[#allocation2 + $0x1a0] sm:$0xff] }
 0x416   : > { %v3051_v61 = vpop.f32.mrb[172].mxu0 }
 0x417   : > { %v8398_v4 = vadd.f32 %v8322_v13, %v3051_v61  ;;  %v3421_v58 = vpop.f32.mrb[204].mxu1  ;;  %v3053_v34 = vpop.f32.mrb[173].mxu0 }
 0x418   : > { %v8401_v3 = vadd.f32 %v3421_v58, %v8284_v36  ;;  %v3423_v28 = vpop.f32.mrb[205].mxu1  ;;  %4120 = vmatmul.mubr.f32.gmra.mrb[22].mxu0 %v3802_v21 }
 0x419   : > { %4124 = vmatprep.mubr.f32.mxu0 %v3835_v0 }
 0x41a   : > { %v3056_v37 = vpop.f32.mrb[174].mxu0 }
 0x41b   : > { %v8404_v6 = vadd.f32 %v8317_v52, %v3056_v37  ;;  %v3426_v39 = vpop.f32.mrb[206].mxu1  ;;  %v3058_v24 = vpop.f32.mrb[175].mxu0 }
 0x41c   : > { %v8407_v13 = vadd.f32 %v3426_v39, %v8291_v18  ;;  %v3428_v55 = vpop.f32.mrb[207].mxu1  ;;  %4125 = vmatmul.mubr.f32.gmra.mrb[24].mxu0 %v3803_v15 }
 0x41d   : > { %4129 = vmatprep.mubr.f32.mxu0 %v3836_v44 }
 0x41e   : > { %v3061_v36 = vpop.f32.mrb[176].mxu0 }
 0x41f   : > { %v8410_v10 = vadd.f32 %v8330_v45, %v3061_v36  ;;  %v3431_v8 = vpop.f32.mrb[208].mxu1  ;;  %v3063_v19 = vpop.f32.mrb[177].mxu0 }
 0x420   : > { %v8413_v52 = vadd.f32 %v3431_v8, %v8298_v38  ;;  %v3433_v26 = vpop.f32.mrb[209].mxu1  ;;  %4130 = vmatmul.mubr.f32.gmra.mrb[26].mxu0 %v3804_v56 }
 0x421   : > { %4134 = vmatprep.mubr.f32.mxu0 %v3837_v30 }
 0x422   : > { %v3066_v18 = vpop.f32.mrb[178].mxu0 }
 0x423   : > { %v8416_v32 = vadd.f32 %v8325_v48, %v3066_v18  ;;  %v3436_v12 = vpop.f32.mrb[210].mxu1  ;;  %v3068_v49 = vpop.f32.mrb[179].mxu0 }
 0x424   : > { %v8419_v45 = vadd.f32 %v3436_v12, %v8305_v47  ;;  %v3438_v51 = vpop.f32.mrb[211].mxu1  ;;  %4135 = vmatmul.mubr.f32.gmra.mrb[28].mxu0 %v3805_v17 }
 0x425   : > { %4139 = vmatprep.mubr.f32.mxu0 %v3838_v42 }
 0x426   : > { %v3071_v38 = vpop.f32.mrb[180].mxu0 }
 0x427   : > { %v8422_v1 = vadd.f32 %v8338_v2, %v3071_v38  ;;  %v3441_v46 = vpop.f32.mrb[212].mxu1  ;;  %v3073_v41 = vpop.f32.mrb[181].mxu0 }
 0x428   : > { %v8425_v48 = vadd.f32 %v3441_v46, %v8312_v33  ;;  %v3443_v20 = vpop.f32.mrb[213].mxu1  ;;  %4140 = vmatmul.mubr.f32.gmra.mrb[30].mxu0 %v3806_v16 }
 0x42a   : > { %v3076_v61 = vpop.f32.mrb[182].mxu0 }
 0x42b   : > { %v8428_v47 = vadd.f32 %v8333_v59, %v3076_v61  ;;  %v3446_v58 = vpop.f32.mrb[214].mxu1  ;;  %v3078_v34 = vpop.f32.mrb[183].mxu0 }
 0x42c   : > { %v8431_v21 = vadd.f32 %v3446_v58, %v8320_v7  ;;  %v3448_v28 = vpop.f32.mrb[215].mxu1 }
 0x42e   : > { %v3081_v2 = vpop.f32.mrb[184].mxu0 }
 0x42f   : > { %v8434_v0 = vadd.f32 %v8346_v31, %v3081_v2  ;;  %v3451_v37 = vpop.f32.mrb[216].mxu1  ;;  %v3083_v39 = vpop.f32.mrb[185].mxu0 }
 0x430   : > { %v8437_v33 = vadd.f32 %v3451_v37, %v8328_v22  ;;  %v3453_v24 = vpop.f32.mrb[217].mxu1 }
 0x432   : > { %v3086_v15 = vpop.f32.mrb[186].mxu0 }
 0x433   : > { %v8440_v59 = vadd.f32 %v8341_v62, %v3086_v15  ;;  %v3456_v55 = vpop.f32.mrb[218].mxu1  ;;  %v3088_v44 = vpop.f32.mrb[187].mxu0 }
 0x434   : > { %v3457_v7 = vadd.f32 %v3456_v55, %v8336_v60  ;;  %v3458_v36 = vpop.f32.mrb[219].mxu1 }
 0x436   : > { %v3091_v8 = vpop.f32.mrb[188].mxu0 }
 0x437   : > { %v8444_v19 = vadd.f32 %v8354_v35, %v3091_v8  ;;  %v3461_v31 = vpop.f32.mrb[220].mxu1  ;;  %v3093_v56 = vpop.f32.mrb[189].mxu0 }
 0x438   : > { %v8447_v26 = vadd.f32 %v3461_v31, %v8344_v29  ;;  %v3463_v22 = vpop.f32.mrb[221].mxu1 }
 0x43a   : > { %v3096_v30 = vpop.f32.mrb[190].mxu0 }
 0x43b   : > { %v8450_v18 = vadd.f32 %v8349_v63, %v3096_v30  ;;  %v3466_v62 = vpop.f32.mrb[222].mxu1  ;;  %v3098_v12 = vpop.f32.mrb[191].mxu0 }
 0x43c   : > { %v3467_v49 = vadd.f32 %v3466_v62, %v8352_v53  ;;  %v3468_v60 = vpop.f32.mrb[223].mxu1 }
 0x43e   : > { %v5483_v17 = vpop.f32.mrb[192].mxu0 }
 0x43f   : > { %v3471_v51 = vpop.f32.mrb[224].mxu1  ;;  %v8454_v35 = vadd.f32 %v5483_v17, %v8368_v25  ;;  %v3616_v42 = vpop.f32.mrb[193].mxu0 }
 0x440   : > { %v3472_v38 = vadd.f32 %v3471_v51, %v8358_v57  ;;  %v3473_v29 = vpop.f32.mrb[225].mxu1  ;;  %v8458_v46 = vadd.f32 %v3616_v42, %v8361_v14 }
 0x442   : > { %v5486_v41 = vpop.f32.mrb[194].mxu0 }
 0x443   : > { %v3476_v63 = vpop.f32.mrb[226].mxu1  ;;  %v8461_v16 = vadd.f32 %v5486_v41, %v8382_v11  ;;  %v3626_v20 = vpop.f32.mrb[195].mxu0 }
 0x444   : > { %v3477_v53 = vadd.f32 %v3476_v63, %v8365_v40  ;;  %v3478_v61 = vpop.f32.mrb[227].mxu1  ;;  %v8465_v58 = vadd.f32 %v3626_v20, %v8375_v50 }
 0x446   : > { %v5489_v25 = vpop.f32.mrb[196].mxu0 }
 0x447   : > { %v3481_v34 = vpop.f32.mrb[228].mxu1  ;;  %v8468_v57 = vadd.f32 %v5489_v25, %v8395_v23  ;;  %v3636_v28 = vpop.f32.mrb[197].mxu0 }
 0x448   : > { %v3482_v14 = vadd.f32 %v3481_v34, %v8372_v9  ;;  %v3483_v2 = vpop.f32.mrb[229].mxu1  ;;  %v8472_v37 = vadd.f32 %v3636_v28, %v8389_v27 }
 0x44a   : > { %v5492_v11 = vpop.f32.mrb[198].mxu0 }
 0x44b   : > { %v3486_v39 = vpop.f32.mrb[230].mxu1  ;;  %v8475_v40 = vadd.f32 %v5492_v11, %v8407_v13  ;;  %v3646_v24 = vpop.f32.mrb[199].mxu0 }
 0x44c   : > { %v3487_v50 = vadd.f32 %v3486_v39, %v8379_v54  ;;  %v3488_v15 = vpop.f32.mrb[231].mxu1  ;;  %v8479_v55 = vadd.f32 %v3646_v24, %v8401_v3 }
 0x44e   : > { %v5495_v23 = vpop.f32.mrb[200].mxu0 }
 0x44f   : > { %v3491_v44 = vpop.f32.mrb[232].mxu1  ;;  %v8482_v9 = vadd.f32 %v5495_v23, %v8419_v45  ;;  %v3656_v36 = vpop.f32.mrb[201].mxu0 }
 0x450   : > { %v3492_v27 = vadd.f32 %v3491_v44, %v8386_v43  ;;  %v3493_v8 = vpop.f32.mrb[233].mxu1  ;;  %v8486_v31 = vadd.f32 %v3656_v36, %v8413_v52 }
 0x452   : > { %v5498_v13 = vpop.f32.mrb[202].mxu0 }
 0x453   : > { %v3496_v56 = vpop.f32.mrb[234].mxu1  ;;  %v8489_v54 = vadd.f32 %v5498_v13, %v8431_v21  ;;  %v3666_v22 = vpop.f32.mrb[203].mxu0 }
 0x454   : > { %v3497_v3 = vadd.f32 %v3496_v56, %v8392_v5  ;;  %v3498_v30 = vpop.f32.mrb[235].mxu1  ;;  %v8493_v62 = vadd.f32 %v3666_v22, %v8425_v48 }
 0x456   : > { %v5501_v45 = vpop.f32.mrb[204].mxu0 }
 0x457   : > { %v3501_v12 = vpop.f32.mrb[236].mxu1  ;;  %v8495_v60 = vadd.f32 %v5501_v45, %v3457_v7  ;;  %v3676_v43 = vpop.f32.mrb[205].mxu0 }
 0x458   : > { %v3502_v52 = vadd.f32 %v3501_v12, %v8398_v4  ;;  %v3503_v17 = vpop.f32.mrb[237].mxu1  ;;  %v8499_v51 = vadd.f32 %v3676_v43, %v8437_v33 }
 0x45a   : > { %v5504_v21 = vpop.f32.mrb[206].mxu0 }
 0x45b   : > { %v3506_v42 = vpop.f32.mrb[238].mxu1  ;;  %v8501_v29 = vadd.f32 %v5504_v21, %v3467_v49  ;;  %v3686_v5 = vpop.f32.mrb[207].mxu0 }
 0x45c   : > { %v3507_v41 = vadd.f32 %v3506_v42, %v8404_v6  ;;  %v3508_v48 = vpop.f32.mrb[239].mxu1  ;;  %v8505_v63 = vadd.f32 %v3686_v5, %v8447_v26 }
 0x45e   : > { %v5507_v7 = vpop.f32.mrb[208].mxu0 }
 0x45f   : > { %v3511_v20 = vpop.f32.mrb[240].mxu1  ;;  %v8507_v61 = vadd.f32 %v5507_v7, %v3477_v53  ;;  %v3696_v4 = vpop.f32.mrb[209].mxu0 }
 0x460   : > { %v3512_v25 = vadd.f32 %v3511_v20, %v8410_v10  ;;  %v3513_v33 = vpop.f32.mrb[241].mxu1  ;;  %v8510_v34 = vadd.f32 %v3696_v4, %v3472_v38 }
 0x462   : > { %v5510_v28 = vpop.f32.mrb[210].mxu0 }
 0x463   : > { %v3516_v49 = vpop.f32.mrb[242].mxu1  ;;  %v8512_v2 = vadd.f32 %v5510_v28, %v3487_v50  ;;  %v3706_v11 = vpop.f32.mrb[211].mxu0 }
 0x464   : > { %v3517_v6 = vadd.f32 %v3516_v49, %v8416_v32  ;;  %v3518_v39 = vpop.f32.mrb[243].mxu1  ;;  %v8515_v26 = vadd.f32 %v3706_v11, %v3482_v14 }
 0x466   : > { %v5513_v24 = vpop.f32.mrb[212].mxu0 }
 0x467   : > { %v3521_v15 = vpop.f32.mrb[244].mxu1  ;;  %v8517_v53 = vadd.f32 %v5513_v24, %v3497_v3  ;;  %v3716_v23 = vpop.f32.mrb[213].mxu0 }
 0x468   : > { %v3522_v10 = vadd.f32 %v3521_v15, %v8422_v1  ;;  %v3523_v44 = vpop.f32.mrb[245].mxu1  ;;  %v8520_v38 = vadd.f32 %v3716_v23, %v3492_v27 }
 0x46a   : > { %v5516_v36 = vpop.f32.mrb[214].mxu0 }
 0x46b   : > { %v3526_v8 = vpop.f32.mrb[246].mxu1  ;;  %v8522_v50 = vadd.f32 %v5516_v36, %v3507_v41  ;;  %v3726_v13 = vpop.f32.mrb[215].mxu0 }
 0x46c   : > { %v3527_v32 = vadd.f32 %v3526_v8, %v8428_v47  ;;  %v3528_v56 = vpop.f32.mrb[247].mxu1  ;;  %v8525_v14 = vadd.f32 %v3726_v13, %v3502_v52 }
 0x46e   : > { %v5519_v22 = vpop.f32.mrb[216].mxu0 }
 0x46f   : > { %v3531_v30 = vpop.f32.mrb[248].mxu1  ;;  %v8527_v3 = vadd.f32 %v5519_v22, %v3517_v6  ;;  %v3736_v45 = vpop.f32.mrb[217].mxu0 }
 0x470   : > { %v3532_v1 = vadd.f32 %v3531_v30, %v8434_v0  ;;  %v3533_v12 = vpop.f32.mrb[249].mxu1  ;;  %v8530_v27 = vadd.f32 %v3736_v45, %v3512_v25 }
 0x472   : > { %v5522_v43 = vpop.f32.mrb[218].mxu0 }
 0x473   : > { %v3536_v17 = vpop.f32.mrb[250].mxu1  ;;  %v8532_v21 = vadd.f32 %v5522_v43, %v3527_v32  ;;  %v3746_v42 = vpop.f32.mrb[219].mxu0 }
 0x474   : > { %v3537_v47 = vadd.f32 %v3536_v17, %v8440_v59  ;;  %v3538_v5 = vpop.f32.mrb[251].mxu1  ;;  %v8535_v52 = vadd.f32 %v3746_v42, %v3522_v10 }
 0x476   : > { %v5525_v41 = vpop.f32.mrb[220].mxu0 }
 0x477   : > { %v3541_v48 = vpop.f32.mrb[252].mxu1  ;;  %v8537_v7 = vadd.f32 %v5525_v41, %v3537_v47  ;;  %v3756_v20 = vpop.f32.mrb[221].mxu0 }
 0x478   : > { %v3542_v0 = vadd.f32 %v3541_v48, %v8444_v19  ;;  %v3543_v4 = vpop.f32.mrb[253].mxu1  ;;  %v8540_v25 = vadd.f32 %v3756_v20, %v3532_v1 }
 0x47a   : > { %v5528_v33 = vpop.f32.mrb[222].mxu0 }
 0x47b   : > { %v3546_v28 = vpop.f32.mrb[254].mxu1  ;;  %v3766_v49 = vpop.f32.mrb[223].mxu0 }
 0x47c   : > { %v3547_v11 = vadd.f32 %v3546_v28, %v8450_v18  ;;  %v3548_v6 = vpop.f32.mrb[255].mxu1  ;;  %v8543_v59 = vadd.f32 %v3766_v49, %v3542_v0 }
 0x47e   : > { %v8545_v39 = vadd.f32 %v5528_v33, %v3547_v11 }
 0x47f   : > { %v3986_v24 = vpop.f32.mrb[224].mxu0  ;;  %v5563_v15 = vpop.f32.mrb[0].mxu1 }
 0x480   : > { %v3988_v23 = vpop.f32.mrb[225].mxu0  ;;  %v4211_v10 = vpop.f32.mrb[1].mxu1 }
 0x481   : > { %v4212_v44 = vadd.f32 %v4211_v10, %v3986_v24 }
 0x483   : > { %v8548_v19 = vadd.f32 %v4212_v44, %v8458_v46  ;;  %v3991_v36 = vpop.f32.mrb[226].mxu0  ;;  %v5566_v8 = vpop.f32.mrb[2].mxu1 }
 0x484   : > { %v4217_v13 = vadd.f32 %v5563_v15, %v3991_v36  ;;  %v3993_v32 = vpop.f32.mrb[227].mxu0  ;;  %v4221_v56 = vpop.f32.mrb[3].mxu1 }
 0x486   : > { %v4371_v18 = vadd.f32 %v4217_v13, %v8454_v35 }
 0x487   : > { %v3996_v22 = vpop.f32.mrb[228].mxu0  ;;  %v5569_v30 = vpop.f32.mrb[4].mxu1 }
 0x488   : > { %v4222_v45 = vadd.f32 %v4221_v56, %v3996_v22  ;;  %v3998_v1 = vpop.f32.mrb[229].mxu0  ;;  %v4231_v12 = vpop.f32.mrb[5].mxu1 }
 0x48a   : > { %v4372_v43 = vadd.f32 %v4222_v45, %v8465_v58 }
 0x48b   : > { %v4001_v17 = vpop.f32.mrb[230].mxu0  ;;  %v5572_v42 = vpop.f32.mrb[6].mxu1 }
 0x48c   : > { %v4227_v47 = vadd.f32 %v5566_v8, %v4001_v17  ;;  %v4003_v5 = vpop.f32.mrb[231].mxu0  ;;  %v4241_v46 = vpop.f32.mrb[7].mxu1 }
 0x48e   : > { %v4373_v41 = vadd.f32 %v4227_v47, %v8461_v16 }
 0x48f   : > { %v4006_v48 = vpop.f32.mrb[232].mxu0  ;;  %v5575_v20 = vpop.f32.mrb[8].mxu1 }
 0x490   : > { %v4232_v0 = vadd.f32 %v4231_v12, %v4006_v48  ;;  %v4008_v4 = vpop.f32.mrb[233].mxu0  ;;  %v4251_v33 = vpop.f32.mrb[9].mxu1 }
 0x492   : > { %v4374_v35 = vadd.f32 %v4232_v0, %v8472_v37 }
 0x493   : > { %v4011_v28 = vpop.f32.mrb[234].mxu0  ;;  %v5578_v49 = vpop.f32.mrb[10].mxu1 }
 0x494   : > { %v4237_v11 = vadd.f32 %v5569_v30, %v4011_v28  ;;  %v4013_v6 = vpop.f32.mrb[235].mxu0  ;;  %v4261_v24 = vpop.f32.mrb[11].mxu1 }
 0x496   : > { %v4375_v58 = vadd.f32 %v4237_v11, %v8468_v57 }
 0x497   : > { %v4016_v15 = vpop.f32.mrb[236].mxu0  ;;  %v5581_v23 = vpop.f32.mrb[12].mxu1 }
 0x498   : > { %v4242_v10 = vadd.f32 %v4241_v46, %v4016_v15  ;;  %v4018_v44 = vpop.f32.mrb[237].mxu0  ;;  %v4271_v36 = vpop.f32.mrb[13].mxu1 }
 0x49a   : > { %v4376_v16 = vadd.f32 %v4242_v10, %v8479_v55 }
 0x49b   : > { %v4021_v8 = vpop.f32.mrb[238].mxu0  ;;  %v8556_v13 = vpop.f32.mrb[14].mxu1 }
 0x49c   : > { %v4247_v32 = vadd.f32 %v5572_v42, %v4021_v8  ;;  %v4023_v56 = vpop.f32.mrb[239].mxu0  ;;  %v4281_v37 = vpop.f32.mrb[15].mxu1 }
 0x49e   : > { %v4377_v22 = vadd.f32 %v4247_v32, %v8475_v40 }
 0x49f   : > { %v4026_v30 = vpop.f32.mrb[240].mxu0  ;;  %v8559_v45 = vpop.f32.mrb[16].mxu1 }
 0x4a0   : > { %v4252_v1 = vadd.f32 %v4251_v33, %v4026_v30  ;;  %v4028_v57 = vpop.f32.mrb[241].mxu0  ;;  %v8561_v12 = vpop.f32.mrb[17].mxu1 }
 0x4a2   : > { %v4378_v17 = vadd.f32 %v4252_v1, %v8486_v31  ;;  %v8576_v31 = vld [vmem:[%s9094_s4] ss:$0 sm:$0xff] }
 0x4a3   : > { %v4031_v47 = vpop.f32.mrb[242].mxu0  ;;  %v8564_v5 = vpop.f32.mrb[18].mxu1  ;;  %v8591_v8 = vadd.f32 %v8576_v31, %v4372_v43 }
 0x4a4   : > { %v4257_v55 = vadd.f32 %v5575_v20, %v4031_v47  ;;  %v4033_v46 = vpop.f32.mrb[243].mxu0  ;;  %v8566_v48 = vpop.f32.mrb[19].mxu1  ;;  %v8580_v20 = vadd.f32 %v8576_v31, %v4371_v18  ;;  %v8597_v18 = vadd.f32 %v8576_v31, %v4373_v41 }
 0x4a5   : > { %v4480_v43 = vmul.f32 %v8591_v8, %v8591_v8  ;;  %v8616_v46 = vadd.f32 %v8576_v31, %v4375_v58 }
 0x4a6   : > { %v4379_v42 = vadd.f32 %v4257_v55, %v8482_v9 }
 0x4a7   : > { %v4036_v0 = vpop.f32.mrb[244].mxu0  ;;  %v8569_v40 = vpop.f32.mrb[20].mxu1 }
 0x4a8   : > { %v4262_v4 = vadd.f32 %v4261_v24, %v4036_v0  ;;  %v4038_v28 = vpop.f32.mrb[245].mxu0  ;;  %v8571_v33 = vpop.f32.mrb[21].mxu1  ;;  %v8588_v24 = vadd.f32 %v8576_v31, %v8548_v19 }
 0x4aa   : > { %v4380_v11 = vadd.f32 %v4262_v4, %v8493_v62  ;;  %v4479_v62 = vmul.f32 %v8580_v20, %v8580_v20  ;;  %v4478_v19 = vmul.f32 %v8588_v24, %v8588_v24  ;;  %v4441_v41 = vadd.f32 %v8580_v20, %v8588_v24 }
 0x4ab   : > { %v4041_v6 = vpop.f32.mrb[246].mxu0  ;;  %v8582_v15 = vpop.f32.mrb[22].mxu1 }
 0x4ac   : > { %v4267_v9 = vadd.f32 %v5578_v49, %v4041_v6  ;;  %v4043_v10 = vpop.f32.mrb[247].mxu0  ;;  %v8584_v44 = vpop.f32.mrb[23].mxu1  ;;  %v4510_v55 = vadd.f32 %v4479_v62, %v4478_v19  ;;  %v4442_v28 = vadd.f32 %v4441_v41, %v8591_v8  ;;  %v8626_v62 = vadd.f32 %v8576_v31, %v4376_v16 }
 0x4ae   : > { %v4381_v32 = vadd.f32 %v4267_v9, %v8489_v54  ;;  %v8608_v54 = vadd.f32 %v8576_v31, %v4374_v35  ;;  %v4511_v10 = vadd.f32 %v4510_v55, %v4480_v43  ;;  %9198 = vst [vmem:[#allocation13_spill] sm:$0xff] %v8626_v62 }
 0x4af   : > { %v4046_v56 = vpop.f32.mrb[248].mxu0  ;;  %v8599_v49 = vpop.f32.mrb[24].mxu1 }
 0x4b0   : > { %v4272_v30 = vadd.f32 %v4271_v36, %v4046_v56  ;;  %v4048_v1 = vpop.f32.mrb[249].mxu0  ;;  %v8601_v57 = vpop.f32.mrb[25].mxu1  ;;  %v4481_v36 = vmul.f32 %v8597_v18, %v8597_v18  ;;  %v4443_v56 = vadd.f32 %v4442_v28, %v8597_v18 }
 0x4b1   : > { %v4483_v1 = vmul.f32 %v8616_v46, %v8616_v46 }
 0x4b2   : > { %v4382_v47 = vadd.f32 %v4272_v30, %v8499_v51  ;;  %v4482_v51 = vmul.f32 %v8608_v54, %v8608_v54  ;;  %v4512_v30 = vadd.f32 %v4511_v10, %v4481_v36  ;;  %v4444_v43 = vadd.f32 %v4443_v56, %v8608_v54 }
 0x4b3   : > { %v4051_v0 = vpop.f32.mrb[250].mxu0  ;;  %v8618_v4 = vpop.f32.mrb[26].mxu1  ;;  %v8643_v36 = vadd.f32 %v8576_v31, %v4378_v17 }
 0x4b4   : > { %v4277_v6 = vadd.f32 %v5581_v23, %v4051_v0  ;;  %v4053_v35 = vpop.f32.mrb[251].mxu0  ;;  %v8621_v9 = vpop.f32.mrb[27].mxu1  ;;  %v8633_v23 = vadd.f32 %v8576_v31, %v4377_v22  ;;  %v4445_v28 = vadd.f32 %v4444_v43, %v8616_v46 }
 0x4b5   : > { %v4513_v35 = vadd.f32 %v4512_v30, %v4482_v51 }
 0x4b6   : > { %v4383_v58 = vadd.f32 %v4277_v6, %v8495_v60  ;;  %v4484_v60 = vmul.f32 %v8626_v62, %v8626_v62  ;;  %v4485_v10 = vmul.f32 %v8633_v23, %v8633_v23  ;;  %v4446_v51 = vadd.f32 %v4445_v28, %v8626_v62 }
 0x4b7   : > { %v4056_v19 = vpop.f32.mrb[252].mxu0  ;;  %v8635_v41 = vpop.f32.mrb[28].mxu1  ;;  %v4514_v6 = vadd.f32 %v4513_v35, %v4483_v1  ;;  %v8661_v1 = vadd.f32 %v8576_v31, %v4380_v11 }
 0x4b8   : > { %v4282_v55 = vadd.f32 %v4281_v37, %v4056_v19  ;;  %v4058_v0 = vpop.f32.mrb[253].mxu0  ;;  %v8638_v16 = vpop.f32.mrb[29].mxu1  ;;  %v8650_v37 = vadd.f32 %v8576_v31, %v4379_v42  ;;  %v4447_v42 = vadd.f32 %v4446_v51, %v8633_v23  ;;  %v8675_v51 = vadd.f32 %v8576_v31, %v4382_v47 }
 0x4b9   : > { %v4515_v43 = vadd.f32 %v4514_v6, %v4484_v60  ;;  %v4488_v11 = vmul.f32 %v8661_v1, %v8661_v1 }
 0x4ba   : > { %v4384_v22 = vadd.f32 %v4282_v55, %v8505_v63  ;;  %v4486_v63 = vmul.f32 %v8643_v36, %v8643_v36  ;;  %v4487_v28 = vmul.f32 %v8650_v37, %v8650_v37  ;;  %v4448_v60 = vadd.f32 %v4447_v42, %v8643_v36 }
 0x4bb   : > { %v4061_v56 = vpop.f32.mrb[254].mxu0  ;;  %v8652_v19 = vpop.f32.mrb[30].mxu1  ;;  %v4516_v35 = vadd.f32 %v4515_v43, %v4485_v10  ;;  %v8682_v43 = vadd.f32 %v8576_v31, %v4383_v58  ;;  %v4490_v47 = vmul.f32 %v8675_v51, %v8675_v51 }
 0x4bc   : > { %v4287_v30 = vadd.f32 %v8556_v13, %v4061_v56  ;;  %v4063_v17 = vpop.f32.mrb[255].mxu0  ;;  %v8656_v0 = vpop.f32.mrb[31].mxu1  ;;  %v8668_v13 = vadd.f32 %v8576_v31, %v4381_v32 }
 0x4bd   : > { %v4517_v62 = vadd.f32 %v4516_v35, %v4486_v63  ;;  %v4491_v58 = vmul.f32 %v8682_v43, %v8682_v43 }
 0x4be   : > { %v4385_v55 = vadd.f32 %v4287_v30, %v8501_v29  ;;  %v4449_v29 = vadd.f32 %v4448_v60, %v8650_v37  ;;  %v4489_v32 = vmul.f32 %v8668_v13, %v8668_v13  ;;  %v8689_v60 = vadd.f32 %v8576_v31, %v4384_v22 }
 0x4bf   : > { %v4066_v56 = vpop.f32.mrb[0].mxu0  ;;  %v4518_v30 = vadd.f32 %v4517_v62, %v4487_v28 }
 0x4c0   : > { %v4292_v6 = vadd.f32 %v8561_v12, %v4066_v56  ;;  %v4068_v17 = vpop.f32.mrb[1].mxu0  ;;  %v4450_v63 = vadd.f32 %v4449_v29, %v8661_v1  ;;  %v4492_v22 = vmul.f32 %v8689_v60, %v8689_v60 }
 0x4c1   : > { %v4519_v56 = vadd.f32 %v4518_v30, %v4488_v11 }
 0x4c2   : > { %v4386_v10 = vadd.f32 %v4292_v6, %v8510_v34  ;;  %v4451_v34 = vadd.f32 %v4450_v63, %v8668_v13  ;;  %v8696_v6 = vadd.f32 %v8576_v31, %v4385_v55 }
 0x4c3   : > { %v4071_v12 = vpop.f32.mrb[2].mxu0  ;;  %v4520_v28 = vadd.f32 %v4519_v56, %v4489_v32 }
 0x4c4   : > { %v4297_v42 = vadd.f32 %v8559_v45, %v4071_v12  ;;  %v4073_v35 = vpop.f32.mrb[3].mxu0  ;;  %v4452_v17 = vadd.f32 %v4451_v34, %v8675_v51  ;;  %v8703_v12 = vadd.f32 %v8576_v31, %v4386_v10  ;;  %v4493_v55 = vmul.f32 %v8696_v6, %v8696_v6 }
 0x4c5   : > { %v4521_v30 = vadd.f32 %v4520_v28, %v4490_v47 }
 0x4c6   : > { %v4387_v62 = vadd.f32 %v4297_v42, %v8507_v61  ;;  %v4453_v61 = vadd.f32 %v4452_v17, %v8682_v43  ;;  %v4494_v10 = vmul.f32 %v8703_v12, %v8703_v12 }
 0x4c7   : > { %v4076_v45 = vpop.f32.mrb[4].mxu0  ;;  %v4522_v63 = vadd.f32 %v4521_v30, %v4491_v58 }
 0x4c8   : > { %v4302_v11 = vadd.f32 %v8566_v48, %v4076_v45  ;;  %v4078_v29 = vpop.f32.mrb[5].mxu0  ;;  %v8710_v42 = vadd.f32 %v8576_v31, %v4387_v62  ;;  %v4454_v35 = vadd.f32 %v4453_v61, %v8689_v60 }
 0x4c9   : > { %v4523_v34 = vadd.f32 %v4522_v63, %v4492_v22 }
 0x4ca   : > { %v4388_v32 = vadd.f32 %v4302_v11, %v8515_v26  ;;  %v4455_v28 = vadd.f32 %v4454_v35, %v8696_v6  ;;  %v4495_v62 = vmul.f32 %v8710_v42, %v8710_v42 }
 0x4cb   : > { %v4081_v48 = vpop.f32.mrb[6].mxu0  ;;  %v4524_v45 = vadd.f32 %v4523_v34, %v4493_v55 }
 0x4cc   : > { %v4307_v56 = vadd.f32 %v8564_v5, %v4081_v48  ;;  %v4083_v47 = vpop.f32.mrb[7].mxu0  ;;  %v8718_v26 = vadd.f32 %v8576_v31, %v4388_v32  ;;  %v4456_v11 = vadd.f32 %v4455_v28, %v8703_v12 }
 0x4cd   : > { %v4525_v22 = vadd.f32 %v4524_v45, %v4494_v10 }
 0x4ce   : > { %v4389_v58 = vadd.f32 %v4307_v56, %v8512_v2  ;;  %v4457_v61 = vadd.f32 %v4456_v11, %v8710_v42  ;;  %v4496_v32 = vmul.f32 %v8718_v26, %v8718_v26 }
 0x4cf   : > { %v4086_v17 = vpop.f32.mrb[8].mxu0  ;;  %v4526_v63 = vadd.f32 %v4525_v22, %v4495_v62 }
 0x4d0   : > { %v8725_v5 = vadd.f32 %v8576_v31, %v4389_v58  ;;  %v4312_v29 = vadd.f32 %v8571_v33, %v4086_v17  ;;  %v4088_v30 = vpop.f32.mrb[9].mxu0  ;;  %v4458_v48 = vadd.f32 %v4457_v61, %v8718_v26 }
 0x4d1   : > { %v4527_v34 = vadd.f32 %v4526_v63, %v4496_v32 }
 0x4d2   : > { %v4390_v2 = vadd.f32 %v4312_v29, %v8520_v38  ;;  %v4497_v35 = vmul.f32 %v8725_v5, %v8725_v5  ;;  %v4459_v10 = vadd.f32 %v4458_v48, %v8725_v5 }
 0x4d3   : > { %v4091_v55 = vpop.f32.mrb[10].mxu0 }
 0x4d4   : > { %v8736_v56 = vadd.f32 %v8576_v31, %v4390_v2  ;;  %v4317_v33 = vadd.f32 %v8569_v40, %v4091_v55  ;;  %v4093_v47 = vpop.f32.mrb[11].mxu0  ;;  %v4528_v45 = vadd.f32 %v4527_v34, %v4497_v35 }
 0x4d6   : > { %v4498_v28 = vmul.f32 %v8736_v56, %v8736_v56  ;;  %v4391_v38 = vadd.f32 %v4317_v33, %v8517_v53  ;;  %v4460_v62 = vadd.f32 %v4459_v10, %v8736_v56 }
 0x4d7   : > { %v4096_v58 = vpop.f32.mrb[12].mxu0 }
 0x4d8   : > { %v8745_v17 = vadd.f32 %v8576_v31, %v4391_v38  ;;  %v4322_v11 = vadd.f32 %v8584_v44, %v4096_v58  ;;  %v4098_v29 = vpop.f32.mrb[13].mxu0  ;;  %v4529_v40 = vadd.f32 %v4528_v45, %v4498_v28 }
 0x4da   : > { %v4461_v30 = vadd.f32 %v4460_v62, %v8745_v17  ;;  %v4499_v22 = vmul.f32 %v8745_v17, %v8745_v17  ;;  %v4392_v61 = vadd.f32 %v4322_v11, %v8525_v14 }
 0x4db   : > { %v4101_v32 = vpop.f32.mrb[14].mxu0 }
 0x4dc   : > { %v4530_v53 = vadd.f32 %v4529_v40, %v4499_v22  ;;  %v8753_v2 = vadd.f32 %v8576_v31, %v4392_v61  ;;  %v4327_v63 = vadd.f32 %v8582_v15, %v4101_v32  ;;  %v4103_v55 = vpop.f32.mrb[15].mxu0 }
 0x4de   : > { %v4462_v48 = vadd.f32 %v4461_v30, %v8753_v2  ;;  %v4500_v44 = vmul.f32 %v8753_v2, %v8753_v2  ;;  %v4393_v35 = vadd.f32 %v4327_v63, %v8522_v50 }
 0x4df   : > { %v4106_v33 = vpop.f32.mrb[16].mxu0 }
 0x4e0   : > { %v4531_v47 = vadd.f32 %v4530_v53, %v4500_v44  ;;  %v8761_v34 = vadd.f32 %v8576_v31, %v4393_v35  ;;  %v4332_v14 = vadd.f32 %v8601_v57, %v4106_v33  ;;  %v4108_v10 = vpop.f32.mrb[17].mxu0 }
 0x4e2   : > { %v4463_v28 = vadd.f32 %v4462_v48, %v8761_v34  ;;  %v4501_v15 = vmul.f32 %v8761_v34, %v8761_v34  ;;  %v4394_v38 = vadd.f32 %v4332_v14, %v8530_v27 }
 0x4e3   : > { %v4111_v58 = vpop.f32.mrb[18].mxu0 }
 0x4e4   : > { %v4532_v45 = vadd.f32 %v4531_v47, %v4501_v15  ;;  %v8769_v62 = vadd.f32 %v8576_v31, %v4394_v38  ;;  %v4337_v50 = vadd.f32 %v8599_v49, %v4111_v58  ;;  %v4113_v11 = vpop.f32.mrb[19].mxu0 }
 0x4e6   : > { %v4464_v29 = vadd.f32 %v4463_v28, %v8769_v62  ;;  %v4502_v57 = vmul.f32 %v8769_v62, %v8769_v62  ;;  %v4395_v40 = vadd.f32 %v4337_v50, %v8527_v3 }
 0x4e7   : > { %v4116_v30 = vpop.f32.mrb[20].mxu0 }
 0x4e8   : > { %v4533_v22 = vadd.f32 %v4532_v45, %v4502_v57  ;;  %v8777_v61 = vadd.f32 %v8576_v31, %v4395_v40  ;;  %v4342_v27 = vadd.f32 %v8621_v9, %v4116_v30  ;;  %v4118_v32 = vpop.f32.mrb[21].mxu0 }
 0x4ea   : > { %v4465_v53 = vadd.f32 %v4464_v29, %v8777_v61  ;;  %v4503_v49 = vmul.f32 %v8777_v61, %v8777_v61  ;;  %v4396_v63 = vadd.f32 %v4342_v27, %v8535_v52 }
 0x4eb   : > { %v4121_v55 = vpop.f32.mrb[22].mxu0 }
 0x4ec   : > { %v4534_v48 = vadd.f32 %v4533_v22, %v4503_v49  ;;  %v8785_v44 = vadd.f32 %v8576_v31, %v4396_v63  ;;  %v4347_v3 = vadd.f32 %v8618_v4, %v4121_v55  ;;  %v4123_v35 = vpop.f32.mrb[23].mxu0 }
 0x4ee   : > { %v4466_v33 = vadd.f32 %v4465_v53, %v8785_v44  ;;  %v4504_v9 = vmul.f32 %v8785_v44, %v8785_v44  ;;  %v4397_v47 = vadd.f32 %v4347_v3, %v8532_v21 }
 0x4ef   : > { %v4126_v14 = vpop.f32.mrb[24].mxu0 }
 0x4f0   : > { %v4535_v10 = vadd.f32 %v4534_v48, %v4504_v9  ;;  %v8793_v28 = vadd.f32 %v8576_v31, %v4397_v47  ;;  %v4352_v52 = vadd.f32 %v8638_v16, %v4126_v14  ;;  %v4128_v15 = vpop.f32.mrb[25].mxu0 }
 0x4f2   : > { %v4467_v38 = vadd.f32 %v4466_v33, %v8793_v28  ;;  %v4505_v4 = vmul.f32 %v8793_v28, %v8793_v28  ;;  %v4398_v58 = vadd.f32 %v4352_v52, %v8540_v25 }
 0x4f3   : > { %v4131_v45 = vpop.f32.mrb[26].mxu0 }
 0x4f4   : > { %v4536_v50 = vadd.f32 %v4535_v10, %v4505_v4  ;;  %v8801_v11 = vadd.f32 %v8576_v31, %v4398_v58  ;;  %v4357_v21 = vadd.f32 %v8635_v41, %v4131_v45  ;;  %v4133_v29 = vpop.f32.mrb[27].mxu0 }
 0x4f6   : > { %v4468_v57 = vadd.f32 %v4467_v38, %v8801_v11  ;;  %v4506_v16 = vmul.f32 %v8801_v11, %v8801_v11  ;;  %v4399_v40 = vadd.f32 %v4357_v21, %v8537_v7 }
 0x4f7   : > { %v4136_v30 = vpop.f32.mrb[28].mxu0 }
 0x4f8   : > { %v4537_v22 = vadd.f32 %v4536_v50, %v4506_v16  ;;  %v8809_v27 = vadd.f32 %v8576_v31, %v4399_v40  ;;  %v4362_v25 = vadd.f32 %v8656_v0, %v4136_v30  ;;  %v4138_v32 = vpop.f32.mrb[29].mxu0 }
 0x4fa   : > { %v4469_v53 = vadd.f32 %v4468_v57, %v8809_v27  ;;  %v4507_v41 = vmul.f32 %v8809_v27, %v8809_v27  ;;  %v4400_v49 = vadd.f32 %v4362_v25, %v8543_v59 }
 0x4fb   : > { %v4141_v63 = vpop.f32.mrb[30].mxu0 }
 0x4fc   : > { %v4538_v55 = vadd.f32 %v4537_v22, %v4507_v41  ;;  %v8817_v48 = vadd.f32 %v8576_v31, %v4400_v49  ;;  %v4367_v7 = vadd.f32 %v8652_v19, %v4141_v63  ;;  %v4143_v3 = vpop.f32.mrb[31].mxu0 }
 0x4fe   : > { %v4470_v35 = vadd.f32 %v4469_v53, %v8817_v48  ;;  %v4508_v0 = vmul.f32 %v8817_v48, %v8817_v48  ;;  %v4401_v33 = vadd.f32 %v4367_v7, %v8545_v39 }
 0x500   : > { %v4539_v9 = vadd.f32 %v4538_v55, %v4508_v0  ;;  %v4440_v47 = vadd.f32 %v8576_v31, %v4401_v33 }
 0x502   : > { %v4471_v14 = vadd.f32 %v4470_v35, %v4440_v47  ;;  %v4509_v59 = vmul.f32 %v4440_v47, %v4440_v47 }
 0x504   : > { %v4472_v10 = vrot.slane %v4471_v14, 4  ;;  %v4540_v52 = vadd.f32 %v4539_v9, %v4509_v59 }
 0x506   : > { %v4473_v15 = vadd.f32 %v4472_v10, %v4471_v14  ;;  %v4541_v38 = vrot.slane %v4540_v52, 4 }
 0x508   : > { %v4474_v4 = vrot.slane %v4473_v15, 2  ;;  %v4542_v58 = vadd.f32 %v4541_v38, %v4540_v52 }
 0x50a   : > { %v4475_v19 = vadd.f32 %v4474_v4, %v4473_v15  ;;  %v4543_v45 = vrot.slane %v4542_v58, 2  ;;  %v9199_v15 = vld [vmem:[#allocation13_spill] sm:$0xff] }
 0x50c   : > { %v4476_v50 = vrot.slane %v4475_v19, 1  ;;  %v4544_v21 = vadd.f32 %v4543_v45, %v4542_v58 }
 0x50e   : > { %v4477_v29 = vadd.f32 %v4476_v50, %v4475_v19  ;;  %v4545_v57 = vrot.slane %v4544_v21, 1 }
 0x510   : > { %v4546_v16 = vadd.f32 %v4545_v57, %v4544_v21  ;;  %v8825_v40 = vmul.f32 0.00390625, %v4477_v29 }
 0x512   : > { %v4548_v39 = vmul.f32 0.00390625, %v4546_v16  ;;  %v4549_v31 = vmul.f32 %v8825_v40, %v8825_v40  ;;  %v4582_v30 = vsub.f32 %v4440_v47, %v8825_v40  ;;  %v4571_v32 = vsub.f32 %v8736_v56, %v8825_v40 }
 0x513   : > { %v4572_v53 = vsub.f32 %v8745_v17, %v8825_v40  ;;  %v4573_v41 = vsub.f32 %v8753_v2, %v8825_v40  ;;  %v4574_v49 = vsub.f32 %v8761_v34, %v8825_v40  ;;  %v4575_v63 = vsub.f32 %v8769_v62, %v8825_v40  ;;  %v4631_v2 = vld [vmem:[%s6551_s12 + $0x70] sm:$0xff] }
 0x514   : > { %v4550_v22 = vsub.f32 %v4548_v39, %v4549_v31  ;;  %v4576_v55 = vsub.f32 %v8777_v61, %v8825_v40  ;;  %v4577_v7 = vsub.f32 %v8785_v44, %v8825_v40  ;;  %v4578_v3 = vsub.f32 %v8793_v28, %v8825_v40  ;;  %v4617_v39 = vld [vmem:[%s6551_s12] sm:$0xff]  ;;  %v4618_v31 = vld [vmem:[%s6551_s12 + $0x8] sm:$0xff] }
 0x515   : > { %v4579_v35 = vsub.f32 %v8801_v11, %v8825_v40  ;;  %v4580_v0 = vsub.f32 %v8809_v27, %v8825_v40  ;;  %v4581_v33 = vsub.f32 %v8817_v48, %v8825_v40  ;;  %v4551_v9 = vsub.f32 %v8588_v24, %v8825_v40  ;;  %v4633_v44 = vld [vmem:[%s6551_s12 + $0x80] sm:$0xff]  ;;  %v4640_v48 = vld [vmem:[%s6551_s12 + $0xb8] sm:$0xff] }
 0x516   : > { %v4583_v25 = vadd.f32 1e-05, %v4550_v22  ;;  %v4552_v47 = vsub.f32 %v8580_v20, %v8825_v40  ;;  %v4553_v14 = vsub.f32 %v8591_v8, %v8825_v40  ;;  %v4554_v59 = vsub.f32 %v8597_v18, %v8825_v40  ;;  %v4637_v27 = vld [vmem:[%s6551_s12 + $0xa0] sm:$0xff] }
 0x517   : > { %v4555_v10 = vsub.f32 %v8608_v54, %v8825_v40  ;;  %v4556_v52 = vsub.f32 %v8616_v46, %v8825_v40  ;;  %v4557_v38 = vsub.f32 %v9199_v15, %v8825_v40  ;;  %v4558_v24 = vsub.f32 %v8633_v23, %v8825_v40 }
 0x518   : > { %6163 = vrsqrt.f32 %v4583_v25  ;;  %v4559_v20 = vsub.f32 %v8643_v36, %v8825_v40  ;;  %v4560_v8 = vsub.f32 %v8650_v37, %v8825_v40  ;;  %v4561_v18 = vsub.f32 %v8661_v1, %v8825_v40  ;;  %v4648_v37 = vld [vmem:[%s6551_s12 + $0xf8] sm:$0xff] }
 0x519   : > { %v4562_v54 = vsub.f32 %v8668_v13, %v8825_v40  ;;  %v4563_v46 = vsub.f32 %v8675_v51, %v8825_v40  ;;  %v4564_v4 = vsub.f32 %v8682_v43, %v8825_v40  ;;  %v4565_v23 = vsub.f32 %v8689_v60, %v8825_v40 }
 0x51a   : > { %v4566_v36 = vsub.f32 %v8696_v6, %v8825_v40  ;;  %v4567_v1 = vsub.f32 %v8703_v12, %v8825_v40  ;;  %v4568_v13 = vsub.f32 %v8710_v42, %v8825_v40  ;;  %v4569_v51 = vsub.f32 %v8718_v26, %v8825_v40 }
 0x51b   : > { %v4570_v43 = vsub.f32 %v8725_v5, %v8825_v40  ;;  %v4619_v5 = vld [vmem:[%s6551_s12 + $0x10] sm:$0xff]  ;;  %v4641_v40 = vld [vmem:[%s6551_s12 + $0xc0] sm:$0xff] }
 0x522   : > { %v6164_v58 = vpop.eup %6163 }
 0x523   : > { %v4616_v60 = vmul.f32 %v6164_v58, %v4582_v30  ;;  %v4585_v19 = vmul.f32 %v6164_v58, %v4551_v9  ;;  %v4586_v6 = vmul.f32 %v6164_v58, %v4552_v47  ;;  %v4587_v45 = vmul.f32 %v6164_v58, %v4553_v14  ;;  %v4620_v47 = vld [vmem:[%s6551_s12 + $0x18] sm:$0xff]  ;;  %v4621_v14 = vld [vmem:[%s6551_s12 + $0x20] sm:$0xff] }
 0x524   : > { %v4588_v50 = vmul.f32 %v6164_v58, %v4554_v59  ;;  %v4589_v12 = vmul.f32 %v6164_v58, %v4555_v10  ;;  %v4590_v21 = vmul.f32 %v6164_v58, %v4556_v52  ;;  %v4591_v42 = vmul.f32 %v6164_v58, %v4557_v38  ;;  %v4622_v59 = vld [vmem:[%s6551_s12 + $0x28] sm:$0xff]  ;;  %v4623_v10 = vld [vmem:[%s6551_s12 + $0x30] sm:$0xff] }
 0x525   : > { %v4680_v29 = vadd.f32 %v4648_v37, %v4616_v60  ;;  %v4592_v57 = vmul.f32 %v6164_v58, %v4558_v24  ;;  %v4593_v26 = vmul.f32 %v6164_v58, %v4559_v20  ;;  %v4594_v16 = vmul.f32 %v6164_v58, %v4560_v8  ;;  %v4624_v20 = vld [vmem:[%s6551_s12 + $0x38] sm:$0xff]  ;;  %v4625_v8 = vld [vmem:[%s6551_s12 + $0x40] sm:$0xff] }
 0x526   : > { %v4595_v30 = vmul.f32 %v6164_v58, %v4561_v18  ;;  %v4596_v22 = vmul.f32 %v6164_v58, %v4562_v54  ;;  %v4597_v25 = vmul.f32 %v6164_v58, %v4563_v46  ;;  %v4598_v9 = vmul.f32 %v6164_v58, %v4564_v4  ;;  %v4626_v18 = vld [vmem:[%s6551_s12 + $0x48] sm:$0xff]  ;;  %v4628_v37 = vld [vmem:[%s6551_s12 + $0x58] sm:$0xff] }
 0x527   : > { %4712 = vst [vmem:[%s8902_s10 + $0xf8] sm:$0xff] %v4680_v29  ;;  %v4599_v52 = vmul.f32 %v6164_v58, %v4565_v23  ;;  %v8905_v15 = vmul.f32 %v6164_v58, %v4566_v36  ;;  %v8907_v38 = vmul.f32 %v6164_v58, %v4567_v1  ;;  %v8909_v24 = vmul.f32 %v6164_v58, %v4568_v13  ;;  %v4627_v36 = vld [vmem:[%s6551_s12 + $0x50] sm:$0xff]  ;;  %v4629_v1 = vld [vmem:[%s6551_s12 + $0x60] sm:$0xff] }
 0x528   : > { %v4603_v54 = vmul.f32 %v6164_v58, %v4569_v51  ;;  %v8914_v46 = vmul.f32 %v6164_v58, %v4570_v43  ;;  %v8919_v4 = vmul.f32 %v6164_v58, %v4571_v32  ;;  %v8924_v23 = vmul.f32 %v6164_v58, %v4572_v53  ;;  %v4630_v53 = vld [vmem:[%s6551_s12 + $0x68] sm:$0xff] }
 0x529   : > { %v4607_v13 = vmul.f32 %v6164_v58, %v4573_v41  ;;  %v8935_v56 = vmul.f32 %v6164_v58, %v4574_v49  ;;  %v8940_v17 = vmul.f32 %v6164_v58, %v4575_v63  ;;  %v8945_v32 = vmul.f32 %v6164_v58, %v4576_v55  ;;  %v4632_v41 = vld [vmem:[%s6551_s12 + $0x78] sm:$0xff]  ;;  %v4634_v63 = vld [vmem:[%s6551_s12 + $0x88] sm:$0xff]  ;;  %v4635_v55 = vld [vmem:[%s6551_s12 + $0x90] sm:$0xff] }
 0x52a   : > { %v8953_v34 = vmul.f32 %v6164_v58, %v4577_v7  ;;  %v8958_v62 = vmul.f32 %v6164_v58, %v4578_v3  ;;  %v8963_v61 = vmul.f32 %v6164_v58, %v4579_v35  ;;  %v8968_v49 = vmul.f32 %v6164_v58, %v4580_v0  ;;  %v4636_v35 = vld [vmem:[%s6551_s12 + $0x98] sm:$0xff]  ;;  %v4638_v0 = vld [vmem:[%s6551_s12 + $0xa8] sm:$0xff] }
 0x52b   : > { %v8976_v28 = vmul.f32 %v6164_v58, %v4581_v33  ;;  %v4649_v7 = vadd.f32 %v4617_v39, %v4585_v19  ;;  %v4650_v11 = vadd.f32 %v4618_v31, %v4586_v6  ;;  %v4651_v3 = vadd.f32 %v4619_v5, %v4587_v45  ;;  %v4642_v45 = vld [vmem:[%s6551_s12 + $0xc8] sm:$0xff]  ;;  %v4647_v31 = vld [vmem:[%s6551_s12 + $0xf0] sm:$0xff] }
 0x52c   : > { %9200 = vst [vmem:[#allocation14_spill] sm:$0xff] %v8968_v49  ;;  %v4652_v51 = vadd.f32 %v4620_v47, %v4588_v50  ;;  %v4653_v43 = vadd.f32 %v4621_v14, %v4589_v12  ;;  %v4654_v60 = vadd.f32 %v4622_v59, %v4590_v21  ;;  %v4655_v29 = vadd.f32 %v4623_v10, %v4591_v42  ;;  %v4639_v49 = vld [vmem:[%s6551_s12 + $0xb0] sm:$0xff]  ;;  %v4644_v12 = vld [vmem:[%s6551_s12 + $0xd8] sm:$0xff]  ;;  %v4646_v39 = vld [vmem:[%s6551_s12 + $0xe8] sm:$0xff] }
 0x52d   : > { %v4656_v33 = vadd.f32 %v4624_v20, %v4592_v57  ;;  %v4657_v58 = vadd.f32 %v4625_v8, %v4593_v26  ;;  %v4658_v19 = vadd.f32 %v4626_v18, %v4594_v16  ;;  %v4659_v6 = vadd.f32 %v4627_v36, %v4595_v30  ;;  %4681 = vst [vmem:[%s8902_s10] sm:$0xff] %v4649_v7  ;;  %v4643_v50 = vld [vmem:[%s6551_s12 + $0xd0] sm:$0xff]  ;;  %v4645_v16 = vld [vmem:[%s6551_s12 + $0xe0] sm:$0xff] }
 0x52e   : > { %4682 = vst [vmem:[%s8902_s10 + $0x8] sm:$0xff] %v4650_v11  ;;  %4683 = vst [vmem:[%s8902_s10 + $0x10] sm:$0xff] %v4651_v3  ;;  %v4660_v21 = vadd.f32 %v4628_v37, %v4596_v22  ;;  %v4661_v42 = vadd.f32 %v4629_v1, %v4597_v25  ;;  %v4662_v57 = vadd.f32 %v4630_v53, %v4598_v9 }
 0x52f   : > { %v4663_v26 = vadd.f32 %v4631_v2, %v4599_v52  ;;  %4684 = vst [vmem:[%s8902_s10 + $0x18] sm:$0xff] %v4652_v51  ;;  %4685 = vst [vmem:[%s8902_s10 + $0x20] sm:$0xff] %v4653_v43  ;;  %v4664_v5 = vadd.f32 %v4632_v41, %v8905_v15  ;;  %v4665_v30 = vadd.f32 %v4633_v44, %v8907_v38 }
 0x530   : > { %4686 = vst [vmem:[%s8902_s10 + $0x28] sm:$0xff] %v4654_v60  ;;  %4687 = vst [vmem:[%s8902_s10 + $0x30] sm:$0xff] %v4655_v29  ;;  %v4666_v22 = vadd.f32 %v4634_v63, %v8909_v24  ;;  %v4667_v25 = vadd.f32 %v4635_v55, %v4603_v54  ;;  %v4668_v9 = vadd.f32 %v4636_v35, %v8914_v46 }
 0x531   : > { %4688 = vst [vmem:[%s8902_s10 + $0x38] sm:$0xff] %v4656_v33  ;;  %4689 = vst [vmem:[%s8902_s10 + $0x40] sm:$0xff] %v4657_v58  ;;  %v4669_v47 = vadd.f32 %v4637_v27, %v8919_v4  ;;  %v4670_v14 = vadd.f32 %v4638_v0, %v8924_v23  ;;  %v4671_v59 = vadd.f32 %v4639_v49, %v4607_v13 }
 0x532   : > { %4690 = vst [vmem:[%s8902_s10 + $0x48] sm:$0xff] %v4658_v19  ;;  %4691 = vst [vmem:[%s8902_s10 + $0x50] sm:$0xff] %v4659_v6  ;;  %v4672_v10 = vadd.f32 %v4640_v48, %v8935_v56  ;;  %v4673_v52 = vadd.f32 %v4641_v40, %v8940_v17  ;;  %v4674_v15 = vadd.f32 %v4642_v45, %v8945_v32 }
 0x533   : > { %4692 = vst [vmem:[%s8902_s10 + $0x58] sm:$0xff] %v4660_v21  ;;  %4693 = vst [vmem:[%s8902_s10 + $0x60] sm:$0xff] %v4661_v42  ;;  %v4675_v38 = vadd.f32 %v4643_v50, %v8953_v34  ;;  %v4676_v24 = vadd.f32 %v4644_v12, %v8958_v62  ;;  %v4677_v20 = vadd.f32 %v4645_v16, %v8963_v61  ;;  %v9201_v8 = vld [vmem:[#allocation14_spill] sm:$0xff] }
 0x534   : > { %4694 = vst [vmem:[%s8902_s10 + $0x68] sm:$0xff] %v4662_v57  ;;  %4695 = vst [vmem:[%s8902_s10 + $0x70] sm:$0xff] %v4663_v26  ;;  %v4678_v18 = vadd.f32 %v4646_v39, %v9201_v8  ;;  %v4679_v54 = vadd.f32 %v4647_v31, %v8976_v28 }
 0x535   : > { %4696 = vst [vmem:[%s8902_s10 + $0x78] sm:$0xff] %v4664_v5  ;;  %4697 = vst [vmem:[%s8902_s10 + $0x80] sm:$0xff] %v4665_v30 }
 0x536   : > { %4698 = vst [vmem:[%s8902_s10 + $0x88] sm:$0xff] %v4666_v22  ;;  %4699 = vst [vmem:[%s8902_s10 + $0x90] sm:$0xff] %v4667_v25 }
 0x537   : > { %4700 = vst [vmem:[%s8902_s10 + $0x98] sm:$0xff] %v4668_v9  ;;  %4701 = vst [vmem:[%s8902_s10 + $0xa0] sm:$0xff] %v4669_v47 }
 0x538   : > { %4702 = vst [vmem:[%s8902_s10 + $0xa8] sm:$0xff] %v4670_v14  ;;  %4703 = vst [vmem:[%s8902_s10 + $0xb0] sm:$0xff] %v4671_v59 }
 0x539   : > { %4704 = vst [vmem:[%s8902_s10 + $0xb8] sm:$0xff] %v4672_v10  ;;  %4705 = vst [vmem:[%s8902_s10 + $0xc0] sm:$0xff] %v4673_v52 }
 0x53a   : > { %4706 = vst [vmem:[%s8902_s10 + $0xc8] sm:$0xff] %v4674_v15  ;;  %4707 = vst [vmem:[%s8902_s10 + $0xd0] sm:$0xff] %v4675_v38 }
 0x53b   : > { %4708 = vst [vmem:[%s8902_s10 + $0xd8] sm:$0xff] %v4676_v24  ;;  %4709 = vst [vmem:[%s8902_s10 + $0xe0] sm:$0xff] %v4677_v20 }
 0x53c   : > { %4710 = vst [vmem:[%s8902_s10 + $0xe8] sm:$0xff] %v4678_v18  ;;  %4711 = vst [vmem:[%s8902_s10 + $0xf0] sm:$0xff] %v4679_v54 }
 0x53d   : > { %6266 = shalt.err (!%p6263_p1)
}
 0x53e   : > { %s6267_s12 = scalar_lea.hbm %s9026_s11, 4096  ;;  %s6271_s15 = scalar_lea.hbm %s9095_s5, 8192 }
 0x53f   : > { %p6268_p13 = scmp.ne.s32.totalorder %s9026_s11, %s6267_s12  ;;  %p6272_p4 = scmp.lt.u32.totalorder %s9026_s11, %s9095_s5 }
 0x540   : > { %p6273_p5 = scmp.lt.u32.totalorder %s6271_s15, %s6267_s12  ;;  %p6275_p11 = scmp.lt.u32.totalorder %s6267_s12, %s9026_s11 }
 0x541   : > { %p6269_p6 = pnand %p6268_p13, %p9202_p0 }
 0x542   : > { %p6274_p8 = por %p6273_p5, %p6272_p4 }
 0x543   : > { %p6270_p10 = pneg %p6269_p6 }
 0x544   : > { %p6276_p2 = por %p6275_p11, %p6274_p8 }
 0x546   : > { %p6277_p3 = pnand %p6276_p2, %p6270_p10 }
 0x548   : > { %6280 = shalt.err (!%p6277_p3)
}
 0x549   : > { %s6332_s28 = smov 128   ;;  %s6333_s9 = smov 8  }
 0x54a   : > { %6099 = dma.vmem_to_hbm [thread:$0]  (%p9202_p0), %s9030_s13, 4096, %s9026_s11, %s4714_s22, %s6332_s28, %s6332_s28, %s6333_s9  }
 0x54b PF: > { %s4742_s30 = sand.u32 1, %s6311_s18   ;;  %p9203_p7 = scmp.ne.s32.totalorder %s9137_s25, 0 }
 0x54c   : > { %p9204_p9 = scmp.ge.s32.totalorder %s6323_s21, 2  ;;  %s4743_s17 = scalar_lea.sflag [#allocation5], %s4742_s30 }
 0x54e   : > { %p6113_p12 = pnand %p9204_p9, %p9203_p7 }
 0x550   : > { %6306 = dma.done.wait (!%p6113_p12), %s4743_s17, 4096  }
 0x551   : > { %6308 = vsyncadd (!%p6113_p12), %s4743_s17, 4294963200  ;;  %p19_p1 = scmp.ge.s32.totalorder %s6480_s29, 4   ;;  %s9205_s18 = smov %s6315_s19 }
 0x552   : > { %s9206_s19 = smov %s6319_s20  ;;  %s9207_s20 = smov %s6496_s27 }
 0x553   : > { %s9208_s21 = smov %s6480_s29  ;;  %21 = sbr.rel (!%p19_p1) target bundleno = 6 (0x6), region = 100 }
 0x55a   :  { %4748 = vsyncpa [#allocation4], 1 }
 0x55b   :  { %4750 = vsyncpa [#allocation4 + $0x1], 1 }
 0x55c   :  { %4751 = vsyncpa [#allocation7], 1 }
 0x55d   :  { %4752 = vsyncpa [#allocation5], 1 }
 0x55e   :  { %4754 = vsyncpa [#allocation5 + $0x1], 1 }

</bundles_post_ra>
